<compile_context>
chip_gen: v5e
topology: v5e:2x2
jax: 0.10.0
libtpu: 0.0.40
codegen_flags: <defaults>
</compile_context>

<pallas_src>
import jax
import jax.numpy as jnp
import numpy as np
from jax.experimental import pallas as pl
from jax.experimental.pallas import tpu as pltpu


def _gru_attention_kernel(
    x_ref,                                        # (T*B, C) f32
    wih0f_ref, wih0r_ref, whh0_ref,               # (C,3G) (C,3G) (G,3G)
    wih1f_ref, wih1r_ref, whh1_ref,               # (2H,3G) (2H,3G) (G,3G)
    attw1_ref, attb1_ref, attw2_ref, attb2_ref,   # (2H,P) (1,P) (P,1) (1,1)
    linwa_ref, linwb_ref, linb_ref,               # (2H,NC) (2H,NC) (1,NC)
    out_ref,                                      # (B, NC)
    gi_f, gi_r,                                   # scratch (T, B, 3G)
    l0, l1,                                       # scratch (T, B, 2H)
):
    T, B, H2 = l0.shape
    H = H2 // 2
    G = whh0_ref.shape[0]       # padded fused gate width (>= 2H, multiple of 128)

    def project_inputs(x_flat, w_f_ref, w_r_ref):
        """Hoisted input->hidden projection for all timesteps, both directions."""
        gf = jnp.dot(x_flat, w_f_ref[...], preferred_element_type=jnp.float32)
        gr = jnp.dot(x_flat, w_r_ref[...], preferred_element_type=jnp.float32)
        for t in range(T):                      # one-time static distribute
            gi_f[t] = gf[t * B:(t + 1) * B, :]
            gi_r[t] = gr[t * B:(t + 1) * B, :]

    def run_layer(w_hh_ref, dst_ref):
        """Fused bidirectional recurrence: only h @ W_hh stays in the loop."""
        w_hh = w_hh_ref[...]

        def step(i, h):                         # h: (B, G) = [h_f | h_r | 0pad]
            t_r = T - 1 - i
            g_in = gi_f[i] + gi_r[t_r]          # (B, 3G) precomputed x-projection
            gh = jnp.dot(h, w_hh, preferred_element_type=jnp.float32)   # (B, 3G)
            r = jax.nn.sigmoid(g_in[:, 0:G] + gh[:, 0:G])
            z = jax.nn.sigmoid(g_in[:, G:2 * G] + gh[:, G:2 * G])
            n = jnp.tanh(g_in[:, 2 * G:3 * G] + r * gh[:, 2 * G:3 * G])
            h_new = (1.0 - z) * n + z * h
            dst_ref[i, :, 0:H] = h_new[:, 0:H]           # forward output @ t=i
            dst_ref[t_r, :, H:2 * H] = h_new[:, H:2 * H]  # reverse output @ t=T-1-i
            return h_new

        jax.lax.fori_loop(0, T, step, jnp.zeros((B, G), jnp.float32),
                          unroll=True)

    # ---- GRU layer 0 ----
    project_inputs(x_ref[...], wih0f_ref, wih0r_ref)
    run_layer(whh0_ref, l0)

    # ---- GRU layer 1 (input = layer-0 bidirectional outputs) ----
    l0_flat = jnp.concatenate([l0[t] for t in range(T)], axis=0)       # (T*B, 2H)
    project_inputs(l0_flat, wih1f_ref, wih1r_ref)
    run_layer(whh1_ref, l1)

    outs = l1[...]                                                     # (T, B, 2H)
    rnn_out = outs[T - 1]                                              # (B, 2H)

    # ---- self attention: batched matmuls over the whole (T*B) slab ----
    outs_flat = jnp.concatenate([outs[t] for t in range(T)], axis=0)   # (T*B, 2H)
    h1 = jnp.maximum(
        jnp.dot(outs_flat, attw1_ref[...], preferred_element_type=jnp.float32)
        + attb1_ref[...], 0.0)                                         # (T*B, P)
    e_flat = (jnp.dot(h1, attw2_ref[...], preferred_element_type=jnp.float32)
              + attb2_ref[...])                                        # (T*B, 1)
    e = jnp.stack([e_flat[t * B:(t + 1) * B, :] for t in range(T)], axis=0)  # (T,B,1)
    e = e - jnp.max(e, axis=0, keepdims=True)
    p = jnp.exp(e)
    w = p / jnp.sum(p, axis=0, keepdims=True)                          # (T, B, 1)
    att_out = jnp.sum(outs * w, axis=0)                                # (B, 2H)

    # ---- head: split-weight linear (avoids the lane concat) ----
    out_ref[...] = (
        jnp.dot(rnn_out, linwa_ref[...], preferred_element_type=jnp.float32)
        + jnp.dot(att_out, linwb_ref[...], preferred_element_type=jnp.float32)
        + linb_ref[...])


def init_params(key, in_channels, num_classes, hidden_size, proj_size):
    """Deterministic init matching the PyTorch module's parameter shapes."""
    H, C, P, NC = hidden_size, in_channels, proj_size, num_classes
    keys = jax.random.split(key, 14)

    def init(k, shape, fan_in):
        bound = 1.0 / np.sqrt(fan_in)
        return jax.random.uniform(k, shape, jnp.float32, -bound, bound)

    return dict(
        # GRU layer 0 (forward / reverse), bias=False
        wih0f=init(keys[0], (3 * H, C), H), whh0f=init(keys[1], (3 * H, H), H),
        wih0r=init(keys[2], (3 * H, C), H), whh0r=init(keys[3], (3 * H, H), H),
        # GRU layer 1 (input = 2H)
        wih1f=init(keys[4], (3 * H, 2 * H), H), whh1f=init(keys[5], (3 * H, H), H),
        wih1r=init(keys[6], (3 * H, 2 * H), H), whh1r=init(keys[7], (3 * H, H), H),
        # Attention projection: Linear(2H->P), ReLU, Linear(P->1)
        attw1=init(keys[8], (P, 2 * H), 2 * H), attb1=init(keys[9], (P,), 2 * H),
        attw2=init(keys[10], (1, P), P), attb2=init(keys[11], (1,), P),
        # Final Linear(4H -> NC)
        linw=init(keys[12], (NC, 4 * H), 4 * H), linb=init(keys[13], (NC,), 4 * H),
    )


def prepare_weights(params, hidden_size):
    """One-time fusion/padding of PyTorch-layout weights into kernel layout.

    Fused gate-major layout per layer: columns [r | z | n], each block G lanes
    wide (G = 2H rounded up to 128) holding [fwd(0:H) | rev(H:2H) | zero pad].
    """
    H = hidden_size
    G = -(-2 * H // 128) * 128

    def ih_expand(w, off):                       # w: (3H, In) torch layout
        wt = jnp.asarray(w, jnp.float32).T       # (In, 3H), gates r|z|n
        out = jnp.zeros((wt.shape[0], 3 * G), jnp.float32)
        for g in range(3):
            out = out.at[:, g * G + off: g * G + off + H].set(
                wt[:, g * H:(g + 1) * H])
        return out

    def hh_fuse(w_f, w_r):                       # each (3H, H) torch layout
        wtf = jnp.asarray(w_f, jnp.float32).T    # (H, 3H)
        wtr = jnp.asarray(w_r, jnp.float32).T
        out = jnp.zeros((G, 3 * G), jnp.float32)
        for g in range(3):
            out = out.at[0:H, g * G: g * G + H].set(wtf[:, g * H:(g + 1) * H])
            out = out.at[H:2 * H, g * G + H: g * G + 2 * H].set(
                wtr[:, g * H:(g + 1) * H])
        return out

    P = params["attw1"].shape[0]
    NC = params["linw"].shape[0]
    return dict(
        wih0f=ih_expand(params["wih0f"], 0),
        wih0r=ih_expand(params["wih0r"], H),
        whh0=hh_fuse(params["whh0f"], params["whh0r"]),
        wih1f=ih_expand(params["wih1f"], 0),
        wih1r=ih_expand(params["wih1r"], H),
        whh1=hh_fuse(params["whh1f"], params["whh1r"]),
        attw1=jnp.asarray(params["attw1"], jnp.float32).T,            # (2H, P)
        attb1=jnp.asarray(params["attb1"], jnp.float32).reshape(1, P),
        attw2=jnp.asarray(params["attw2"], jnp.float32).T,            # (P, 1)
        attb2=jnp.asarray(params["attb2"], jnp.float32).reshape(1, 1),
        linwa=jnp.asarray(params["linw"][:, :2 * H], jnp.float32).T,  # (2H, NC)
        linwb=jnp.asarray(params["linw"][:, 2 * H:], jnp.float32).T,  # (2H, NC)
        linb=jnp.asarray(params["linb"], jnp.float32).reshape(1, NC),
    )


@jax.jit
def rnn_model_forward(inputs, prep):
    """inputs: (B, in_channels, T) like the PyTorch module (NCL)."""
    B, C, T = inputs.shape
    H = prep["attw1"].shape[0] // 2
    G = prep["whh0"].shape[0]
    NC = prep["linb"].shape[1]

    # time-major, flattened over (T, B) for the hoisted input projections
    x_flat = jnp.transpose(inputs, (2, 0, 1)).astype(jnp.float32).reshape(T * B, C)

    args = (
        x_flat,
        prep["wih0f"], prep["wih0r"], prep["whh0"],
        prep["wih1f"], prep["wih1r"], prep["whh1"],
        prep["attw1"], prep["attb1"], prep["attw2"], prep["attb2"],
        prep["linwa"], prep["linwb"], prep["linb"],
    )
    vmem = pl.BlockSpec(memory_space=pltpu.MemorySpace.VMEM)
    return pl.pallas_call(
        _gru_attention_kernel,
        out_shape=jax.ShapeDtypeStruct((B, NC), jnp.float32),
        in_specs=[vmem] * len(args),
        out_specs=vmem,
        scratch_shapes=[
            pltpu.VMEM((T, B, 3 * G), jnp.float32),   # gi_f (reused per layer)
            pltpu.VMEM((T, B, 3 * G), jnp.float32),   # gi_r (reused per layer)
            pltpu.VMEM((T, B, 2 * H), jnp.float32),   # layer-0 outputs
            pltpu.VMEM((T, B, 2 * H), jnp.float32),   # layer-1 outputs
        ],
    )(*args)


# ---------------- pure-JAX reference (for verification only) ----------------
def _gru_dir_ref(x, w_ih, w_hh, reverse):
    B, T, _ = x.shape
    H = w_hh.shape[1]
    h = jnp.zeros((B, H), jnp.float32)
    out = [None] * T
    order = range(T - 1, -1, -1) if reverse else range(T)
    for t in order:
        gi = x[:, t, :] @ w_ih.T
        gh = h @ w_hh.T
        r = jax.nn.sigmoid(gi[:, :H] + gh[:, :H])
        z = jax.nn.sigmoid(gi[:, H:2 * H] + gh[:, H:2 * H])
        n = jnp.tanh(gi[:, 2 * H:] + r * gh[:, 2 * H:])
        h = (1.0 - z) * n + z * h
        out[t] = h
    return jnp.stack(out, axis=1)                                     # (B, T, H)


def rnn_model_reference(inputs, params):
    x = jnp.transpose(inputs, (0, 2, 1)).astype(jnp.float32)          # (B, T, C)
    l0 = jnp.concatenate(
        [_gru_dir_ref(x, params["wih0f"], params["whh0f"], False),
         _gru_dir_ref(x, params["wih0r"], params["whh0r"], True)], axis=2)
    outs = jnp.concatenate(
        [_gru_dir_ref(l0, params["wih1f"], params["whh1f"], False),
         _gru_dir_ref(l0, params["wih1r"], params["whh1r"], True)], axis=2)
    rnn_out = outs[:, -1, :]
    h1 = jnp.maximum(outs @ params["attw1"].T + params["attb1"], 0.0)
    e = (h1 @ params["attw2"].T + params["attb2"])[..., 0]            # (B, T)
    w = jax.nn.softmax(e, axis=1)
    att_out = jnp.sum(outs * w[:, :, None], axis=1)
    final = jnp.concatenate([rnn_out, att_out], axis=1)
    return final @ params["linw"].T + params["linb"]


if __name__ == "__main__":
    B, C, T = 2, 4, 8        # batch, in_channels, sequence_len
    H, P, NC = 32, 32, 5     # hidden_size, proj_size, num_classes

    key = jax.random.PRNGKey(0)
    k_in, k_par = jax.random.split(key)
    inputs = jax.random.normal(k_in, (B, C, T), jnp.float32)
    params = init_params(k_par, C, NC, H, P)
    prep = prepare_weights(params, H)            # one-time weight fusion/padding

    out = jax.block_until_ready(rnn_model_forward(inputs, prep))
    ref = rnn_model_reference(inputs, params)
    np.testing.assert_allclose(np.asarray(out), np.asarray(ref),
                               rtol=2e-3, atol=2e-3)
    print("KERNEL_OK")
</pallas_src>

<mosaic_0001>
module attributes {stable_mosaic.version = 11 : i64} {
  func.func @_gru_attention_kernel(%arg0: memref<16x4xf32, #tpu.memory_space<vmem>>, %arg1: memref<4x384xf32, #tpu.memory_space<vmem>>, %arg2: memref<4x384xf32, #tpu.memory_space<vmem>>, %arg3: memref<128x384xf32, #tpu.memory_space<vmem>>, %arg4: memref<64x384xf32, #tpu.memory_space<vmem>>, %arg5: memref<64x384xf32, #tpu.memory_space<vmem>>, %arg6: memref<128x384xf32, #tpu.memory_space<vmem>>, %arg7: memref<64x32xf32, #tpu.memory_space<vmem>>, %arg8: memref<1x32xf32, #tpu.memory_space<vmem>>, %arg9: memref<32x1xf32, #tpu.memory_space<vmem>>, %arg10: memref<1x1xf32, #tpu.memory_space<vmem>>, %arg11: memref<64x5xf32, #tpu.memory_space<vmem>>, %arg12: memref<64x5xf32, #tpu.memory_space<vmem>>, %arg13: memref<1x5xf32, #tpu.memory_space<vmem>>, %arg14: memref<2x5xf32, #tpu.memory_space<vmem>>, %arg15: memref<8x2x384xf32, #tpu.memory_space<vmem>>, %arg16: memref<8x2x384xf32, #tpu.memory_space<vmem>>, %arg17: memref<8x2x64xf32, #tpu.memory_space<vmem>>, %arg18: memref<8x2x64xf32, #tpu.memory_space<vmem>>) attributes {dimension_semantics = [], scalar_prefetch = 0 : i64, scratch_operands = 4 : i64, tpu.core_type = #tpu.core_type<tc>} {
    %c0 = arith.constant 0 : index
    %c0_0 = arith.constant 0 : index
    %0 = vector.load %arg0[%c0, %c0_0] : memref<16x4xf32, #tpu.memory_space<vmem>>, vector<16x4xf32>
    %c0_1 = arith.constant 0 : index
    %c0_2 = arith.constant 0 : index
    %1 = vector.load %arg1[%c0_1, %c0_2] : memref<4x384xf32, #tpu.memory_space<vmem>>, vector<4x384xf32>
    %cst = arith.constant dense<0.000000e+00> : vector<16x384xf32>
    %2 = tpu.matmul %0, %1, %cst {dimension_numbers = #tpu.dot_dimension_numbers<[1], [0], [0], [1], [0, 0, 1, 1], [], []>} : vector<16x4xf32>, vector<4x384xf32>, vector<16x384xf32> -> vector<16x384xf32>
    %c0_3 = arith.constant 0 : index
    %c0_4 = arith.constant 0 : index
    %3 = vector.load %arg2[%c0_3, %c0_4] : memref<4x384xf32, #tpu.memory_space<vmem>>, vector<4x384xf32>
    %cst_5 = arith.constant dense<0.000000e+00> : vector<16x384xf32>
    %4 = tpu.matmul %0, %3, %cst_5 {dimension_numbers = #tpu.dot_dimension_numbers<[1], [0], [0], [1], [0, 0, 1, 1], [], []>} : vector<16x4xf32>, vector<4x384xf32>, vector<16x384xf32> -> vector<16x384xf32>
    %5 = vector.extract_strided_slice %2 {offsets = [0, 0], sizes = [2, 384], strides = [1, 1]} : vector<16x384xf32> to vector<2x384xf32>
    %c0_6 = arith.constant 0 : index
    %c0_7 = arith.constant 0 : index
    %c0_8 = arith.constant 0 : index
    %6 = vector.load %arg15[%c0_6, %c0_7, %c0_8] : memref<8x2x384xf32, #tpu.memory_space<vmem>>, vector<1x2x384xf32>
    %7 = vector.shape_cast %6 : vector<1x2x384xf32> to vector<2x384xf32>
    %8 = vector.shape_cast %5 : vector<2x384xf32> to vector<1x2x384xf32>
    tpu.vector_store %arg15[%c0_6, %c0_7, %c0_8], %8 {strides = array<i32>} : memref<8x2x384xf32, #tpu.memory_space<vmem>>, vector<1x2x384xf32>,
    %9 = vector.extract_strided_slice %4 {offsets = [0, 0], sizes = [2, 384], strides = [1, 1]} : vector<16x384xf32> to vector<2x384xf32>
    %c0_9 = arith.constant 0 : index
    %c0_10 = arith.constant 0 : index
    %c0_11 = arith.constant 0 : index
    %10 = vector.load %arg16[%c0_9, %c0_10, %c0_11] : memref<8x2x384xf32, #tpu.memory_space<vmem>>, vector<1x2x384xf32>
    %11 = vector.shape_cast %10 : vector<1x2x384xf32> to vector<2x384xf32>
    %12 = vector.shape_cast %9 : vector<2x384xf32> to vector<1x2x384xf32>
    tpu.vector_store %arg16[%c0_9, %c0_10, %c0_11], %12 {strides = array<i32>} : memref<8x2x384xf32, #tpu.memory_space<vmem>>, vector<1x2x384xf32>,
    %13 = vector.extract_strided_slice %2 {offsets = [2, 0], sizes = [2, 384], strides = [1, 1]} : vector<16x384xf32> to vector<2x384xf32>
    %c1 = arith.constant 1 : index
    %c0_12 = arith.constant 0 : index
    %c0_13 = arith.constant 0 : index
    %14 = vector.load %arg15[%c1, %c0_12, %c0_13] : memref<8x2x384xf32, #tpu.memory_space<vmem>>, vector<1x2x384xf32>
    %15 = vector.shape_cast %14 : vector<1x2x384xf32> to vector<2x384xf32>
    %16 = vector.shape_cast %13 : vector<2x384xf32> to vector<1x2x384xf32>
    tpu.vector_store %arg15[%c1, %c0_12, %c0_13], %16 {strides = array<i32>} : memref<8x2x384xf32, #tpu.memory_space<vmem>>, vector<1x2x384xf32>,
    %17 = vector.extract_strided_slice %4 {offsets = [2, 0], sizes = [2, 384], strides = [1, 1]} : vector<16x384xf32> to vector<2x384xf32>
    %c1_14 = arith.constant 1 : index
    %c0_15 = arith.constant 0 : index
    %c0_16 = arith.constant 0 : index
    %18 = vector.load %arg16[%c1_14, %c0_15, %c0_16] : memref<8x2x384xf32, #tpu.memory_space<vmem>>, vector<1x2x384xf32>
    %19 = vector.shape_cast %18 : vector<1x2x384xf32> to vector<2x384xf32>
    %20 = vector.shape_cast %17 : vector<2x384xf32> to vector<1x2x384xf32>
    tpu.vector_store %arg16[%c1_14, %c0_15, %c0_16], %20 {strides = array<i32>} : memref<8x2x384xf32, #tpu.memory_space<vmem>>, vector<1x2x384xf32>,
    %21 = vector.extract_strided_slice %2 {offsets = [4, 0], sizes = [2, 384], strides = [1, 1]} : vector<16x384xf32> to vector<2x384xf32>
    %c2 = arith.constant 2 : index
    %c0_17 = arith.constant 0 : index
    %c0_18 = arith.constant 0 : index
    %22 = vector.load %arg15[%c2, %c0_17, %c0_18] : memref<8x2x384xf32, #tpu.memory_space<vmem>>, vector<1x2x384xf32>
    %23 = vector.shape_cast %22 : vector<1x2x384xf32> to vector<2x384xf32>
    %24 = vector.shape_cast %21 : vector<2x384xf32> to vector<1x2x384xf32>
    tpu.vector_store %arg15[%c2, %c0_17, %c0_18], %24 {strides = array<i32>} : memref<8x2x384xf32, #tpu.memory_space<vmem>>, vector<1x2x384xf32>,
    %25 = vector.extract_strided_slice %4 {offsets = [4, 0], sizes = [2, 384], strides = [1, 1]} : vector<16x384xf32> to vector<2x384xf32>
    %c2_19 = arith.constant 2 : index
    %c0_20 = arith.constant 0 : index
    %c0_21 = arith.constant 0 : index
    %26 = vector.load %arg16[%c2_19, %c0_20, %c0_21] : memref<8x2x384xf32, #tpu.memory_space<vmem>>, vector<1x2x384xf32>
    %27 = vector.shape_cast %26 : vector<1x2x384xf32> to vector<2x384xf32>
    %28 = vector.shape_cast %25 : vector<2x384xf32> to vector<1x2x384xf32>
    tpu.vector_store %arg16[%c2_19, %c0_20, %c0_21], %28 {strides = array<i32>} : memref<8x2x384xf32, #tpu.memory_space<vmem>>, vector<1x2x384xf32>,
    %29 = vector.extract_strided_slice %2 {offsets = [6, 0], sizes = [2, 384], strides = [1, 1]} : vector<16x384xf32> to vector<2x384xf32>
    %c3 = arith.constant 3 : index
    %c0_22 = arith.constant 0 : index
    %c0_23 = arith.constant 0 : index
    %30 = vector.load %arg15[%c3, %c0_22, %c0_23] : memref<8x2x384xf32, #tpu.memory_space<vmem>>, vector<1x2x384xf32>
    %31 = vector.shape_cast %30 : vector<1x2x384xf32> to vector<2x384xf32>
    %32 = vector.shape_cast %29 : vector<2x384xf32> to vector<1x2x384xf32>
    tpu.vector_store %arg15[%c3, %c0_22, %c0_23], %32 {strides = array<i32>} : memref<8x2x384xf32, #tpu.memory_space<vmem>>, vector<1x2x384xf32>,
    %33 = vector.extract_strided_slice %4 {offsets = [6, 0], sizes = [2, 384], strides = [1, 1]} : vector<16x384xf32> to vector<2x384xf32>
    %c3_24 = arith.constant 3 : index
    %c0_25 = arith.constant 0 : index
    %c0_26 = arith.constant 0 : index
    %34 = vector.load %arg16[%c3_24, %c0_25, %c0_26] : memref<8x2x384xf32, #tpu.memory_space<vmem>>, vector<1x2x384xf32>
    %35 = vector.shape_cast %34 : vector<1x2x384xf32> to vector<2x384xf32>
    %36 = vector.shape_cast %33 : vector<2x384xf32> to vector<1x2x384xf32>
    tpu.vector_store %arg16[%c3_24, %c0_25, %c0_26], %36 {strides = array<i32>} : memref<8x2x384xf32, #tpu.memory_space<vmem>>, vector<1x2x384xf32>,
    %37 = vector.extract_strided_slice %2 {offsets = [8, 0], sizes = [2, 384], strides = [1, 1]} : vector<16x384xf32> to vector<2x384xf32>
    %c4 = arith.constant 4 : index
    %c0_27 = arith.constant 0 : index
    %c0_28 = arith.constant 0 : index
    %38 = vector.load %arg15[%c4, %c0_27, %c0_28] : memref<8x2x384xf32, #tpu.memory_space<vmem>>, vector<1x2x384xf32>
    %39 = vector.shape_cast %38 : vector<1x2x384xf32> to vector<2x384xf32>
    %40 = vector.shape_cast %37 : vector<2x384xf32> to vector<1x2x384xf32>
    tpu.vector_store %arg15[%c4, %c0_27, %c0_28], %40 {strides = array<i32>} : memref<8x2x384xf32, #tpu.memory_space<vmem>>, vector<1x2x384xf32>,
    %41 = vector.extract_strided_slice %4 {offsets = [8, 0], sizes = [2, 384], strides = [1, 1]} : vector<16x384xf32> to vector<2x384xf32>
    %c4_29 = arith.constant 4 : index
    %c0_30 = arith.constant 0 : index
    %c0_31 = arith.constant 0 : index
    %42 = vector.load %arg16[%c4_29, %c0_30, %c0_31] : memref<8x2x384xf32, #tpu.memory_space<vmem>>, vector<1x2x384xf32>
    %43 = vector.shape_cast %42 : vector<1x2x384xf32> to vector<2x384xf32>
    %44 = vector.shape_cast %41 : vector<2x384xf32> to vector<1x2x384xf32>
    tpu.vector_store %arg16[%c4_29, %c0_30, %c0_31], %44 {strides = array<i32>} : memref<8x2x384xf32, #tpu.memory_space<vmem>>, vector<1x2x384xf32>,
    %45 = vector.extract_strided_slice %2 {offsets = [10, 0], sizes = [2, 384], strides = [1, 1]} : vector<16x384xf32> to vector<2x384xf32>
    %c5 = arith.constant 5 : index
    %c0_32 = arith.constant 0 : index
    %c0_33 = arith.constant 0 : index
    %46 = vector.load %arg15[%c5, %c0_32, %c0_33] : memref<8x2x384xf32, #tpu.memory_space<vmem>>, vector<1x2x384xf32>
    %47 = vector.shape_cast %46 : vector<1x2x384xf32> to vector<2x384xf32>
    %48 = vector.shape_cast %45 : vector<2x384xf32> to vector<1x2x384xf32>
    tpu.vector_store %arg15[%c5, %c0_32, %c0_33], %48 {strides = array<i32>} : memref<8x2x384xf32, #tpu.memory_space<vmem>>, vector<1x2x384xf32>,
    %49 = vector.extract_strided_slice %4 {offsets = [10, 0], sizes = [2, 384], strides = [1, 1]} : vector<16x384xf32> to vector<2x384xf32>
    %c5_34 = arith.constant 5 : index
    %c0_35 = arith.constant 0 : index
    %c0_36 = arith.constant 0 : index
    %50 = vector.load %arg16[%c5_34, %c0_35, %c0_36] : memref<8x2x384xf32, #tpu.memory_space<vmem>>, vector<1x2x384xf32>
    %51 = vector.shape_cast %50 : vector<1x2x384xf32> to vector<2x384xf32>
    %52 = vector.shape_cast %49 : vector<2x384xf32> to vector<1x2x384xf32>
    tpu.vector_store %arg16[%c5_34, %c0_35, %c0_36], %52 {strides = array<i32>} : memref<8x2x384xf32, #tpu.memory_space<vmem>>, vector<1x2x384xf32>,
    %53 = vector.extract_strided_slice %2 {offsets = [12, 0], sizes = [2, 384], strides = [1, 1]} : vector<16x384xf32> to vector<2x384xf32>
    %c6 = arith.constant 6 : index
    %c0_37 = arith.constant 0 : index
    %c0_38 = arith.constant 0 : index
    %54 = vector.load %arg15[%c6, %c0_37, %c0_38] : memref<8x2x384xf32, #tpu.memory_space<vmem>>, vector<1x2x384xf32>
    %55 = vector.shape_cast %54 : vector<1x2x384xf32> to vector<2x384xf32>
    %56 = vector.shape_cast %53 : vector<2x384xf32> to vector<1x2x384xf32>
    tpu.vector_store %arg15[%c6, %c0_37, %c0_38], %56 {strides = array<i32>} : memref<8x2x384xf32, #tpu.memory_space<vmem>>, vector<1x2x384xf32>,
    %57 = vector.extract_strided_slice %4 {offsets = [12, 0], sizes = [2, 384], strides = [1, 1]} : vector<16x384xf32> to vector<2x384xf32>
    %c6_39 = arith.constant 6 : index
    %c0_40 = arith.constant 0 : index
    %c0_41 = arith.constant 0 : index
    %58 = vector.load %arg16[%c6_39, %c0_40, %c0_41] : memref<8x2x384xf32, #tpu.memory_space<vmem>>, vector<1x2x384xf32>
    %59 = vector.shape_cast %58 : vector<1x2x384xf32> to vector<2x384xf32>
    %60 = vector.shape_cast %57 : vector<2x384xf32> to vector<1x2x384xf32>
    tpu.vector_store %arg16[%c6_39, %c0_40, %c0_41], %60 {strides = array<i32>} : memref<8x2x384xf32, #tpu.memory_space<vmem>>, vector<1x2x384xf32>,
    %61 = vector.extract_strided_slice %2 {offsets = [14, 0], sizes = [2, 384], strides = [1, 1]} : vector<16x384xf32> to vector<2x384xf32>
    %c7 = arith.constant 7 : index
    %c0_42 = arith.constant 0 : index
    %c0_43 = arith.constant 0 : index
    %62 = vector.load %arg15[%c7, %c0_42, %c0_43] : memref<8x2x384xf32, #tpu.memory_space<vmem>>, vector<1x2x384xf32>
    %63 = vector.shape_cast %62 : vector<1x2x384xf32> to vector<2x384xf32>
    %64 = vector.shape_cast %61 : vector<2x384xf32> to vector<1x2x384xf32>
    tpu.vector_store %arg15[%c7, %c0_42, %c0_43], %64 {strides = array<i32>} : memref<8x2x384xf32, #tpu.memory_space<vmem>>, vector<1x2x384xf32>,
    %65 = vector.extract_strided_slice %4 {offsets = [14, 0], sizes = [2, 384], strides = [1, 1]} : vector<16x384xf32> to vector<2x384xf32>
    %c7_44 = arith.constant 7 : index
    %c0_45 = arith.constant 0 : index
    %c0_46 = arith.constant 0 : index
    %66 = vector.load %arg16[%c7_44, %c0_45, %c0_46] : memref<8x2x384xf32, #tpu.memory_space<vmem>>, vector<1x2x384xf32>
    %67 = vector.shape_cast %66 : vector<1x2x384xf32> to vector<2x384xf32>
    %68 = vector.shape_cast %65 : vector<2x384xf32> to vector<1x2x384xf32>
    tpu.vector_store %arg16[%c7_44, %c0_45, %c0_46], %68 {strides = array<i32>} : memref<8x2x384xf32, #tpu.memory_space<vmem>>, vector<1x2x384xf32>,
    %c0_47 = arith.constant 0 : index
    %c0_48 = arith.constant 0 : index
    %69 = vector.load %arg3[%c0_47, %c0_48] : memref<128x384xf32, #tpu.memory_space<vmem>>, vector<128x384xf32>
    %cst_49 = arith.constant 0.000000e+00 : f32
    %70 = vector.broadcast %cst_49 : f32 to vector<2x128xf32>
    %c0_i32 = arith.constant 0 : i32
    %c7_i32 = arith.constant 7 : i32
    %71 = arith.subi %c7_i32, %c0_i32 : i32
    %72 = arith.index_cast %c0_i32 : i32 to index
    %c0_50 = arith.constant 0 : index
    %c0_51 = arith.constant 0 : index
    %73 = vector.load %arg15[%72, %c0_50, %c0_51] : memref<8x2x384xf32, #tpu.memory_space<vmem>>, vector<1x2x384xf32>
    %74 = vector.shape_cast %73 : vector<1x2x384xf32> to vector<2x384xf32>
    %75 = arith.index_cast %71 : i32 to index
    %c0_52 = arith.constant 0 : index
    %c0_53 = arith.constant 0 : index
    %76 = vector.load %arg16[%75, %c0_52, %c0_53] : memref<8x2x384xf32, #tpu.memory_space<vmem>>, vector<1x2x384xf32>
    %77 = vector.shape_cast %76 : vector<1x2x384xf32> to vector<2x384xf32>
    %78 = arith.addf %74, %77 : vector<2x384xf32>
    %cst_54 = arith.constant dense<0.000000e+00> : vector<2x384xf32>
    %79 = tpu.matmul %70, %69, %cst_54 {dimension_numbers = #tpu.dot_dimension_numbers<[1], [0], [0], [1], [0, 0, 1, 1], [], []>} : vector<2x128xf32>, vector<128x384xf32>, vector<2x384xf32> -> vector<2x384xf32>
    %80 = vector.extract_strided_slice %78 {offsets = [0, 0], sizes = [2, 128], strides = [1, 1]} : vector<2x384xf32> to vector<2x128xf32>
    %81 = vector.extract_strided_slice %79 {offsets = [0, 0], sizes = [2, 128], strides = [1, 1]} : vector<2x384xf32> to vector<2x128xf32>
    %82 = arith.addf %80, %81 : vector<2x128xf32>
    %83 = arith.negf %82 : vector<2x128xf32>
    %84 = math.exp %83 : vector<2x128xf32>
    %cst_55 = arith.constant 1.000000e+00 : f32
    %85 = vector.broadcast %cst_55 : f32 to vector<2x128xf32>
    %86 = arith.addf %85, %84 : vector<2x128xf32>
    %87 = arith.divf %85, %86 : vector<2x128xf32>
    %88 = vector.extract_strided_slice %78 {offsets = [0, 128], sizes = [2, 128], strides = [1, 1]} : vector<2x384xf32> to vector<2x128xf32>
    %89 = vector.extract_strided_slice %79 {offsets = [0, 128], sizes = [2, 128], strides = [1, 1]} : vector<2x384xf32> to vector<2x128xf32>
    %90 = arith.addf %88, %89 : vector<2x128xf32>
    %91 = arith.negf %90 : vector<2x128xf32>
    %92 = math.exp %91 : vector<2x128xf32>
    %cst_56 = arith.constant 1.000000e+00 : f32
    %93 = vector.broadcast %cst_56 : f32 to vector<2x128xf32>
    %94 = arith.addf %93, %92 : vector<2x128xf32>
    %95 = arith.divf %93, %94 : vector<2x128xf32>
    %96 = vector.extract_strided_slice %78 {offsets = [0, 256], sizes = [2, 128], strides = [1, 1]} : vector<2x384xf32> to vector<2x128xf32>
    %97 = vector.extract_strided_slice %79 {offsets = [0, 256], sizes = [2, 128], strides = [1, 1]} : vector<2x384xf32> to vector<2x128xf32>
    %98 = arith.mulf %87, %97 : vector<2x128xf32>
    %99 = arith.addf %96, %98 : vector<2x128xf32>
    %100 = math.tanh %99 : vector<2x128xf32>
    %cst_57 = arith.constant 1.000000e+00 : f32
    %101 = vector.broadcast %cst_57 : f32 to vector<2x128xf32>
    %102 = arith.subf %101, %95 : vector<2x128xf32>
    %103 = arith.mulf %102, %100 : vector<2x128xf32>
    %104 = arith.mulf %95, %70 : vector<2x128xf32>
    %105 = arith.addf %103, %104 : vector<2x128xf32>
    %106 = vector.extract_strided_slice %105 {offsets = [0, 0], sizes = [2, 32], strides = [1, 1]} : vector<2x128xf32> to vector<2x32xf32>
    %107 = arith.index_cast %c0_i32 : i32 to index
    %c0_58 = arith.constant 0 : index
    %c0_59 = arith.constant 0 : index
    %108 = vector.load %arg17[%107, %c0_58, %c0_59] : memref<8x2x64xf32, #tpu.memory_space<vmem>>, vector<1x2x32xf32>
    %109 = vector.shape_cast %108 : vector<1x2x32xf32> to vector<2x32xf32>
    %110 = vector.shape_cast %106 : vector<2x32xf32> to vector<1x2x32xf32>
    tpu.vector_store %arg17[%107, %c0_58, %c0_59], %110 {strides = array<i32>} : memref<8x2x64xf32, #tpu.memory_space<vmem>>, vector<1x2x32xf32>,
    %111 = vector.extract_strided_slice %105 {offsets = [0, 32], sizes = [2, 32], strides = [1, 1]} : vector<2x128xf32> to vector<2x32xf32>
    %112 = arith.index_cast %71 : i32 to index
    %c0_60 = arith.constant 0 : index
    %c32 = arith.constant 32 : index
    %113 = vector.load %arg17[%112, %c0_60, %c32] : memref<8x2x64xf32, #tpu.memory_space<vmem>>, vector<1x2x32xf32>
    %114 = vector.shape_cast %113 : vector<1x2x32xf32> to vector<2x32xf32>
    %115 = vector.shape_cast %111 : vector<2x32xf32> to vector<1x2x32xf32>
    tpu.vector_store %arg17[%112, %c0_60, %c32], %115 {strides = array<i32>} : memref<8x2x64xf32, #tpu.memory_space<vmem>>, vector<1x2x32xf32>,
    %c1_i32 = arith.constant 1 : i32
    %c7_i32_61 = arith.constant 7 : i32
    %116 = arith.subi %c7_i32_61, %c1_i32 : i32
    %117 = arith.index_cast %c1_i32 : i32 to index
    %c0_62 = arith.constant 0 : index
    %c0_63 = arith.constant 0 : index
    %118 = vector.load %arg15[%117, %c0_62, %c0_63] : memref<8x2x384xf32, #tpu.memory_space<vmem>>, vector<1x2x384xf32>
    %119 = vector.shape_cast %118 : vector<1x2x384xf32> to vector<2x384xf32>
    %120 = arith.index_cast %116 : i32 to index
    %c0_64 = arith.constant 0 : index
    %c0_65 = arith.constant 0 : index
    %121 = vector.load %arg16[%120, %c0_64, %c0_65] : memref<8x2x384xf32, #tpu.memory_space<vmem>>, vector<1x2x384xf32>
    %122 = vector.shape_cast %121 : vector<1x2x384xf32> to vector<2x384xf32>
    %123 = arith.addf %119, %122 : vector<2x384xf32>
    %cst_66 = arith.constant dense<0.000000e+00> : vector<2x384xf32>
    %124 = tpu.matmul %105, %69, %cst_66 {dimension_numbers = #tpu.dot_dimension_numbers<[1], [0], [0], [1], [0, 0, 1, 1], [], []>} : vector<2x128xf32>, vector<128x384xf32>, vector<2x384xf32> -> vector<2x384xf32>
    %125 = vector.extract_strided_slice %123 {offsets = [0, 0], sizes = [2, 128], strides = [1, 1]} : vector<2x384xf32> to vector<2x128xf32>
    %126 = vector.extract_strided_slice %124 {offsets = [0, 0], sizes = [2, 128], strides = [1, 1]} : vector<2x384xf32> to vector<2x128xf32>
    %127 = arith.addf %125, %126 : vector<2x128xf32>
    %128 = arith.negf %127 : vector<2x128xf32>
    %129 = math.exp %128 : vector<2x128xf32>
    %cst_67 = arith.constant 1.000000e+00 : f32
    %130 = vector.broadcast %cst_67 : f32 to vector<2x128xf32>
    %131 = arith.addf %130, %129 : vector<2x128xf32>
    %132 = arith.divf %130, %131 : vector<2x128xf32>
    %133 = vector.extract_strided_slice %123 {offsets = [0, 128], sizes = [2, 128], strides = [1, 1]} : vector<2x384xf32> to vector<2x128xf32>
    %134 = vector.extract_strided_slice %124 {offsets = [0, 128], sizes = [2, 128], strides = [1, 1]} : vector<2x384xf32> to vector<2x128xf32>
    %135 = arith.addf %133, %134 : vector<2x128xf32>
    %136 = arith.negf %135 : vector<2x128xf32>
    %137 = math.exp %136 : vector<2x128xf32>
    %cst_68 = arith.constant 1.000000e+00 : f32
    %138 = vector.broadcast %cst_68 : f32 to vector<2x128xf32>
    %139 = arith.addf %138, %137 : vector<2x128xf32>
    %140 = arith.divf %138, %139 : vector<2x128xf32>
    %141 = vector.extract_strided_slice %123 {offsets = [0, 256], sizes = [2, 128], strides = [1, 1]} : vector<2x384xf32> to vector<2x128xf32>
    %142 = vector.extract_strided_slice %124 {offsets = [0, 256], sizes = [2, 128], strides = [1, 1]} : vector<2x384xf32> to vector<2x128xf32>
    %143 = arith.mulf %132, %142 : vector<2x128xf32>
    %144 = arith.addf %141, %143 : vector<2x128xf32>
    %145 = math.tanh %144 : vector<2x128xf32>
    %cst_69 = arith.constant 1.000000e+00 : f32
    %146 = vector.broadcast %cst_69 : f32 to vector<2x128xf32>
    %147 = arith.subf %146, %140 : vector<2x128xf32>
    %148 = arith.mulf %147, %145 : vector<2x128xf32>
    %149 = arith.mulf %140, %105 : vector<2x128xf32>
    %150 = arith.addf %148, %149 : vector<2x128xf32>
    %151 = vector.extract_strided_slice %150 {offsets = [0, 0], sizes = [2, 32], strides = [1, 1]} : vector<2x128xf32> to vector<2x32xf32>
    %152 = arith.index_cast %c1_i32 : i32 to index
    %c0_70 = arith.constant 0 : index
    %c0_71 = arith.constant 0 : index
    %153 = vector.load %arg17[%152, %c0_70, %c0_71] : memref<8x2x64xf32, #tpu.memory_space<vmem>>, vector<1x2x32xf32>
    %154 = vector.shape_cast %153 : vector<1x2x32xf32> to vector<2x32xf32>
    %155 = vector.shape_cast %151 : vector<2x32xf32> to vector<1x2x32xf32>
    tpu.vector_store %arg17[%152, %c0_70, %c0_71], %155 {strides = array<i32>} : memref<8x2x64xf32, #tpu.memory_space<vmem>>, vector<1x2x32xf32>,
    %156 = vector.extract_strided_slice %150 {offsets = [0, 32], sizes = [2, 32], strides = [1, 1]} : vector<2x128xf32> to vector<2x32xf32>
    %157 = arith.index_cast %116 : i32 to index
    %c0_72 = arith.constant 0 : index
    %c32_73 = arith.constant 32 : index
    %158 = vector.load %arg17[%157, %c0_72, %c32_73] : memref<8x2x64xf32, #tpu.memory_space<vmem>>, vector<1x2x32xf32>
    %159 = vector.shape_cast %158 : vector<1x2x32xf32> to vector<2x32xf32>
    %160 = vector.shape_cast %156 : vector<2x32xf32> to vector<1x2x32xf32>
    tpu.vector_store %arg17[%157, %c0_72, %c32_73], %160 {strides = array<i32>} : memref<8x2x64xf32, #tpu.memory_space<vmem>>, vector<1x2x32xf32>,
    %c2_i32 = arith.constant 2 : i32
    %c7_i32_74 = arith.constant 7 : i32
    %161 = arith.subi %c7_i32_74, %c2_i32 : i32
    %162 = arith.index_cast %c2_i32 : i32 to index
    %c0_75 = arith.constant 0 : index
    %c0_76 = arith.constant 0 : index
    %163 = vector.load %arg15[%162, %c0_75, %c0_76] : memref<8x2x384xf32, #tpu.memory_space<vmem>>, vector<1x2x384xf32>
    %164 = vector.shape_cast %163 : vector<1x2x384xf32> to vector<2x384xf32>
    %165 = arith.index_cast %161 : i32 to index
    %c0_77 = arith.constant 0 : index
    %c0_78 = arith.constant 0 : index
    %166 = vector.load %arg16[%165, %c0_77, %c0_78] : memref<8x2x384xf32, #tpu.memory_space<vmem>>, vector<1x2x384xf32>
    %167 = vector.shape_cast %166 : vector<1x2x384xf32> to vector<2x384xf32>
    %168 = arith.addf %164, %167 : vector<2x384xf32>
    %cst_79 = arith.constant dense<0.000000e+00> : vector<2x384xf32>
    %169 = tpu.matmul %150, %69, %cst_79 {dimension_numbers = #tpu.dot_dimension_numbers<[1], [0], [0], [1], [0, 0, 1, 1], [], []>} : vector<2x128xf32>, vector<128x384xf32>, vector<2x384xf32> -> vector<2x384xf32>
    %170 = vector.extract_strided_slice %168 {offsets = [0, 0], sizes = [2, 128], strides = [1, 1]} : vector<2x384xf32> to vector<2x128xf32>
    %171 = vector.extract_strided_slice %169 {offsets = [0, 0], sizes = [2, 128], strides = [1, 1]} : vector<2x384xf32> to vector<2x128xf32>
    %172 = arith.addf %170, %171 : vector<2x128xf32>
    %173 = arith.negf %172 : vector<2x128xf32>
    %174 = math.exp %173 : vector<2x128xf32>
    %cst_80 = arith.constant 1.000000e+00 : f32
    %175 = vector.broadcast %cst_80 : f32 to vector<2x128xf32>
    %176 = arith.addf %175, %174 : vector<2x128xf32>
    %177 = arith.divf %175, %176 : vector<2x128xf32>
    %178 = vector.extract_strided_slice %168 {offsets = [0, 128], sizes = [2, 128], strides = [1, 1]} : vector<2x384xf32> to vector<2x128xf32>
    %179 = vector.extract_strided_slice %169 {offsets = [0, 128], sizes = [2, 128], strides = [1, 1]} : vector<2x384xf32> to vector<2x128xf32>
    %180 = arith.addf %178, %179 : vector<2x128xf32>
    %181 = arith.negf %180 : vector<2x128xf32>
    %182 = math.exp %181 : vector<2x128xf32>
    %cst_81 = arith.constant 1.000000e+00 : f32
    %183 = vector.broadcast %cst_81 : f32 to vector<2x128xf32>
    %184 = arith.addf %183, %182 : vector<2x128xf32>
    %185 = arith.divf %183, %184 : vector<2x128xf32>
    %186 = vector.extract_strided_slice %168 {offsets = [0, 256], sizes = [2, 128], strides = [1, 1]} : vector<2x384xf32> to vector<2x128xf32>
    %187 = vector.extract_strided_slice %169 {offsets = [0, 256], sizes = [2, 128], strides = [1, 1]} : vector<2x384xf32> to vector<2x128xf32>
    %188 = arith.mulf %177, %187 : vector<2x128xf32>
    %189 = arith.addf %186, %188 : vector<2x128xf32>
    %190 = math.tanh %189 : vector<2x128xf32>
    %cst_82 = arith.constant 1.000000e+00 : f32
    %191 = vector.broadcast %cst_82 : f32 to vector<2x128xf32>
    %192 = arith.subf %191, %185 : vector<2x128xf32>
    %193 = arith.mulf %192, %190 : vector<2x128xf32>
    %194 = arith.mulf %185, %150 : vector<2x128xf32>
    %195 = arith.addf %193, %194 : vector<2x128xf32>
    %196 = vector.extract_strided_slice %195 {offsets = [0, 0], sizes = [2, 32], strides = [1, 1]} : vector<2x128xf32> to vector<2x32xf32>
    %197 = arith.index_cast %c2_i32 : i32 to index
    %c0_83 = arith.constant 0 : index
    %c0_84 = arith.constant 0 : index
    %198 = vector.load %arg17[%197, %c0_83, %c0_84] : memref<8x2x64xf32, #tpu.memory_space<vmem>>, vector<1x2x32xf32>
    %199 = vector.shape_cast %198 : vector<1x2x32xf32> to vector<2x32xf32>
    %200 = vector.shape_cast %196 : vector<2x32xf32> to vector<1x2x32xf32>
    tpu.vector_store %arg17[%197, %c0_83, %c0_84], %200 {strides = array<i32>} : memref<8x2x64xf32, #tpu.memory_space<vmem>>, vector<1x2x32xf32>,
    %201 = vector.extract_strided_slice %195 {offsets = [0, 32], sizes = [2, 32], strides = [1, 1]} : vector<2x128xf32> to vector<2x32xf32>
    %202 = arith.index_cast %161 : i32 to index
    %c0_85 = arith.constant 0 : index
    %c32_86 = arith.constant 32 : index
    %203 = vector.load %arg17[%202, %c0_85, %c32_86] : memref<8x2x64xf32, #tpu.memory_space<vmem>>, vector<1x2x32xf32>
    %204 = vector.shape_cast %203 : vector<1x2x32xf32> to vector<2x32xf32>
    %205 = vector.shape_cast %201 : vector<2x32xf32> to vector<1x2x32xf32>
    tpu.vector_store %arg17[%202, %c0_85, %c32_86], %205 {strides = array<i32>} : memref<8x2x64xf32, #tpu.memory_space<vmem>>, vector<1x2x32xf32>,
    %c3_i32 = arith.constant 3 : i32
    %c7_i32_87 = arith.constant 7 : i32
    %206 = arith.subi %c7_i32_87, %c3_i32 : i32
    %207 = arith.index_cast %c3_i32 : i32 to index
    %c0_88 = arith.constant 0 : index
    %c0_89 = arith.constant 0 : index
    %208 = vector.load %arg15[%207, %c0_88, %c0_89] : memref<8x2x384xf32, #tpu.memory_space<vmem>>, vector<1x2x384xf32>
    %209 = vector.shape_cast %208 : vector<1x2x384xf32> to vector<2x384xf32>
    %210 = arith.index_cast %206 : i32 to index
    %c0_90 = arith.constant 0 : index
    %c0_91 = arith.constant 0 : index
    %211 = vector.load %arg16[%210, %c0_90, %c0_91] : memref<8x2x384xf32, #tpu.memory_space<vmem>>, vector<1x2x384xf32>
    %212 = vector.shape_cast %211 : vector<1x2x384xf32> to vector<2x384xf32>
    %213 = arith.addf %209, %212 : vector<2x384xf32>
    %cst_92 = arith.constant dense<0.000000e+00> : vector<2x384xf32>
    %214 = tpu.matmul %195, %69, %cst_92 {dimension_numbers = #tpu.dot_dimension_numbers<[1], [0], [0], [1], [0, 0, 1, 1], [], []>} : vector<2x128xf32>, vector<128x384xf32>, vector<2x384xf32> -> vector<2x384xf32>
    %215 = vector.extract_strided_slice %213 {offsets = [0, 0], sizes = [2, 128], strides = [1, 1]} : vector<2x384xf32> to vector<2x128xf32>
    %216 = vector.extract_strided_slice %214 {offsets = [0, 0], sizes = [2, 128], strides = [1, 1]} : vector<2x384xf32> to vector<2x128xf32>
    %217 = arith.addf %215, %216 : vector<2x128xf32>
    %218 = arith.negf %217 : vector<2x128xf32>
    %219 = math.exp %218 : vector<2x128xf32>
    %cst_93 = arith.constant 1.000000e+00 : f32
    %220 = vector.broadcast %cst_93 : f32 to vector<2x128xf32>
    %221 = arith.addf %220, %219 : vector<2x128xf32>
    %222 = arith.divf %220, %221 : vector<2x128xf32>
    %223 = vector.extract_strided_slice %213 {offsets = [0, 128], sizes = [2, 128], strides = [1, 1]} : vector<2x384xf32> to vector<2x128xf32>
    %224 = vector.extract_strided_slice %214 {offsets = [0, 128], sizes = [2, 128], strides = [1, 1]} : vector<2x384xf32> to vector<2x128xf32>
    %225 = arith.addf %223, %224 : vector<2x128xf32>
    %226 = arith.negf %225 : vector<2x128xf32>
    %227 = math.exp %226 : vector<2x128xf32>
    %cst_94 = arith.constant 1.000000e+00 : f32
    %228 = vector.broadcast %cst_94 : f32 to vector<2x128xf32>
    %229 = arith.addf %228, %227 : vector<2x128xf32>
    %230 = arith.divf %228, %229 : vector<2x128xf32>
    %231 = vector.extract_strided_slice %213 {offsets = [0, 256], sizes = [2, 128], strides = [1, 1]} : vector<2x384xf32> to vector<2x128xf32>
    %232 = vector.extract_strided_slice %214 {offsets = [0, 256], sizes = [2, 128], strides = [1, 1]} : vector<2x384xf32> to vector<2x128xf32>
    %233 = arith.mulf %222, %232 : vector<2x128xf32>
    %234 = arith.addf %231, %233 : vector<2x128xf32>
    %235 = math.tanh %234 : vector<2x128xf32>
    %cst_95 = arith.constant 1.000000e+00 : f32
    %236 = vector.broadcast %cst_95 : f32 to vector<2x128xf32>
    %237 = arith.subf %236, %230 : vector<2x128xf32>
    %238 = arith.mulf %237, %235 : vector<2x128xf32>
    %239 = arith.mulf %230, %195 : vector<2x128xf32>
    %240 = arith.addf %238, %239 : vector<2x128xf32>
    %241 = vector.extract_strided_slice %240 {offsets = [0, 0], sizes = [2, 32], strides = [1, 1]} : vector<2x128xf32> to vector<2x32xf32>
    %242 = arith.index_cast %c3_i32 : i32 to index
    %c0_96 = arith.constant 0 : index
    %c0_97 = arith.constant 0 : index
    %243 = vector.load %arg17[%242, %c0_96, %c0_97] : memref<8x2x64xf32, #tpu.memory_space<vmem>>, vector<1x2x32xf32>
    %244 = vector.shape_cast %243 : vector<1x2x32xf32> to vector<2x32xf32>
    %245 = vector.shape_cast %241 : vector<2x32xf32> to vector<1x2x32xf32>
    tpu.vector_store %arg17[%242, %c0_96, %c0_97], %245 {strides = array<i32>} : memref<8x2x64xf32, #tpu.memory_space<vmem>>, vector<1x2x32xf32>,
    %246 = vector.extract_strided_slice %240 {offsets = [0, 32], sizes = [2, 32], strides = [1, 1]} : vector<2x128xf32> to vector<2x32xf32>
    %247 = arith.index_cast %206 : i32 to index
    %c0_98 = arith.constant 0 : index
    %c32_99 = arith.constant 32 : index
    %248 = vector.load %arg17[%247, %c0_98, %c32_99] : memref<8x2x64xf32, #tpu.memory_space<vmem>>, vector<1x2x32xf32>
    %249 = vector.shape_cast %248 : vector<1x2x32xf32> to vector<2x32xf32>
    %250 = vector.shape_cast %246 : vector<2x32xf32> to vector<1x2x32xf32>
    tpu.vector_store %arg17[%247, %c0_98, %c32_99], %250 {strides = array<i32>} : memref<8x2x64xf32, #tpu.memory_space<vmem>>, vector<1x2x32xf32>,
    %c4_i32 = arith.constant 4 : i32
    %c7_i32_100 = arith.constant 7 : i32
    %251 = arith.subi %c7_i32_100, %c4_i32 : i32
    %252 = arith.index_cast %c4_i32 : i32 to index
    %c0_101 = arith.constant 0 : index
    %c0_102 = arith.constant 0 : index
    %253 = vector.load %arg15[%252, %c0_101, %c0_102] : memref<8x2x384xf32, #tpu.memory_space<vmem>>, vector<1x2x384xf32>
    %254 = vector.shape_cast %253 : vector<1x2x384xf32> to vector<2x384xf32>
    %255 = arith.index_cast %251 : i32 to index
    %c0_103 = arith.constant 0 : index
    %c0_104 = arith.constant 0 : index
    %256 = vector.load %arg16[%255, %c0_103, %c0_104] : memref<8x2x384xf32, #tpu.memory_space<vmem>>, vector<1x2x384xf32>
    %257 = vector.shape_cast %256 : vector<1x2x384xf32> to vector<2x384xf32>
    %258 = arith.addf %254, %257 : vector<2x384xf32>
    %cst_105 = arith.constant dense<0.000000e+00> : vector<2x384xf32>
    %259 = tpu.matmul %240, %69, %cst_105 {dimension_numbers = #tpu.dot_dimension_numbers<[1], [0], [0], [1], [0, 0, 1, 1], [], []>} : vector<2x128xf32>, vector<128x384xf32>, vector<2x384xf32> -> vector<2x384xf32>
    %260 = vector.extract_strided_slice %258 {offsets = [0, 0], sizes = [2, 128], strides = [1, 1]} : vector<2x384xf32> to vector<2x128xf32>
    %261 = vector.extract_strided_slice %259 {offsets = [0, 0], sizes = [2, 128], strides = [1, 1]} : vector<2x384xf32> to vector<2x128xf32>
    %262 = arith.addf %260, %261 : vector<2x128xf32>
    %263 = arith.negf %262 : vector<2x128xf32>
    %264 = math.exp %263 : vector<2x128xf32>
    %cst_106 = arith.constant 1.000000e+00 : f32
    %265 = vector.broadcast %cst_106 : f32 to vector<2x128xf32>
    %266 = arith.addf %265, %264 : vector<2x128xf32>
    %267 = arith.divf %265, %266 : vector<2x128xf32>
    %268 = vector.extract_strided_slice %258 {offsets = [0, 128], sizes = [2, 128], strides = [1, 1]} : vector<2x384xf32> to vector<2x128xf32>
    %269 = vector.extract_strided_slice %259 {offsets = [0, 128], sizes = [2, 128], strides = [1, 1]} : vector<2x384xf32> to vector<2x128xf32>
    %270 = arith.addf %268, %269 : vector<2x128xf32>
    %271 = arith.negf %270 : vector<2x128xf32>
    %272 = math.exp %271 : vector<2x128xf32>
    %cst_107 = arith.constant 1.000000e+00 : f32
    %273 = vector.broadcast %cst_107 : f32 to vector<2x128xf32>
    %274 = arith.addf %273, %272 : vector<2x128xf32>
    %275 = arith.divf %273, %274 : vector<2x128xf32>
    %276 = vector.extract_strided_slice %258 {offsets = [0, 256], sizes = [2, 128], strides = [1, 1]} : vector<2x384xf32> to vector<2x128xf32>
    %277 = vector.extract_strided_slice %259 {offsets = [0, 256], sizes = [2, 128], strides = [1, 1]} : vector<2x384xf32> to vector<2x128xf32>
    %278 = arith.mulf %267, %277 : vector<2x128xf32>
    %279 = arith.addf %276, %278 : vector<2x128xf32>
    %280 = math.tanh %279 : vector<2x128xf32>
    %cst_108 = arith.constant 1.000000e+00 : f32
    %281 = vector.broadcast %cst_108 : f32 to vector<2x128xf32>
    %282 = arith.subf %281, %275 : vector<2x128xf32>
    %283 = arith.mulf %282, %280 : vector<2x128xf32>
    %284 = arith.mulf %275, %240 : vector<2x128xf32>
    %285 = arith.addf %283, %284 : vector<2x128xf32>
    %286 = vector.extract_strided_slice %285 {offsets = [0, 0], sizes = [2, 32], strides = [1, 1]} : vector<2x128xf32> to vector<2x32xf32>
    %287 = arith.index_cast %c4_i32 : i32 to index
    %c0_109 = arith.constant 0 : index
    %c0_110 = arith.constant 0 : index
    %288 = vector.load %arg17[%287, %c0_109, %c0_110] : memref<8x2x64xf32, #tpu.memory_space<vmem>>, vector<1x2x32xf32>
    %289 = vector.shape_cast %288 : vector<1x2x32xf32> to vector<2x32xf32>
    %290 = vector.shape_cast %286 : vector<2x32xf32> to vector<1x2x32xf32>
    tpu.vector_store %arg17[%287, %c0_109, %c0_110], %290 {strides = array<i32>} : memref<8x2x64xf32, #tpu.memory_space<vmem>>, vector<1x2x32xf32>,
    %291 = vector.extract_strided_slice %285 {offsets = [0, 32], sizes = [2, 32], strides = [1, 1]} : vector<2x128xf32> to vector<2x32xf32>
    %292 = arith.index_cast %251 : i32 to index
    %c0_111 = arith.constant 0 : index
    %c32_112 = arith.constant 32 : index
    %293 = vector.load %arg17[%292, %c0_111, %c32_112] : memref<8x2x64xf32, #tpu.memory_space<vmem>>, vector<1x2x32xf32>
    %294 = vector.shape_cast %293 : vector<1x2x32xf32> to vector<2x32xf32>
    %295 = vector.shape_cast %291 : vector<2x32xf32> to vector<1x2x32xf32>
    tpu.vector_store %arg17[%292, %c0_111, %c32_112], %295 {strides = array<i32>} : memref<8x2x64xf32, #tpu.memory_space<vmem>>, vector<1x2x32xf32>,
    %c5_i32 = arith.constant 5 : i32
    %c7_i32_113 = arith.constant 7 : i32
    %296 = arith.subi %c7_i32_113, %c5_i32 : i32
    %297 = arith.index_cast %c5_i32 : i32 to index
    %c0_114 = arith.constant 0 : index
    %c0_115 = arith.constant 0 : index
    %298 = vector.load %arg15[%297, %c0_114, %c0_115] : memref<8x2x384xf32, #tpu.memory_space<vmem>>, vector<1x2x384xf32>
    %299 = vector.shape_cast %298 : vector<1x2x384xf32> to vector<2x384xf32>
    %300 = arith.index_cast %296 : i32 to index
    %c0_116 = arith.constant 0 : index
    %c0_117 = arith.constant 0 : index
    %301 = vector.load %arg16[%300, %c0_116, %c0_117] : memref<8x2x384xf32, #tpu.memory_space<vmem>>, vector<1x2x384xf32>
    %302 = vector.shape_cast %301 : vector<1x2x384xf32> to vector<2x384xf32>
    %303 = arith.addf %299, %302 : vector<2x384xf32>
    %cst_118 = arith.constant dense<0.000000e+00> : vector<2x384xf32>
    %304 = tpu.matmul %285, %69, %cst_118 {dimension_numbers = #tpu.dot_dimension_numbers<[1], [0], [0], [1], [0, 0, 1, 1], [], []>} : vector<2x128xf32>, vector<128x384xf32>, vector<2x384xf32> -> vector<2x384xf32>
    %305 = vector.extract_strided_slice %303 {offsets = [0, 0], sizes = [2, 128], strides = [1, 1]} : vector<2x384xf32> to vector<2x128xf32>
    %306 = vector.extract_strided_slice %304 {offsets = [0, 0], sizes = [2, 128], strides = [1, 1]} : vector<2x384xf32> to vector<2x128xf32>
    %307 = arith.addf %305, %306 : vector<2x128xf32>
    %308 = arith.negf %307 : vector<2x128xf32>
    %309 = math.exp %308 : vector<2x128xf32>
    %cst_119 = arith.constant 1.000000e+00 : f32
    %310 = vector.broadcast %cst_119 : f32 to vector<2x128xf32>
    %311 = arith.addf %310, %309 : vector<2x128xf32>
    %312 = arith.divf %310, %311 : vector<2x128xf32>
    %313 = vector.extract_strided_slice %303 {offsets = [0, 128], sizes = [2, 128], strides = [1, 1]} : vector<2x384xf32> to vector<2x128xf32>
    %314 = vector.extract_strided_slice %304 {offsets = [0, 128], sizes = [2, 128], strides = [1, 1]} : vector<2x384xf32> to vector<2x128xf32>
    %315 = arith.addf %313, %314 : vector<2x128xf32>
    %316 = arith.negf %315 : vector<2x128xf32>
    %317 = math.exp %316 : vector<2x128xf32>
    %cst_120 = arith.constant 1.000000e+00 : f32
    %318 = vector.broadcast %cst_120 : f32 to vector<2x128xf32>
    %319 = arith.addf %318, %317 : vector<2x128xf32>
    %320 = arith.divf %318, %319 : vector<2x128xf32>
    %321 = vector.extract_strided_slice %303 {offsets = [0, 256], sizes = [2, 128], strides = [1, 1]} : vector<2x384xf32> to vector<2x128xf32>
    %322 = vector.extract_strided_slice %304 {offsets = [0, 256], sizes = [2, 128], strides = [1, 1]} : vector<2x384xf32> to vector<2x128xf32>
    %323 = arith.mulf %312, %322 : vector<2x128xf32>
    %324 = arith.addf %321, %323 : vector<2x128xf32>
    %325 = math.tanh %324 : vector<2x128xf32>
    %cst_121 = arith.constant 1.000000e+00 : f32
    %326 = vector.broadcast %cst_121 : f32 to vector<2x128xf32>
    %327 = arith.subf %326, %320 : vector<2x128xf32>
    %328 = arith.mulf %327, %325 : vector<2x128xf32>
    %329 = arith.mulf %320, %285 : vector<2x128xf32>
    %330 = arith.addf %328, %329 : vector<2x128xf32>
    %331 = vector.extract_strided_slice %330 {offsets = [0, 0], sizes = [2, 32], strides = [1, 1]} : vector<2x128xf32> to vector<2x32xf32>
    %332 = arith.index_cast %c5_i32 : i32 to index
    %c0_122 = arith.constant 0 : index
    %c0_123 = arith.constant 0 : index
    %333 = vector.load %arg17[%332, %c0_122, %c0_123] : memref<8x2x64xf32, #tpu.memory_space<vmem>>, vector<1x2x32xf32>
    %334 = vector.shape_cast %333 : vector<1x2x32xf32> to vector<2x32xf32>
    %335 = vector.shape_cast %331 : vector<2x32xf32> to vector<1x2x32xf32>
    tpu.vector_store %arg17[%332, %c0_122, %c0_123], %335 {strides = array<i32>} : memref<8x2x64xf32, #tpu.memory_space<vmem>>, vector<1x2x32xf32>,
    %336 = vector.extract_strided_slice %330 {offsets = [0, 32], sizes = [2, 32], strides = [1, 1]} : vector<2x128xf32> to vector<2x32xf32>
    %337 = arith.index_cast %296 : i32 to index
    %c0_124 = arith.constant 0 : index
    %c32_125 = arith.constant 32 : index
    %338 = vector.load %arg17[%337, %c0_124, %c32_125] : memref<8x2x64xf32, #tpu.memory_space<vmem>>, vector<1x2x32xf32>
    %339 = vector.shape_cast %338 : vector<1x2x32xf32> to vector<2x32xf32>
    %340 = vector.shape_cast %336 : vector<2x32xf32> to vector<1x2x32xf32>
    tpu.vector_store %arg17[%337, %c0_124, %c32_125], %340 {strides = array<i32>} : memref<8x2x64xf32, #tpu.memory_space<vmem>>, vector<1x2x32xf32>,
    %c6_i32 = arith.constant 6 : i32
    %c7_i32_126 = arith.constant 7 : i32
    %341 = arith.subi %c7_i32_126, %c6_i32 : i32
    %342 = arith.index_cast %c6_i32 : i32 to index
    %c0_127 = arith.constant 0 : index
    %c0_128 = arith.constant 0 : index
    %343 = vector.load %arg15[%342, %c0_127, %c0_128] : memref<8x2x384xf32, #tpu.memory_space<vmem>>, vector<1x2x384xf32>
    %344 = vector.shape_cast %343 : vector<1x2x384xf32> to vector<2x384xf32>
    %345 = arith.index_cast %341 : i32 to index
    %c0_129 = arith.constant 0 : index
    %c0_130 = arith.constant 0 : index
    %346 = vector.load %arg16[%345, %c0_129, %c0_130] : memref<8x2x384xf32, #tpu.memory_space<vmem>>, vector<1x2x384xf32>
    %347 = vector.shape_cast %346 : vector<1x2x384xf32> to vector<2x384xf32>
    %348 = arith.addf %344, %347 : vector<2x384xf32>
    %cst_131 = arith.constant dense<0.000000e+00> : vector<2x384xf32>
    %349 = tpu.matmul %330, %69, %cst_131 {dimension_numbers = #tpu.dot_dimension_numbers<[1], [0], [0], [1], [0, 0, 1, 1], [], []>} : vector<2x128xf32>, vector<128x384xf32>, vector<2x384xf32> -> vector<2x384xf32>
    %350 = vector.extract_strided_slice %348 {offsets = [0, 0], sizes = [2, 128], strides = [1, 1]} : vector<2x384xf32> to vector<2x128xf32>
    %351 = vector.extract_strided_slice %349 {offsets = [0, 0], sizes = [2, 128], strides = [1, 1]} : vector<2x384xf32> to vector<2x128xf32>
    %352 = arith.addf %350, %351 : vector<2x128xf32>
    %353 = arith.negf %352 : vector<2x128xf32>
    %354 = math.exp %353 : vector<2x128xf32>
    %cst_132 = arith.constant 1.000000e+00 : f32
    %355 = vector.broadcast %cst_132 : f32 to vector<2x128xf32>
    %356 = arith.addf %355, %354 : vector<2x128xf32>
    %357 = arith.divf %355, %356 : vector<2x128xf32>
    %358 = vector.extract_strided_slice %348 {offsets = [0, 128], sizes = [2, 128], strides = [1, 1]} : vector<2x384xf32> to vector<2x128xf32>
    %359 = vector.extract_strided_slice %349 {offsets = [0, 128], sizes = [2, 128], strides = [1, 1]} : vector<2x384xf32> to vector<2x128xf32>
    %360 = arith.addf %358, %359 : vector<2x128xf32>
    %361 = arith.negf %360 : vector<2x128xf32>
    %362 = math.exp %361 : vector<2x128xf32>
    %cst_133 = arith.constant 1.000000e+00 : f32
    %363 = vector.broadcast %cst_133 : f32 to vector<2x128xf32>
    %364 = arith.addf %363, %362 : vector<2x128xf32>
    %365 = arith.divf %363, %364 : vector<2x128xf32>
    %366 = vector.extract_strided_slice %348 {offsets = [0, 256], sizes = [2, 128], strides = [1, 1]} : vector<2x384xf32> to vector<2x128xf32>
    %367 = vector.extract_strided_slice %349 {offsets = [0, 256], sizes = [2, 128], strides = [1, 1]} : vector<2x384xf32> to vector<2x128xf32>
    %368 = arith.mulf %357, %367 : vector<2x128xf32>
    %369 = arith.addf %366, %368 : vector<2x128xf32>
    %370 = math.tanh %369 : vector<2x128xf32>
    %cst_134 = arith.constant 1.000000e+00 : f32
    %371 = vector.broadcast %cst_134 : f32 to vector<2x128xf32>
    %372 = arith.subf %371, %365 : vector<2x128xf32>
    %373 = arith.mulf %372, %370 : vector<2x128xf32>
    %374 = arith.mulf %365, %330 : vector<2x128xf32>
    %375 = arith.addf %373, %374 : vector<2x128xf32>
    %376 = vector.extract_strided_slice %375 {offsets = [0, 0], sizes = [2, 32], strides = [1, 1]} : vector<2x128xf32> to vector<2x32xf32>
    %377 = arith.index_cast %c6_i32 : i32 to index
    %c0_135 = arith.constant 0 : index
    %c0_136 = arith.constant 0 : index
    %378 = vector.load %arg17[%377, %c0_135, %c0_136] : memref<8x2x64xf32, #tpu.memory_space<vmem>>, vector<1x2x32xf32>
    %379 = vector.shape_cast %378 : vector<1x2x32xf32> to vector<2x32xf32>
    %380 = vector.shape_cast %376 : vector<2x32xf32> to vector<1x2x32xf32>
    tpu.vector_store %arg17[%377, %c0_135, %c0_136], %380 {strides = array<i32>} : memref<8x2x64xf32, #tpu.memory_space<vmem>>, vector<1x2x32xf32>,
    %381 = vector.extract_strided_slice %375 {offsets = [0, 32], sizes = [2, 32], strides = [1, 1]} : vector<2x128xf32> to vector<2x32xf32>
    %382 = arith.index_cast %341 : i32 to index
    %c0_137 = arith.constant 0 : index
    %c32_138 = arith.constant 32 : index
    %383 = vector.load %arg17[%382, %c0_137, %c32_138] : memref<8x2x64xf32, #tpu.memory_space<vmem>>, vector<1x2x32xf32>
    %384 = vector.shape_cast %383 : vector<1x2x32xf32> to vector<2x32xf32>
    %385 = vector.shape_cast %381 : vector<2x32xf32> to vector<1x2x32xf32>
    tpu.vector_store %arg17[%382, %c0_137, %c32_138], %385 {strides = array<i32>} : memref<8x2x64xf32, #tpu.memory_space<vmem>>, vector<1x2x32xf32>,
    %c7_i32_139 = arith.constant 7 : i32
    %c7_i32_140 = arith.constant 7 : i32
    %386 = arith.subi %c7_i32_140, %c7_i32_139 : i32
    %387 = arith.index_cast %c7_i32_139 : i32 to index
    %c0_141 = arith.constant 0 : index
    %c0_142 = arith.constant 0 : index
    %388 = vector.load %arg15[%387, %c0_141, %c0_142] : memref<8x2x384xf32, #tpu.memory_space<vmem>>, vector<1x2x384xf32>
    %389 = vector.shape_cast %388 : vector<1x2x384xf32> to vector<2x384xf32>
    %390 = arith.index_cast %386 : i32 to index
    %c0_143 = arith.constant 0 : index
    %c0_144 = arith.constant 0 : index
    %391 = vector.load %arg16[%390, %c0_143, %c0_144] : memref<8x2x384xf32, #tpu.memory_space<vmem>>, vector<1x2x384xf32>
    %392 = vector.shape_cast %391 : vector<1x2x384xf32> to vector<2x384xf32>
    %393 = arith.addf %389, %392 : vector<2x384xf32>
    %cst_145 = arith.constant dense<0.000000e+00> : vector<2x384xf32>
    %394 = tpu.matmul %375, %69, %cst_145 {dimension_numbers = #tpu.dot_dimension_numbers<[1], [0], [0], [1], [0, 0, 1, 1], [], []>} : vector<2x128xf32>, vector<128x384xf32>, vector<2x384xf32> -> vector<2x384xf32>
    %395 = vector.extract_strided_slice %393 {offsets = [0, 0], sizes = [2, 128], strides = [1, 1]} : vector<2x384xf32> to vector<2x128xf32>
    %396 = vector.extract_strided_slice %394 {offsets = [0, 0], sizes = [2, 128], strides = [1, 1]} : vector<2x384xf32> to vector<2x128xf32>
    %397 = arith.addf %395, %396 : vector<2x128xf32>
    %398 = arith.negf %397 : vector<2x128xf32>
    %399 = math.exp %398 : vector<2x128xf32>
    %cst_146 = arith.constant 1.000000e+00 : f32
    %400 = vector.broadcast %cst_146 : f32 to vector<2x128xf32>
    %401 = arith.addf %400, %399 : vector<2x128xf32>
    %402 = arith.divf %400, %401 : vector<2x128xf32>
    %403 = vector.extract_strided_slice %393 {offsets = [0, 128], sizes = [2, 128], strides = [1, 1]} : vector<2x384xf32> to vector<2x128xf32>
    %404 = vector.extract_strided_slice %394 {offsets = [0, 128], sizes = [2, 128], strides = [1, 1]} : vector<2x384xf32> to vector<2x128xf32>
    %405 = arith.addf %403, %404 : vector<2x128xf32>
    %406 = arith.negf %405 : vector<2x128xf32>
    %407 = math.exp %406 : vector<2x128xf32>
    %cst_147 = arith.constant 1.000000e+00 : f32
    %408 = vector.broadcast %cst_147 : f32 to vector<2x128xf32>
    %409 = arith.addf %408, %407 : vector<2x128xf32>
    %410 = arith.divf %408, %409 : vector<2x128xf32>
    %411 = vector.extract_strided_slice %393 {offsets = [0, 256], sizes = [2, 128], strides = [1, 1]} : vector<2x384xf32> to vector<2x128xf32>
    %412 = vector.extract_strided_slice %394 {offsets = [0, 256], sizes = [2, 128], strides = [1, 1]} : vector<2x384xf32> to vector<2x128xf32>
    %413 = arith.mulf %402, %412 : vector<2x128xf32>
    %414 = arith.addf %411, %413 : vector<2x128xf32>
    %415 = math.tanh %414 : vector<2x128xf32>
    %cst_148 = arith.constant 1.000000e+00 : f32
    %416 = vector.broadcast %cst_148 : f32 to vector<2x128xf32>
    %417 = arith.subf %416, %410 : vector<2x128xf32>
    %418 = arith.mulf %417, %415 : vector<2x128xf32>
    %419 = arith.mulf %410, %375 : vector<2x128xf32>
    %420 = arith.addf %418, %419 : vector<2x128xf32>
    %421 = vector.extract_strided_slice %420 {offsets = [0, 0], sizes = [2, 32], strides = [1, 1]} : vector<2x128xf32> to vector<2x32xf32>
    %422 = arith.index_cast %c7_i32_139 : i32 to index
    %c0_149 = arith.constant 0 : index
    %c0_150 = arith.constant 0 : index
    %423 = vector.load %arg17[%422, %c0_149, %c0_150] : memref<8x2x64xf32, #tpu.memory_space<vmem>>, vector<1x2x32xf32>
    %424 = vector.shape_cast %423 : vector<1x2x32xf32> to vector<2x32xf32>
    %425 = vector.shape_cast %421 : vector<2x32xf32> to vector<1x2x32xf32>
    tpu.vector_store %arg17[%422, %c0_149, %c0_150], %425 {strides = array<i32>} : memref<8x2x64xf32, #tpu.memory_space<vmem>>, vector<1x2x32xf32>,
    %426 = vector.extract_strided_slice %420 {offsets = [0, 32], sizes = [2, 32], strides = [1, 1]} : vector<2x128xf32> to vector<2x32xf32>
    %427 = arith.index_cast %386 : i32 to index
    %c0_151 = arith.constant 0 : index
    %c32_152 = arith.constant 32 : index
    %428 = vector.load %arg17[%427, %c0_151, %c32_152] : memref<8x2x64xf32, #tpu.memory_space<vmem>>, vector<1x2x32xf32>
    %429 = vector.shape_cast %428 : vector<1x2x32xf32> to vector<2x32xf32>
    %430 = vector.shape_cast %426 : vector<2x32xf32> to vector<1x2x32xf32>
    tpu.vector_store %arg17[%427, %c0_151, %c32_152], %430 {strides = array<i32>} : memref<8x2x64xf32, #tpu.memory_space<vmem>>, vector<1x2x32xf32>,
    %c8_i32 = arith.constant 8 : i32
    %c0_153 = arith.constant 0 : index
    %c0_154 = arith.constant 0 : index
    %c0_155 = arith.constant 0 : index
    %431 = vector.load %arg17[%c0_153, %c0_154, %c0_155] : memref<8x2x64xf32, #tpu.memory_space<vmem>>, vector<1x2x64xf32>
    %432 = vector.shape_cast %431 : vector<1x2x64xf32> to vector<2x64xf32>
    %c1_156 = arith.constant 1 : index
    %c0_157 = arith.constant 0 : index
    %c0_158 = arith.constant 0 : index
    %433 = vector.load %arg17[%c1_156, %c0_157, %c0_158] : memref<8x2x64xf32, #tpu.memory_space<vmem>>, vector<1x2x64xf32>
    %434 = vector.shape_cast %433 : vector<1x2x64xf32> to vector<2x64xf32>
    %c2_159 = arith.constant 2 : index
    %c0_160 = arith.constant 0 : index
    %c0_161 = arith.constant 0 : index
    %435 = vector.load %arg17[%c2_159, %c0_160, %c0_161] : memref<8x2x64xf32, #tpu.memory_space<vmem>>, vector<1x2x64xf32>
    %436 = vector.shape_cast %435 : vector<1x2x64xf32> to vector<2x64xf32>
    %c3_162 = arith.constant 3 : index
    %c0_163 = arith.constant 0 : index
    %c0_164 = arith.constant 0 : index
    %437 = vector.load %arg17[%c3_162, %c0_163, %c0_164] : memref<8x2x64xf32, #tpu.memory_space<vmem>>, vector<1x2x64xf32>
    %438 = vector.shape_cast %437 : vector<1x2x64xf32> to vector<2x64xf32>
    %c4_165 = arith.constant 4 : index
    %c0_166 = arith.constant 0 : index
    %c0_167 = arith.constant 0 : index
    %439 = vector.load %arg17[%c4_165, %c0_166, %c0_167] : memref<8x2x64xf32, #tpu.memory_space<vmem>>, vector<1x2x64xf32>
    %440 = vector.shape_cast %439 : vector<1x2x64xf32> to vector<2x64xf32>
    %c5_168 = arith.constant 5 : index
    %c0_169 = arith.constant 0 : index
    %c0_170 = arith.constant 0 : index
    %441 = vector.load %arg17[%c5_168, %c0_169, %c0_170] : memref<8x2x64xf32, #tpu.memory_space<vmem>>, vector<1x2x64xf32>
    %442 = vector.shape_cast %441 : vector<1x2x64xf32> to vector<2x64xf32>
    %c6_171 = arith.constant 6 : index
    %c0_172 = arith.constant 0 : index
    %c0_173 = arith.constant 0 : index
    %443 = vector.load %arg17[%c6_171, %c0_172, %c0_173] : memref<8x2x64xf32, #tpu.memory_space<vmem>>, vector<1x2x64xf32>
    %444 = vector.shape_cast %443 : vector<1x2x64xf32> to vector<2x64xf32>
    %c7_174 = arith.constant 7 : index
    %c0_175 = arith.constant 0 : index
    %c0_176 = arith.constant 0 : index
    %445 = vector.load %arg17[%c7_174, %c0_175, %c0_176] : memref<8x2x64xf32, #tpu.memory_space<vmem>>, vector<1x2x64xf32>
    %446 = vector.shape_cast %445 : vector<1x2x64xf32> to vector<2x64xf32>
    %447 = tpu.concatenate %432, %434, %436, %438, %440, %442, %444, %446 in 0 : vector<2x64xf32>, vector<2x64xf32>, vector<2x64xf32>, vector<2x64xf32>, vector<2x64xf32>, vector<2x64xf32>, vector<2x64xf32>, vector<2x64xf32> -> vector<16x64xf32>
    %c0_177 = arith.constant 0 : index
    %c0_178 = arith.constant 0 : index
    %448 = vector.load %arg4[%c0_177, %c0_178] : memref<64x384xf32, #tpu.memory_space<vmem>>, vector<64x384xf32>
    %cst_179 = arith.constant dense<0.000000e+00> : vector<16x384xf32>
    %449 = tpu.matmul %447, %448, %cst_179 {dimension_numbers = #tpu.dot_dimension_numbers<[1], [0], [0], [1], [0, 0, 1, 1], [], []>} : vector<16x64xf32>, vector<64x384xf32>, vector<16x384xf32> -> vector<16x384xf32>
    %c0_180 = arith.constant 0 : index
    %c0_181 = arith.constant 0 : index
    %450 = vector.load %arg5[%c0_180, %c0_181] : memref<64x384xf32, #tpu.memory_space<vmem>>, vector<64x384xf32>
    %cst_182 = arith.constant dense<0.000000e+00> : vector<16x384xf32>
    %451 = tpu.matmul %447, %450, %cst_182 {dimension_numbers = #tpu.dot_dimension_numbers<[1], [0], [0], [1], [0, 0, 1, 1], [], []>} : vector<16x64xf32>, vector<64x384xf32>, vector<16x384xf32> -> vector<16x384xf32>
    %452 = vector.extract_strided_slice %449 {offsets = [0, 0], sizes = [2, 384], strides = [1, 1]} : vector<16x384xf32> to vector<2x384xf32>
    %c0_183 = arith.constant 0 : index
    %c0_184 = arith.constant 0 : index
    %c0_185 = arith.constant 0 : index
    %453 = vector.load %arg15[%c0_183, %c0_184, %c0_185] : memref<8x2x384xf32, #tpu.memory_space<vmem>>, vector<1x2x384xf32>
    %454 = vector.shape_cast %453 : vector<1x2x384xf32> to vector<2x384xf32>
    %455 = vector.shape_cast %452 : vector<2x384xf32> to vector<1x2x384xf32>
    tpu.vector_store %arg15[%c0_183, %c0_184, %c0_185], %455 {strides = array<i32>} : memref<8x2x384xf32, #tpu.memory_space<vmem>>, vector<1x2x384xf32>,
    %456 = vector.extract_strided_slice %451 {offsets = [0, 0], sizes = [2, 384], strides = [1, 1]} : vector<16x384xf32> to vector<2x384xf32>
    %c0_186 = arith.constant 0 : index
    %c0_187 = arith.constant 0 : index
    %c0_188 = arith.constant 0 : index
    %457 = vector.load %arg16[%c0_186, %c0_187, %c0_188] : memref<8x2x384xf32, #tpu.memory_space<vmem>>, vector<1x2x384xf32>
    %458 = vector.shape_cast %457 : vector<1x2x384xf32> to vector<2x384xf32>
    %459 = vector.shape_cast %456 : vector<2x384xf32> to vector<1x2x384xf32>
    tpu.vector_store %arg16[%c0_186, %c0_187, %c0_188], %459 {strides = array<i32>} : memref<8x2x384xf32, #tpu.memory_space<vmem>>, vector<1x2x384xf32>,
    %460 = vector.extract_strided_slice %449 {offsets = [2, 0], sizes = [2, 384], strides = [1, 1]} : vector<16x384xf32> to vector<2x384xf32>
    %c1_189 = arith.constant 1 : index
    %c0_190 = arith.constant 0 : index
    %c0_191 = arith.constant 0 : index
    %461 = vector.load %arg15[%c1_189, %c0_190, %c0_191] : memref<8x2x384xf32, #tpu.memory_space<vmem>>, vector<1x2x384xf32>
    %462 = vector.shape_cast %461 : vector<1x2x384xf32> to vector<2x384xf32>
    %463 = vector.shape_cast %460 : vector<2x384xf32> to vector<1x2x384xf32>
    tpu.vector_store %arg15[%c1_189, %c0_190, %c0_191], %463 {strides = array<i32>} : memref<8x2x384xf32, #tpu.memory_space<vmem>>, vector<1x2x384xf32>,
    %464 = vector.extract_strided_slice %451 {offsets = [2, 0], sizes = [2, 384], strides = [1, 1]} : vector<16x384xf32> to vector<2x384xf32>
    %c1_192 = arith.constant 1 : index
    %c0_193 = arith.constant 0 : index
    %c0_194 = arith.constant 0 : index
    %465 = vector.load %arg16[%c1_192, %c0_193, %c0_194] : memref<8x2x384xf32, #tpu.memory_space<vmem>>, vector<1x2x384xf32>
    %466 = vector.shape_cast %465 : vector<1x2x384xf32> to vector<2x384xf32>
    %467 = vector.shape_cast %464 : vector<2x384xf32> to vector<1x2x384xf32>
    tpu.vector_store %arg16[%c1_192, %c0_193, %c0_194], %467 {strides = array<i32>} : memref<8x2x384xf32, #tpu.memory_space<vmem>>, vector<1x2x384xf32>,
    %468 = vector.extract_strided_slice %449 {offsets = [4, 0], sizes = [2, 384], strides = [1, 1]} : vector<16x384xf32> to vector<2x384xf32>
    %c2_195 = arith.constant 2 : index
    %c0_196 = arith.constant 0 : index
    %c0_197 = arith.constant 0 : index
    %469 = vector.load %arg15[%c2_195, %c0_196, %c0_197] : memref<8x2x384xf32, #tpu.memory_space<vmem>>, vector<1x2x384xf32>
    %470 = vector.shape_cast %469 : vector<1x2x384xf32> to vector<2x384xf32>
    %471 = vector.shape_cast %468 : vector<2x384xf32> to vector<1x2x384xf32>
    tpu.vector_store %arg15[%c2_195, %c0_196, %c0_197], %471 {strides = array<i32>} : memref<8x2x384xf32, #tpu.memory_space<vmem>>, vector<1x2x384xf32>,
    %472 = vector.extract_strided_slice %451 {offsets = [4, 0], sizes = [2, 384], strides = [1, 1]} : vector<16x384xf32> to vector<2x384xf32>
    %c2_198 = arith.constant 2 : index
    %c0_199 = arith.constant 0 : index
    %c0_200 = arith.constant 0 : index
    %473 = vector.load %arg16[%c2_198, %c0_199, %c0_200] : memref<8x2x384xf32, #tpu.memory_space<vmem>>, vector<1x2x384xf32>
    %474 = vector.shape_cast %473 : vector<1x2x384xf32> to vector<2x384xf32>
    %475 = vector.shape_cast %472 : vector<2x384xf32> to vector<1x2x384xf32>
    tpu.vector_store %arg16[%c2_198, %c0_199, %c0_200], %475 {strides = array<i32>} : memref<8x2x384xf32, #tpu.memory_space<vmem>>, vector<1x2x384xf32>,
    %476 = vector.extract_strided_slice %449 {offsets = [6, 0], sizes = [2, 384], strides = [1, 1]} : vector<16x384xf32> to vector<2x384xf32>
    %c3_201 = arith.constant 3 : index
    %c0_202 = arith.constant 0 : index
    %c0_203 = arith.constant 0 : index
    %477 = vector.load %arg15[%c3_201, %c0_202, %c0_203] : memref<8x2x384xf32, #tpu.memory_space<vmem>>, vector<1x2x384xf32>
    %478 = vector.shape_cast %477 : vector<1x2x384xf32> to vector<2x384xf32>
    %479 = vector.shape_cast %476 : vector<2x384xf32> to vector<1x2x384xf32>
    tpu.vector_store %arg15[%c3_201, %c0_202, %c0_203], %479 {strides = array<i32>} : memref<8x2x384xf32, #tpu.memory_space<vmem>>, vector<1x2x384xf32>,
    %480 = vector.extract_strided_slice %451 {offsets = [6, 0], sizes = [2, 384], strides = [1, 1]} : vector<16x384xf32> to vector<2x384xf32>
    %c3_204 = arith.constant 3 : index
    %c0_205 = arith.constant 0 : index
    %c0_206 = arith.constant 0 : index
    %481 = vector.load %arg16[%c3_204, %c0_205, %c0_206] : memref<8x2x384xf32, #tpu.memory_space<vmem>>, vector<1x2x384xf32>
    %482 = vector.shape_cast %481 : vector<1x2x384xf32> to vector<2x384xf32>
    %483 = vector.shape_cast %480 : vector<2x384xf32> to vector<1x2x384xf32>
    tpu.vector_store %arg16[%c3_204, %c0_205, %c0_206], %483 {strides = array<i32>} : memref<8x2x384xf32, #tpu.memory_space<vmem>>, vector<1x2x384xf32>,
    %484 = vector.extract_strided_slice %449 {offsets = [8, 0], sizes = [2, 384], strides = [1, 1]} : vector<16x384xf32> to vector<2x384xf32>
    %c4_207 = arith.constant 4 : index
    %c0_208 = arith.constant 0 : index
    %c0_209 = arith.constant 0 : index
    %485 = vector.load %arg15[%c4_207, %c0_208, %c0_209] : memref<8x2x384xf32, #tpu.memory_space<vmem>>, vector<1x2x384xf32>
    %486 = vector.shape_cast %485 : vector<1x2x384xf32> to vector<2x384xf32>
    %487 = vector.shape_cast %484 : vector<2x384xf32> to vector<1x2x384xf32>
    tpu.vector_store %arg15[%c4_207, %c0_208, %c0_209], %487 {strides = array<i32>} : memref<8x2x384xf32, #tpu.memory_space<vmem>>, vector<1x2x384xf32>,
    %488 = vector.extract_strided_slice %451 {offsets = [8, 0], sizes = [2, 384], strides = [1, 1]} : vector<16x384xf32> to vector<2x384xf32>
    %c4_210 = arith.constant 4 : index
    %c0_211 = arith.constant 0 : index
    %c0_212 = arith.constant 0 : index
    %489 = vector.load %arg16[%c4_210, %c0_211, %c0_212] : memref<8x2x384xf32, #tpu.memory_space<vmem>>, vector<1x2x384xf32>
    %490 = vector.shape_cast %489 : vector<1x2x384xf32> to vector<2x384xf32>
    %491 = vector.shape_cast %488 : vector<2x384xf32> to vector<1x2x384xf32>
    tpu.vector_store %arg16[%c4_210, %c0_211, %c0_212], %491 {strides = array<i32>} : memref<8x2x384xf32, #tpu.memory_space<vmem>>, vector<1x2x384xf32>,
    %492 = vector.extract_strided_slice %449 {offsets = [10, 0], sizes = [2, 384], strides = [1, 1]} : vector<16x384xf32> to vector<2x384xf32>
    %c5_213 = arith.constant 5 : index
    %c0_214 = arith.constant 0 : index
    %c0_215 = arith.constant 0 : index
    %493 = vector.load %arg15[%c5_213, %c0_214, %c0_215] : memref<8x2x384xf32, #tpu.memory_space<vmem>>, vector<1x2x384xf32>
    %494 = vector.shape_cast %493 : vector<1x2x384xf32> to vector<2x384xf32>
    %495 = vector.shape_cast %492 : vector<2x384xf32> to vector<1x2x384xf32>
    tpu.vector_store %arg15[%c5_213, %c0_214, %c0_215], %495 {strides = array<i32>} : memref<8x2x384xf32, #tpu.memory_space<vmem>>, vector<1x2x384xf32>,
    %496 = vector.extract_strided_slice %451 {offsets = [10, 0], sizes = [2, 384], strides = [1, 1]} : vector<16x384xf32> to vector<2x384xf32>
    %c5_216 = arith.constant 5 : index
    %c0_217 = arith.constant 0 : index
    %c0_218 = arith.constant 0 : index
    %497 = vector.load %arg16[%c5_216, %c0_217, %c0_218] : memref<8x2x384xf32, #tpu.memory_space<vmem>>, vector<1x2x384xf32>
    %498 = vector.shape_cast %497 : vector<1x2x384xf32> to vector<2x384xf32>
    %499 = vector.shape_cast %496 : vector<2x384xf32> to vector<1x2x384xf32>
    tpu.vector_store %arg16[%c5_216, %c0_217, %c0_218], %499 {strides = array<i32>} : memref<8x2x384xf32, #tpu.memory_space<vmem>>, vector<1x2x384xf32>,
    %500 = vector.extract_strided_slice %449 {offsets = [12, 0], sizes = [2, 384], strides = [1, 1]} : vector<16x384xf32> to vector<2x384xf32>
    %c6_219 = arith.constant 6 : index
    %c0_220 = arith.constant 0 : index
    %c0_221 = arith.constant 0 : index
    %501 = vector.load %arg15[%c6_219, %c0_220, %c0_221] : memref<8x2x384xf32, #tpu.memory_space<vmem>>, vector<1x2x384xf32>
    %502 = vector.shape_cast %501 : vector<1x2x384xf32> to vector<2x384xf32>
    %503 = vector.shape_cast %500 : vector<2x384xf32> to vector<1x2x384xf32>
    tpu.vector_store %arg15[%c6_219, %c0_220, %c0_221], %503 {strides = array<i32>} : memref<8x2x384xf32, #tpu.memory_space<vmem>>, vector<1x2x384xf32>,
    %504 = vector.extract_strided_slice %451 {offsets = [12, 0], sizes = [2, 384], strides = [1, 1]} : vector<16x384xf32> to vector<2x384xf32>
    %c6_222 = arith.constant 6 : index
    %c0_223 = arith.constant 0 : index
    %c0_224 = arith.constant 0 : index
    %505 = vector.load %arg16[%c6_222, %c0_223, %c0_224] : memref<8x2x384xf32, #tpu.memory_space<vmem>>, vector<1x2x384xf32>
    %506 = vector.shape_cast %505 : vector<1x2x384xf32> to vector<2x384xf32>
    %507 = vector.shape_cast %504 : vector<2x384xf32> to vector<1x2x384xf32>
    tpu.vector_store %arg16[%c6_222, %c0_223, %c0_224], %507 {strides = array<i32>} : memref<8x2x384xf32, #tpu.memory_space<vmem>>, vector<1x2x384xf32>,
    %508 = vector.extract_strided_slice %449 {offsets = [14, 0], sizes = [2, 384], strides = [1, 1]} : vector<16x384xf32> to vector<2x384xf32>
    %c7_225 = arith.constant 7 : index
    %c0_226 = arith.constant 0 : index
    %c0_227 = arith.constant 0 : index
    %509 = vector.load %arg15[%c7_225, %c0_226, %c0_227] : memref<8x2x384xf32, #tpu.memory_space<vmem>>, vector<1x2x384xf32>
    %510 = vector.shape_cast %509 : vector<1x2x384xf32> to vector<2x384xf32>
    %511 = vector.shape_cast %508 : vector<2x384xf32> to vector<1x2x384xf32>
    tpu.vector_store %arg15[%c7_225, %c0_226, %c0_227], %511 {strides = array<i32>} : memref<8x2x384xf32, #tpu.memory_space<vmem>>, vector<1x2x384xf32>,
    %512 = vector.extract_strided_slice %451 {offsets = [14, 0], sizes = [2, 384], strides = [1, 1]} : vector<16x384xf32> to vector<2x384xf32>
    %c7_228 = arith.constant 7 : index
    %c0_229 = arith.constant 0 : index
    %c0_230 = arith.constant 0 : index
    %513 = vector.load %arg16[%c7_228, %c0_229, %c0_230] : memref<8x2x384xf32, #tpu.memory_space<vmem>>, vector<1x2x384xf32>
    %514 = vector.shape_cast %513 : vector<1x2x384xf32> to vector<2x384xf32>
    %515 = vector.shape_cast %512 : vector<2x384xf32> to vector<1x2x384xf32>
    tpu.vector_store %arg16[%c7_228, %c0_229, %c0_230], %515 {strides = array<i32>} : memref<8x2x384xf32, #tpu.memory_space<vmem>>, vector<1x2x384xf32>,
    %c0_231 = arith.constant 0 : index
    %c0_232 = arith.constant 0 : index
    %516 = vector.load %arg6[%c0_231, %c0_232] : memref<128x384xf32, #tpu.memory_space<vmem>>, vector<128x384xf32>
    %cst_233 = arith.constant 0.000000e+00 : f32
    %517 = vector.broadcast %cst_233 : f32 to vector<2x128xf32>
    %c0_i32_234 = arith.constant 0 : i32
    %c7_i32_235 = arith.constant 7 : i32
    %518 = arith.subi %c7_i32_235, %c0_i32_234 : i32
    %519 = arith.index_cast %c0_i32_234 : i32 to index
    %c0_236 = arith.constant 0 : index
    %c0_237 = arith.constant 0 : index
    %520 = vector.load %arg15[%519, %c0_236, %c0_237] : memref<8x2x384xf32, #tpu.memory_space<vmem>>, vector<1x2x384xf32>
    %521 = vector.shape_cast %520 : vector<1x2x384xf32> to vector<2x384xf32>
    %522 = arith.index_cast %518 : i32 to index
    %c0_238 = arith.constant 0 : index
    %c0_239 = arith.constant 0 : index
    %523 = vector.load %arg16[%522, %c0_238, %c0_239] : memref<8x2x384xf32, #tpu.memory_space<vmem>>, vector<1x2x384xf32>
    %524 = vector.shape_cast %523 : vector<1x2x384xf32> to vector<2x384xf32>
    %525 = arith.addf %521, %524 : vector<2x384xf32>
    %cst_240 = arith.constant dense<0.000000e+00> : vector<2x384xf32>
    %526 = tpu.matmul %517, %516, %cst_240 {dimension_numbers = #tpu.dot_dimension_numbers<[1], [0], [0], [1], [0, 0, 1, 1], [], []>} : vector<2x128xf32>, vector<128x384xf32>, vector<2x384xf32> -> vector<2x384xf32>
    %527 = vector.extract_strided_slice %525 {offsets = [0, 0], sizes = [2, 128], strides = [1, 1]} : vector<2x384xf32> to vector<2x128xf32>
    %528 = vector.extract_strided_slice %526 {offsets = [0, 0], sizes = [2, 128], strides = [1, 1]} : vector<2x384xf32> to vector<2x128xf32>
    %529 = arith.addf %527, %528 : vector<2x128xf32>
    %530 = arith.negf %529 : vector<2x128xf32>
    %531 = math.exp %530 : vector<2x128xf32>
    %cst_241 = arith.constant 1.000000e+00 : f32
    %532 = vector.broadcast %cst_241 : f32 to vector<2x128xf32>
    %533 = arith.addf %532, %531 : vector<2x128xf32>
    %534 = arith.divf %532, %533 : vector<2x128xf32>
    %535 = vector.extract_strided_slice %525 {offsets = [0, 128], sizes = [2, 128], strides = [1, 1]} : vector<2x384xf32> to vector<2x128xf32>
    %536 = vector.extract_strided_slice %526 {offsets = [0, 128], sizes = [2, 128], strides = [1, 1]} : vector<2x384xf32> to vector<2x128xf32>
    %537 = arith.addf %535, %536 : vector<2x128xf32>
    %538 = arith.negf %537 : vector<2x128xf32>
    %539 = math.exp %538 : vector<2x128xf32>
    %cst_242 = arith.constant 1.000000e+00 : f32
    %540 = vector.broadcast %cst_242 : f32 to vector<2x128xf32>
    %541 = arith.addf %540, %539 : vector<2x128xf32>
    %542 = arith.divf %540, %541 : vector<2x128xf32>
    %543 = vector.extract_strided_slice %525 {offsets = [0, 256], sizes = [2, 128], strides = [1, 1]} : vector<2x384xf32> to vector<2x128xf32>
    %544 = vector.extract_strided_slice %526 {offsets = [0, 256], sizes = [2, 128], strides = [1, 1]} : vector<2x384xf32> to vector<2x128xf32>
    %545 = arith.mulf %534, %544 : vector<2x128xf32>
    %546 = arith.addf %543, %545 : vector<2x128xf32>
    %547 = math.tanh %546 : vector<2x128xf32>
    %cst_243 = arith.constant 1.000000e+00 : f32
    %548 = vector.broadcast %cst_243 : f32 to vector<2x128xf32>
    %549 = arith.subf %548, %542 : vector<2x128xf32>
    %550 = arith.mulf %549, %547 : vector<2x128xf32>
    %551 = arith.mulf %542, %517 : vector<2x128xf32>
    %552 = arith.addf %550, %551 : vector<2x128xf32>
    %553 = vector.extract_strided_slice %552 {offsets = [0, 0], sizes = [2, 32], strides = [1, 1]} : vector<2x128xf32> to vector<2x32xf32>
    %554 = arith.index_cast %c0_i32_234 : i32 to index
    %c0_244 = arith.constant 0 : index
    %c0_245 = arith.constant 0 : index
    %555 = vector.load %arg18[%554, %c0_244, %c0_245] : memref<8x2x64xf32, #tpu.memory_space<vmem>>, vector<1x2x32xf32>
    %556 = vector.shape_cast %555 : vector<1x2x32xf32> to vector<2x32xf32>
    %557 = vector.shape_cast %553 : vector<2x32xf32> to vector<1x2x32xf32>
    tpu.vector_store %arg18[%554, %c0_244, %c0_245], %557 {strides = array<i32>} : memref<8x2x64xf32, #tpu.memory_space<vmem>>, vector<1x2x32xf32>,
    %558 = vector.extract_strided_slice %552 {offsets = [0, 32], sizes = [2, 32], strides = [1, 1]} : vector<2x128xf32> to vector<2x32xf32>
    %559 = arith.index_cast %518 : i32 to index
    %c0_246 = arith.constant 0 : index
    %c32_247 = arith.constant 32 : index
    %560 = vector.load %arg18[%559, %c0_246, %c32_247] : memref<8x2x64xf32, #tpu.memory_space<vmem>>, vector<1x2x32xf32>
    %561 = vector.shape_cast %560 : vector<1x2x32xf32> to vector<2x32xf32>
    %562 = vector.shape_cast %558 : vector<2x32xf32> to vector<1x2x32xf32>
    tpu.vector_store %arg18[%559, %c0_246, %c32_247], %562 {strides = array<i32>} : memref<8x2x64xf32, #tpu.memory_space<vmem>>, vector<1x2x32xf32>,
    %c1_i32_248 = arith.constant 1 : i32
    %c7_i32_249 = arith.constant 7 : i32
    %563 = arith.subi %c7_i32_249, %c1_i32_248 : i32
    %564 = arith.index_cast %c1_i32_248 : i32 to index
    %c0_250 = arith.constant 0 : index
    %c0_251 = arith.constant 0 : index
    %565 = vector.load %arg15[%564, %c0_250, %c0_251] : memref<8x2x384xf32, #tpu.memory_space<vmem>>, vector<1x2x384xf32>
    %566 = vector.shape_cast %565 : vector<1x2x384xf32> to vector<2x384xf32>
    %567 = arith.index_cast %563 : i32 to index
    %c0_252 = arith.constant 0 : index
    %c0_253 = arith.constant 0 : index
    %568 = vector.load %arg16[%567, %c0_252, %c0_253] : memref<8x2x384xf32, #tpu.memory_space<vmem>>, vector<1x2x384xf32>
    %569 = vector.shape_cast %568 : vector<1x2x384xf32> to vector<2x384xf32>
    %570 = arith.addf %566, %569 : vector<2x384xf32>
    %cst_254 = arith.constant dense<0.000000e+00> : vector<2x384xf32>
    %571 = tpu.matmul %552, %516, %cst_254 {dimension_numbers = #tpu.dot_dimension_numbers<[1], [0], [0], [1], [0, 0, 1, 1], [], []>} : vector<2x128xf32>, vector<128x384xf32>, vector<2x384xf32> -> vector<2x384xf32>
    %572 = vector.extract_strided_slice %570 {offsets = [0, 0], sizes = [2, 128], strides = [1, 1]} : vector<2x384xf32> to vector<2x128xf32>
    %573 = vector.extract_strided_slice %571 {offsets = [0, 0], sizes = [2, 128], strides = [1, 1]} : vector<2x384xf32> to vector<2x128xf32>
    %574 = arith.addf %572, %573 : vector<2x128xf32>
    %575 = arith.negf %574 : vector<2x128xf32>
    %576 = math.exp %575 : vector<2x128xf32>
    %cst_255 = arith.constant 1.000000e+00 : f32
    %577 = vector.broadcast %cst_255 : f32 to vector<2x128xf32>
    %578 = arith.addf %577, %576 : vector<2x128xf32>
    %579 = arith.divf %577, %578 : vector<2x128xf32>
    %580 = vector.extract_strided_slice %570 {offsets = [0, 128], sizes = [2, 128], strides = [1, 1]} : vector<2x384xf32> to vector<2x128xf32>
    %581 = vector.extract_strided_slice %571 {offsets = [0, 128], sizes = [2, 128], strides = [1, 1]} : vector<2x384xf32> to vector<2x128xf32>
    %582 = arith.addf %580, %581 : vector<2x128xf32>
    %583 = arith.negf %582 : vector<2x128xf32>
    %584 = math.exp %583 : vector<2x128xf32>
    %cst_256 = arith.constant 1.000000e+00 : f32
    %585 = vector.broadcast %cst_256 : f32 to vector<2x128xf32>
    %586 = arith.addf %585, %584 : vector<2x128xf32>
    %587 = arith.divf %585, %586 : vector<2x128xf32>
    %588 = vector.extract_strided_slice %570 {offsets = [0, 256], sizes = [2, 128], strides = [1, 1]} : vector<2x384xf32> to vector<2x128xf32>
    %589 = vector.extract_strided_slice %571 {offsets = [0, 256], sizes = [2, 128], strides = [1, 1]} : vector<2x384xf32> to vector<2x128xf32>
    %590 = arith.mulf %579, %589 : vector<2x128xf32>
    %591 = arith.addf %588, %590 : vector<2x128xf32>
    %592 = math.tanh %591 : vector<2x128xf32>
    %cst_257 = arith.constant 1.000000e+00 : f32
    %593 = vector.broadcast %cst_257 : f32 to vector<2x128xf32>
    %594 = arith.subf %593, %587 : vector<2x128xf32>
    %595 = arith.mulf %594, %592 : vector<2x128xf32>
    %596 = arith.mulf %587, %552 : vector<2x128xf32>
    %597 = arith.addf %595, %596 : vector<2x128xf32>
    %598 = vector.extract_strided_slice %597 {offsets = [0, 0], sizes = [2, 32], strides = [1, 1]} : vector<2x128xf32> to vector<2x32xf32>
    %599 = arith.index_cast %c1_i32_248 : i32 to index
    %c0_258 = arith.constant 0 : index
    %c0_259 = arith.constant 0 : index
    %600 = vector.load %arg18[%599, %c0_258, %c0_259] : memref<8x2x64xf32, #tpu.memory_space<vmem>>, vector<1x2x32xf32>
    %601 = vector.shape_cast %600 : vector<1x2x32xf32> to vector<2x32xf32>
    %602 = vector.shape_cast %598 : vector<2x32xf32> to vector<1x2x32xf32>
    tpu.vector_store %arg18[%599, %c0_258, %c0_259], %602 {strides = array<i32>} : memref<8x2x64xf32, #tpu.memory_space<vmem>>, vector<1x2x32xf32>,
    %603 = vector.extract_strided_slice %597 {offsets = [0, 32], sizes = [2, 32], strides = [1, 1]} : vector<2x128xf32> to vector<2x32xf32>
    %604 = arith.index_cast %563 : i32 to index
    %c0_260 = arith.constant 0 : index
    %c32_261 = arith.constant 32 : index
    %605 = vector.load %arg18[%604, %c0_260, %c32_261] : memref<8x2x64xf32, #tpu.memory_space<vmem>>, vector<1x2x32xf32>
    %606 = vector.shape_cast %605 : vector<1x2x32xf32> to vector<2x32xf32>
    %607 = vector.shape_cast %603 : vector<2x32xf32> to vector<1x2x32xf32>
    tpu.vector_store %arg18[%604, %c0_260, %c32_261], %607 {strides = array<i32>} : memref<8x2x64xf32, #tpu.memory_space<vmem>>, vector<1x2x32xf32>,
    %c2_i32_262 = arith.constant 2 : i32
    %c7_i32_263 = arith.constant 7 : i32
    %608 = arith.subi %c7_i32_263, %c2_i32_262 : i32
    %609 = arith.index_cast %c2_i32_262 : i32 to index
    %c0_264 = arith.constant 0 : index
    %c0_265 = arith.constant 0 : index
    %610 = vector.load %arg15[%609, %c0_264, %c0_265] : memref<8x2x384xf32, #tpu.memory_space<vmem>>, vector<1x2x384xf32>
    %611 = vector.shape_cast %610 : vector<1x2x384xf32> to vector<2x384xf32>
    %612 = arith.index_cast %608 : i32 to index
    %c0_266 = arith.constant 0 : index
    %c0_267 = arith.constant 0 : index
    %613 = vector.load %arg16[%612, %c0_266, %c0_267] : memref<8x2x384xf32, #tpu.memory_space<vmem>>, vector<1x2x384xf32>
    %614 = vector.shape_cast %613 : vector<1x2x384xf32> to vector<2x384xf32>
    %615 = arith.addf %611, %614 : vector<2x384xf32>
    %cst_268 = arith.constant dense<0.000000e+00> : vector<2x384xf32>
    %616 = tpu.matmul %597, %516, %cst_268 {dimension_numbers = #tpu.dot_dimension_numbers<[1], [0], [0], [1], [0, 0, 1, 1], [], []>} : vector<2x128xf32>, vector<128x384xf32>, vector<2x384xf32> -> vector<2x384xf32>
    %617 = vector.extract_strided_slice %615 {offsets = [0, 0], sizes = [2, 128], strides = [1, 1]} : vector<2x384xf32> to vector<2x128xf32>
    %618 = vector.extract_strided_slice %616 {offsets = [0, 0], sizes = [2, 128], strides = [1, 1]} : vector<2x384xf32> to vector<2x128xf32>
    %619 = arith.addf %617, %618 : vector<2x128xf32>
    %620 = arith.negf %619 : vector<2x128xf32>
    %621 = math.exp %620 : vector<2x128xf32>
    %cst_269 = arith.constant 1.000000e+00 : f32
    %622 = vector.broadcast %cst_269 : f32 to vector<2x128xf32>
    %623 = arith.addf %622, %621 : vector<2x128xf32>
    %624 = arith.divf %622, %623 : vector<2x128xf32>
    %625 = vector.extract_strided_slice %615 {offsets = [0, 128], sizes = [2, 128], strides = [1, 1]} : vector<2x384xf32> to vector<2x128xf32>
    %626 = vector.extract_strided_slice %616 {offsets = [0, 128], sizes = [2, 128], strides = [1, 1]} : vector<2x384xf32> to vector<2x128xf32>
    %627 = arith.addf %625, %626 : vector<2x128xf32>
    %628 = arith.negf %627 : vector<2x128xf32>
    %629 = math.exp %628 : vector<2x128xf32>
    %cst_270 = arith.constant 1.000000e+00 : f32
    %630 = vector.broadcast %cst_270 : f32 to vector<2x128xf32>
    %631 = arith.addf %630, %629 : vector<2x128xf32>
    %632 = arith.divf %630, %631 : vector<2x128xf32>
    %633 = vector.extract_strided_slice %615 {offsets = [0, 256], sizes = [2, 128], strides = [1, 1]} : vector<2x384xf32> to vector<2x128xf32>
    %634 = vector.extract_strided_slice %616 {offsets = [0, 256], sizes = [2, 128], strides = [1, 1]} : vector<2x384xf32> to vector<2x128xf32>
    %635 = arith.mulf %624, %634 : vector<2x128xf32>
    %636 = arith.addf %633, %635 : vector<2x128xf32>
    %637 = math.tanh %636 : vector<2x128xf32>
    %cst_271 = arith.constant 1.000000e+00 : f32
    %638 = vector.broadcast %cst_271 : f32 to vector<2x128xf32>
    %639 = arith.subf %638, %632 : vector<2x128xf32>
    %640 = arith.mulf %639, %637 : vector<2x128xf32>
    %641 = arith.mulf %632, %597 : vector<2x128xf32>
    %642 = arith.addf %640, %641 : vector<2x128xf32>
    %643 = vector.extract_strided_slice %642 {offsets = [0, 0], sizes = [2, 32], strides = [1, 1]} : vector<2x128xf32> to vector<2x32xf32>
    %644 = arith.index_cast %c2_i32_262 : i32 to index
    %c0_272 = arith.constant 0 : index
    %c0_273 = arith.constant 0 : index
    %645 = vector.load %arg18[%644, %c0_272, %c0_273] : memref<8x2x64xf32, #tpu.memory_space<vmem>>, vector<1x2x32xf32>
    %646 = vector.shape_cast %645 : vector<1x2x32xf32> to vector<2x32xf32>
    %647 = vector.shape_cast %643 : vector<2x32xf32> to vector<1x2x32xf32>
    tpu.vector_store %arg18[%644, %c0_272, %c0_273], %647 {strides = array<i32>} : memref<8x2x64xf32, #tpu.memory_space<vmem>>, vector<1x2x32xf32>,
    %648 = vector.extract_strided_slice %642 {offsets = [0, 32], sizes = [2, 32], strides = [1, 1]} : vector<2x128xf32> to vector<2x32xf32>
    %649 = arith.index_cast %608 : i32 to index
    %c0_274 = arith.constant 0 : index
    %c32_275 = arith.constant 32 : index
    %650 = vector.load %arg18[%649, %c0_274, %c32_275] : memref<8x2x64xf32, #tpu.memory_space<vmem>>, vector<1x2x32xf32>
    %651 = vector.shape_cast %650 : vector<1x2x32xf32> to vector<2x32xf32>
    %652 = vector.shape_cast %648 : vector<2x32xf32> to vector<1x2x32xf32>
    tpu.vector_store %arg18[%649, %c0_274, %c32_275], %652 {strides = array<i32>} : memref<8x2x64xf32, #tpu.memory_space<vmem>>, vector<1x2x32xf32>,
    %c3_i32_276 = arith.constant 3 : i32
    %c7_i32_277 = arith.constant 7 : i32
    %653 = arith.subi %c7_i32_277, %c3_i32_276 : i32
    %654 = arith.index_cast %c3_i32_276 : i32 to index
    %c0_278 = arith.constant 0 : index
    %c0_279 = arith.constant 0 : index
    %655 = vector.load %arg15[%654, %c0_278, %c0_279] : memref<8x2x384xf32, #tpu.memory_space<vmem>>, vector<1x2x384xf32>
    %656 = vector.shape_cast %655 : vector<1x2x384xf32> to vector<2x384xf32>
    %657 = arith.index_cast %653 : i32 to index
    %c0_280 = arith.constant 0 : index
    %c0_281 = arith.constant 0 : index
    %658 = vector.load %arg16[%657, %c0_280, %c0_281] : memref<8x2x384xf32, #tpu.memory_space<vmem>>, vector<1x2x384xf32>
    %659 = vector.shape_cast %658 : vector<1x2x384xf32> to vector<2x384xf32>
    %660 = arith.addf %656, %659 : vector<2x384xf32>
    %cst_282 = arith.constant dense<0.000000e+00> : vector<2x384xf32>
    %661 = tpu.matmul %642, %516, %cst_282 {dimension_numbers = #tpu.dot_dimension_numbers<[1], [0], [0], [1], [0, 0, 1, 1], [], []>} : vector<2x128xf32>, vector<128x384xf32>, vector<2x384xf32> -> vector<2x384xf32>
    %662 = vector.extract_strided_slice %660 {offsets = [0, 0], sizes = [2, 128], strides = [1, 1]} : vector<2x384xf32> to vector<2x128xf32>
    %663 = vector.extract_strided_slice %661 {offsets = [0, 0], sizes = [2, 128], strides = [1, 1]} : vector<2x384xf32> to vector<2x128xf32>
    %664 = arith.addf %662, %663 : vector<2x128xf32>
    %665 = arith.negf %664 : vector<2x128xf32>
    %666 = math.exp %665 : vector<2x128xf32>
    %cst_283 = arith.constant 1.000000e+00 : f32
    %667 = vector.broadcast %cst_283 : f32 to vector<2x128xf32>
    %668 = arith.addf %667, %666 : vector<2x128xf32>
    %669 = arith.divf %667, %668 : vector<2x128xf32>
    %670 = vector.extract_strided_slice %660 {offsets = [0, 128], sizes = [2, 128], strides = [1, 1]} : vector<2x384xf32> to vector<2x128xf32>
    %671 = vector.extract_strided_slice %661 {offsets = [0, 128], sizes = [2, 128], strides = [1, 1]} : vector<2x384xf32> to vector<2x128xf32>
    %672 = arith.addf %670, %671 : vector<2x128xf32>
    %673 = arith.negf %672 : vector<2x128xf32>
    %674 = math.exp %673 : vector<2x128xf32>
    %cst_284 = arith.constant 1.000000e+00 : f32
    %675 = vector.broadcast %cst_284 : f32 to vector<2x128xf32>
    %676 = arith.addf %675, %674 : vector<2x128xf32>
    %677 = arith.divf %675, %676 : vector<2x128xf32>
    %678 = vector.extract_strided_slice %660 {offsets = [0, 256], sizes = [2, 128], strides = [1, 1]} : vector<2x384xf32> to vector<2x128xf32>
    %679 = vector.extract_strided_slice %661 {offsets = [0, 256], sizes = [2, 128], strides = [1, 1]} : vector<2x384xf32> to vector<2x128xf32>
    %680 = arith.mulf %669, %679 : vector<2x128xf32>
    %681 = arith.addf %678, %680 : vector<2x128xf32>
    %682 = math.tanh %681 : vector<2x128xf32>
    %cst_285 = arith.constant 1.000000e+00 : f32
    %683 = vector.broadcast %cst_285 : f32 to vector<2x128xf32>
    %684 = arith.subf %683, %677 : vector<2x128xf32>
    %685 = arith.mulf %684, %682 : vector<2x128xf32>
    %686 = arith.mulf %677, %642 : vector<2x128xf32>
    %687 = arith.addf %685, %686 : vector<2x128xf32>
    %688 = vector.extract_strided_slice %687 {offsets = [0, 0], sizes = [2, 32], strides = [1, 1]} : vector<2x128xf32> to vector<2x32xf32>
    %689 = arith.index_cast %c3_i32_276 : i32 to index
    %c0_286 = arith.constant 0 : index
    %c0_287 = arith.constant 0 : index
    %690 = vector.load %arg18[%689, %c0_286, %c0_287] : memref<8x2x64xf32, #tpu.memory_space<vmem>>, vector<1x2x32xf32>
    %691 = vector.shape_cast %690 : vector<1x2x32xf32> to vector<2x32xf32>
    %692 = vector.shape_cast %688 : vector<2x32xf32> to vector<1x2x32xf32>
    tpu.vector_store %arg18[%689, %c0_286, %c0_287], %692 {strides = array<i32>} : memref<8x2x64xf32, #tpu.memory_space<vmem>>, vector<1x2x32xf32>,
    %693 = vector.extract_strided_slice %687 {offsets = [0, 32], sizes = [2, 32], strides = [1, 1]} : vector<2x128xf32> to vector<2x32xf32>
    %694 = arith.index_cast %653 : i32 to index
    %c0_288 = arith.constant 0 : index
    %c32_289 = arith.constant 32 : index
    %695 = vector.load %arg18[%694, %c0_288, %c32_289] : memref<8x2x64xf32, #tpu.memory_space<vmem>>, vector<1x2x32xf32>
    %696 = vector.shape_cast %695 : vector<1x2x32xf32> to vector<2x32xf32>
    %697 = vector.shape_cast %693 : vector<2x32xf32> to vector<1x2x32xf32>
    tpu.vector_store %arg18[%694, %c0_288, %c32_289], %697 {strides = array<i32>} : memref<8x2x64xf32, #tpu.memory_space<vmem>>, vector<1x2x32xf32>,
    %c4_i32_290 = arith.constant 4 : i32
    %c7_i32_291 = arith.constant 7 : i32
    %698 = arith.subi %c7_i32_291, %c4_i32_290 : i32
    %699 = arith.index_cast %c4_i32_290 : i32 to index
    %c0_292 = arith.constant 0 : index
    %c0_293 = arith.constant 0 : index
    %700 = vector.load %arg15[%699, %c0_292, %c0_293] : memref<8x2x384xf32, #tpu.memory_space<vmem>>, vector<1x2x384xf32>
    %701 = vector.shape_cast %700 : vector<1x2x384xf32> to vector<2x384xf32>
    %702 = arith.index_cast %698 : i32 to index
    %c0_294 = arith.constant 0 : index
    %c0_295 = arith.constant 0 : index
    %703 = vector.load %arg16[%702, %c0_294, %c0_295] : memref<8x2x384xf32, #tpu.memory_space<vmem>>, vector<1x2x384xf32>
    %704 = vector.shape_cast %703 : vector<1x2x384xf32> to vector<2x384xf32>
    %705 = arith.addf %701, %704 : vector<2x384xf32>
    %cst_296 = arith.constant dense<0.000000e+00> : vector<2x384xf32>
    %706 = tpu.matmul %687, %516, %cst_296 {dimension_numbers = #tpu.dot_dimension_numbers<[1], [0], [0], [1], [0, 0, 1, 1], [], []>} : vector<2x128xf32>, vector<128x384xf32>, vector<2x384xf32> -> vector<2x384xf32>
    %707 = vector.extract_strided_slice %705 {offsets = [0, 0], sizes = [2, 128], strides = [1, 1]} : vector<2x384xf32> to vector<2x128xf32>
    %708 = vector.extract_strided_slice %706 {offsets = [0, 0], sizes = [2, 128], strides = [1, 1]} : vector<2x384xf32> to vector<2x128xf32>
    %709 = arith.addf %707, %708 : vector<2x128xf32>
    %710 = arith.negf %709 : vector<2x128xf32>
    %711 = math.exp %710 : vector<2x128xf32>
    %cst_297 = arith.constant 1.000000e+00 : f32
    %712 = vector.broadcast %cst_297 : f32 to vector<2x128xf32>
    %713 = arith.addf %712, %711 : vector<2x128xf32>
    %714 = arith.divf %712, %713 : vector<2x128xf32>
    %715 = vector.extract_strided_slice %705 {offsets = [0, 128], sizes = [2, 128], strides = [1, 1]} : vector<2x384xf32> to vector<2x128xf32>
    %716 = vector.extract_strided_slice %706 {offsets = [0, 128], sizes = [2, 128], strides = [1, 1]} : vector<2x384xf32> to vector<2x128xf32>
    %717 = arith.addf %715, %716 : vector<2x128xf32>
    %718 = arith.negf %717 : vector<2x128xf32>
    %719 = math.exp %718 : vector<2x128xf32>
    %cst_298 = arith.constant 1.000000e+00 : f32
    %720 = vector.broadcast %cst_298 : f32 to vector<2x128xf32>
    %721 = arith.addf %720, %719 : vector<2x128xf32>
    %722 = arith.divf %720, %721 : vector<2x128xf32>
    %723 = vector.extract_strided_slice %705 {offsets = [0, 256], sizes = [2, 128], strides = [1, 1]} : vector<2x384xf32> to vector<2x128xf32>
    %724 = vector.extract_strided_slice %706 {offsets = [0, 256], sizes = [2, 128], strides = [1, 1]} : vector<2x384xf32> to vector<2x128xf32>
    %725 = arith.mulf %714, %724 : vector<2x128xf32>
    %726 = arith.addf %723, %725 : vector<2x128xf32>
    %727 = math.tanh %726 : vector<2x128xf32>
    %cst_299 = arith.constant 1.000000e+00 : f32
    %728 = vector.broadcast %cst_299 : f32 to vector<2x128xf32>
    %729 = arith.subf %728, %722 : vector<2x128xf32>
    %730 = arith.mulf %729, %727 : vector<2x128xf32>
    %731 = arith.mulf %722, %687 : vector<2x128xf32>
    %732 = arith.addf %730, %731 : vector<2x128xf32>
    %733 = vector.extract_strided_slice %732 {offsets = [0, 0], sizes = [2, 32], strides = [1, 1]} : vector<2x128xf32> to vector<2x32xf32>
    %734 = arith.index_cast %c4_i32_290 : i32 to index
    %c0_300 = arith.constant 0 : index
    %c0_301 = arith.constant 0 : index
    %735 = vector.load %arg18[%734, %c0_300, %c0_301] : memref<8x2x64xf32, #tpu.memory_space<vmem>>, vector<1x2x32xf32>
    %736 = vector.shape_cast %735 : vector<1x2x32xf32> to vector<2x32xf32>
    %737 = vector.shape_cast %733 : vector<2x32xf32> to vector<1x2x32xf32>
    tpu.vector_store %arg18[%734, %c0_300, %c0_301], %737 {strides = array<i32>} : memref<8x2x64xf32, #tpu.memory_space<vmem>>, vector<1x2x32xf32>,
    %738 = vector.extract_strided_slice %732 {offsets = [0, 32], sizes = [2, 32], strides = [1, 1]} : vector<2x128xf32> to vector<2x32xf32>
    %739 = arith.index_cast %698 : i32 to index
    %c0_302 = arith.constant 0 : index
    %c32_303 = arith.constant 32 : index
    %740 = vector.load %arg18[%739, %c0_302, %c32_303] : memref<8x2x64xf32, #tpu.memory_space<vmem>>, vector<1x2x32xf32>
    %741 = vector.shape_cast %740 : vector<1x2x32xf32> to vector<2x32xf32>
    %742 = vector.shape_cast %738 : vector<2x32xf32> to vector<1x2x32xf32>
    tpu.vector_store %arg18[%739, %c0_302, %c32_303], %742 {strides = array<i32>} : memref<8x2x64xf32, #tpu.memory_space<vmem>>, vector<1x2x32xf32>,
    %c5_i32_304 = arith.constant 5 : i32
    %c7_i32_305 = arith.constant 7 : i32
    %743 = arith.subi %c7_i32_305, %c5_i32_304 : i32
    %744 = arith.index_cast %c5_i32_304 : i32 to index
    %c0_306 = arith.constant 0 : index
    %c0_307 = arith.constant 0 : index
    %745 = vector.load %arg15[%744, %c0_306, %c0_307] : memref<8x2x384xf32, #tpu.memory_space<vmem>>, vector<1x2x384xf32>
    %746 = vector.shape_cast %745 : vector<1x2x384xf32> to vector<2x384xf32>
    %747 = arith.index_cast %743 : i32 to index
    %c0_308 = arith.constant 0 : index
    %c0_309 = arith.constant 0 : index
    %748 = vector.load %arg16[%747, %c0_308, %c0_309] : memref<8x2x384xf32, #tpu.memory_space<vmem>>, vector<1x2x384xf32>
    %749 = vector.shape_cast %748 : vector<1x2x384xf32> to vector<2x384xf32>
    %750 = arith.addf %746, %749 : vector<2x384xf32>
    %cst_310 = arith.constant dense<0.000000e+00> : vector<2x384xf32>
    %751 = tpu.matmul %732, %516, %cst_310 {dimension_numbers = #tpu.dot_dimension_numbers<[1], [0], [0], [1], [0, 0, 1, 1], [], []>} : vector<2x128xf32>, vector<128x384xf32>, vector<2x384xf32> -> vector<2x384xf32>
    %752 = vector.extract_strided_slice %750 {offsets = [0, 0], sizes = [2, 128], strides = [1, 1]} : vector<2x384xf32> to vector<2x128xf32>
    %753 = vector.extract_strided_slice %751 {offsets = [0, 0], sizes = [2, 128], strides = [1, 1]} : vector<2x384xf32> to vector<2x128xf32>
    %754 = arith.addf %752, %753 : vector<2x128xf32>
    %755 = arith.negf %754 : vector<2x128xf32>
    %756 = math.exp %755 : vector<2x128xf32>
    %cst_311 = arith.constant 1.000000e+00 : f32
    %757 = vector.broadcast %cst_311 : f32 to vector<2x128xf32>
    %758 = arith.addf %757, %756 : vector<2x128xf32>
    %759 = arith.divf %757, %758 : vector<2x128xf32>
    %760 = vector.extract_strided_slice %750 {offsets = [0, 128], sizes = [2, 128], strides = [1, 1]} : vector<2x384xf32> to vector<2x128xf32>
    %761 = vector.extract_strided_slice %751 {offsets = [0, 128], sizes = [2, 128], strides = [1, 1]} : vector<2x384xf32> to vector<2x128xf32>
    %762 = arith.addf %760, %761 : vector<2x128xf32>
    %763 = arith.negf %762 : vector<2x128xf32>
    %764 = math.exp %763 : vector<2x128xf32>
    %cst_312 = arith.constant 1.000000e+00 : f32
    %765 = vector.broadcast %cst_312 : f32 to vector<2x128xf32>
    %766 = arith.addf %765, %764 : vector<2x128xf32>
    %767 = arith.divf %765, %766 : vector<2x128xf32>
    %768 = vector.extract_strided_slice %750 {offsets = [0, 256], sizes = [2, 128], strides = [1, 1]} : vector<2x384xf32> to vector<2x128xf32>
    %769 = vector.extract_strided_slice %751 {offsets = [0, 256], sizes = [2, 128], strides = [1, 1]} : vector<2x384xf32> to vector<2x128xf32>
    %770 = arith.mulf %759, %769 : vector<2x128xf32>
    %771 = arith.addf %768, %770 : vector<2x128xf32>
    %772 = math.tanh %771 : vector<2x128xf32>
    %cst_313 = arith.constant 1.000000e+00 : f32
    %773 = vector.broadcast %cst_313 : f32 to vector<2x128xf32>
    %774 = arith.subf %773, %767 : vector<2x128xf32>
    %775 = arith.mulf %774, %772 : vector<2x128xf32>
    %776 = arith.mulf %767, %732 : vector<2x128xf32>
    %777 = arith.addf %775, %776 : vector<2x128xf32>
    %778 = vector.extract_strided_slice %777 {offsets = [0, 0], sizes = [2, 32], strides = [1, 1]} : vector<2x128xf32> to vector<2x32xf32>
    %779 = arith.index_cast %c5_i32_304 : i32 to index
    %c0_314 = arith.constant 0 : index
    %c0_315 = arith.constant 0 : index
    %780 = vector.load %arg18[%779, %c0_314, %c0_315] : memref<8x2x64xf32, #tpu.memory_space<vmem>>, vector<1x2x32xf32>
    %781 = vector.shape_cast %780 : vector<1x2x32xf32> to vector<2x32xf32>
    %782 = vector.shape_cast %778 : vector<2x32xf32> to vector<1x2x32xf32>
    tpu.vector_store %arg18[%779, %c0_314, %c0_315], %782 {strides = array<i32>} : memref<8x2x64xf32, #tpu.memory_space<vmem>>, vector<1x2x32xf32>,
    %783 = vector.extract_strided_slice %777 {offsets = [0, 32], sizes = [2, 32], strides = [1, 1]} : vector<2x128xf32> to vector<2x32xf32>
    %784 = arith.index_cast %743 : i32 to index
    %c0_316 = arith.constant 0 : index
    %c32_317 = arith.constant 32 : index
    %785 = vector.load %arg18[%784, %c0_316, %c32_317] : memref<8x2x64xf32, #tpu.memory_space<vmem>>, vector<1x2x32xf32>
    %786 = vector.shape_cast %785 : vector<1x2x32xf32> to vector<2x32xf32>
    %787 = vector.shape_cast %783 : vector<2x32xf32> to vector<1x2x32xf32>
    tpu.vector_store %arg18[%784, %c0_316, %c32_317], %787 {strides = array<i32>} : memref<8x2x64xf32, #tpu.memory_space<vmem>>, vector<1x2x32xf32>,
    %c6_i32_318 = arith.constant 6 : i32
    %c7_i32_319 = arith.constant 7 : i32
    %788 = arith.subi %c7_i32_319, %c6_i32_318 : i32
    %789 = arith.index_cast %c6_i32_318 : i32 to index
    %c0_320 = arith.constant 0 : index
    %c0_321 = arith.constant 0 : index
    %790 = vector.load %arg15[%789, %c0_320, %c0_321] : memref<8x2x384xf32, #tpu.memory_space<vmem>>, vector<1x2x384xf32>
    %791 = vector.shape_cast %790 : vector<1x2x384xf32> to vector<2x384xf32>
    %792 = arith.index_cast %788 : i32 to index
    %c0_322 = arith.constant 0 : index
    %c0_323 = arith.constant 0 : index
    %793 = vector.load %arg16[%792, %c0_322, %c0_323] : memref<8x2x384xf32, #tpu.memory_space<vmem>>, vector<1x2x384xf32>
    %794 = vector.shape_cast %793 : vector<1x2x384xf32> to vector<2x384xf32>
    %795 = arith.addf %791, %794 : vector<2x384xf32>
    %cst_324 = arith.constant dense<0.000000e+00> : vector<2x384xf32>
    %796 = tpu.matmul %777, %516, %cst_324 {dimension_numbers = #tpu.dot_dimension_numbers<[1], [0], [0], [1], [0, 0, 1, 1], [], []>} : vector<2x128xf32>, vector<128x384xf32>, vector<2x384xf32> -> vector<2x384xf32>
    %797 = vector.extract_strided_slice %795 {offsets = [0, 0], sizes = [2, 128], strides = [1, 1]} : vector<2x384xf32> to vector<2x128xf32>
    %798 = vector.extract_strided_slice %796 {offsets = [0, 0], sizes = [2, 128], strides = [1, 1]} : vector<2x384xf32> to vector<2x128xf32>
    %799 = arith.addf %797, %798 : vector<2x128xf32>
    %800 = arith.negf %799 : vector<2x128xf32>
    %801 = math.exp %800 : vector<2x128xf32>
    %cst_325 = arith.constant 1.000000e+00 : f32
    %802 = vector.broadcast %cst_325 : f32 to vector<2x128xf32>
    %803 = arith.addf %802, %801 : vector<2x128xf32>
    %804 = arith.divf %802, %803 : vector<2x128xf32>
    %805 = vector.extract_strided_slice %795 {offsets = [0, 128], sizes = [2, 128], strides = [1, 1]} : vector<2x384xf32> to vector<2x128xf32>
    %806 = vector.extract_strided_slice %796 {offsets = [0, 128], sizes = [2, 128], strides = [1, 1]} : vector<2x384xf32> to vector<2x128xf32>
    %807 = arith.addf %805, %806 : vector<2x128xf32>
    %808 = arith.negf %807 : vector<2x128xf32>
    %809 = math.exp %808 : vector<2x128xf32>
    %cst_326 = arith.constant 1.000000e+00 : f32
    %810 = vector.broadcast %cst_326 : f32 to vector<2x128xf32>
    %811 = arith.addf %810, %809 : vector<2x128xf32>
    %812 = arith.divf %810, %811 : vector<2x128xf32>
    %813 = vector.extract_strided_slice %795 {offsets = [0, 256], sizes = [2, 128], strides = [1, 1]} : vector<2x384xf32> to vector<2x128xf32>
    %814 = vector.extract_strided_slice %796 {offsets = [0, 256], sizes = [2, 128], strides = [1, 1]} : vector<2x384xf32> to vector<2x128xf32>
    %815 = arith.mulf %804, %814 : vector<2x128xf32>
    %816 = arith.addf %813, %815 : vector<2x128xf32>
    %817 = math.tanh %816 : vector<2x128xf32>
    %cst_327 = arith.constant 1.000000e+00 : f32
    %818 = vector.broadcast %cst_327 : f32 to vector<2x128xf32>
    %819 = arith.subf %818, %812 : vector<2x128xf32>
    %820 = arith.mulf %819, %817 : vector<2x128xf32>
    %821 = arith.mulf %812, %777 : vector<2x128xf32>
    %822 = arith.addf %820, %821 : vector<2x128xf32>
    %823 = vector.extract_strided_slice %822 {offsets = [0, 0], sizes = [2, 32], strides = [1, 1]} : vector<2x128xf32> to vector<2x32xf32>
    %824 = arith.index_cast %c6_i32_318 : i32 to index
    %c0_328 = arith.constant 0 : index
    %c0_329 = arith.constant 0 : index
    %825 = vector.load %arg18[%824, %c0_328, %c0_329] : memref<8x2x64xf32, #tpu.memory_space<vmem>>, vector<1x2x32xf32>
    %826 = vector.shape_cast %825 : vector<1x2x32xf32> to vector<2x32xf32>
    %827 = vector.shape_cast %823 : vector<2x32xf32> to vector<1x2x32xf32>
    tpu.vector_store %arg18[%824, %c0_328, %c0_329], %827 {strides = array<i32>} : memref<8x2x64xf32, #tpu.memory_space<vmem>>, vector<1x2x32xf32>,
    %828 = vector.extract_strided_slice %822 {offsets = [0, 32], sizes = [2, 32], strides = [1, 1]} : vector<2x128xf32> to vector<2x32xf32>
    %829 = arith.index_cast %788 : i32 to index
    %c0_330 = arith.constant 0 : index
    %c32_331 = arith.constant 32 : index
    %830 = vector.load %arg18[%829, %c0_330, %c32_331] : memref<8x2x64xf32, #tpu.memory_space<vmem>>, vector<1x2x32xf32>
    %831 = vector.shape_cast %830 : vector<1x2x32xf32> to vector<2x32xf32>
    %832 = vector.shape_cast %828 : vector<2x32xf32> to vector<1x2x32xf32>
    tpu.vector_store %arg18[%829, %c0_330, %c32_331], %832 {strides = array<i32>} : memref<8x2x64xf32, #tpu.memory_space<vmem>>, vector<1x2x32xf32>,
    %c7_i32_332 = arith.constant 7 : i32
    %c7_i32_333 = arith.constant 7 : i32
    %833 = arith.subi %c7_i32_333, %c7_i32_332 : i32
    %834 = arith.index_cast %c7_i32_332 : i32 to index
    %c0_334 = arith.constant 0 : index
    %c0_335 = arith.constant 0 : index
    %835 = vector.load %arg15[%834, %c0_334, %c0_335] : memref<8x2x384xf32, #tpu.memory_space<vmem>>, vector<1x2x384xf32>
    %836 = vector.shape_cast %835 : vector<1x2x384xf32> to vector<2x384xf32>
    %837 = arith.index_cast %833 : i32 to index
    %c0_336 = arith.constant 0 : index
    %c0_337 = arith.constant 0 : index
    %838 = vector.load %arg16[%837, %c0_336, %c0_337] : memref<8x2x384xf32, #tpu.memory_space<vmem>>, vector<1x2x384xf32>
    %839 = vector.shape_cast %838 : vector<1x2x384xf32> to vector<2x384xf32>
    %840 = arith.addf %836, %839 : vector<2x384xf32>
    %cst_338 = arith.constant dense<0.000000e+00> : vector<2x384xf32>
    %841 = tpu.matmul %822, %516, %cst_338 {dimension_numbers = #tpu.dot_dimension_numbers<[1], [0], [0], [1], [0, 0, 1, 1], [], []>} : vector<2x128xf32>, vector<128x384xf32>, vector<2x384xf32> -> vector<2x384xf32>
    %842 = vector.extract_strided_slice %840 {offsets = [0, 0], sizes = [2, 128], strides = [1, 1]} : vector<2x384xf32> to vector<2x128xf32>
    %843 = vector.extract_strided_slice %841 {offsets = [0, 0], sizes = [2, 128], strides = [1, 1]} : vector<2x384xf32> to vector<2x128xf32>
    %844 = arith.addf %842, %843 : vector<2x128xf32>
    %845 = arith.negf %844 : vector<2x128xf32>
    %846 = math.exp %845 : vector<2x128xf32>
    %cst_339 = arith.constant 1.000000e+00 : f32
    %847 = vector.broadcast %cst_339 : f32 to vector<2x128xf32>
    %848 = arith.addf %847, %846 : vector<2x128xf32>
    %849 = arith.divf %847, %848 : vector<2x128xf32>
    %850 = vector.extract_strided_slice %840 {offsets = [0, 128], sizes = [2, 128], strides = [1, 1]} : vector<2x384xf32> to vector<2x128xf32>
    %851 = vector.extract_strided_slice %841 {offsets = [0, 128], sizes = [2, 128], strides = [1, 1]} : vector<2x384xf32> to vector<2x128xf32>
    %852 = arith.addf %850, %851 : vector<2x128xf32>
    %853 = arith.negf %852 : vector<2x128xf32>
    %854 = math.exp %853 : vector<2x128xf32>
    %cst_340 = arith.constant 1.000000e+00 : f32
    %855 = vector.broadcast %cst_340 : f32 to vector<2x128xf32>
    %856 = arith.addf %855, %854 : vector<2x128xf32>
    %857 = arith.divf %855, %856 : vector<2x128xf32>
    %858 = vector.extract_strided_slice %840 {offsets = [0, 256], sizes = [2, 128], strides = [1, 1]} : vector<2x384xf32> to vector<2x128xf32>
    %859 = vector.extract_strided_slice %841 {offsets = [0, 256], sizes = [2, 128], strides = [1, 1]} : vector<2x384xf32> to vector<2x128xf32>
    %860 = arith.mulf %849, %859 : vector<2x128xf32>
    %861 = arith.addf %858, %860 : vector<2x128xf32>
    %862 = math.tanh %861 : vector<2x128xf32>
    %cst_341 = arith.constant 1.000000e+00 : f32
    %863 = vector.broadcast %cst_341 : f32 to vector<2x128xf32>
    %864 = arith.subf %863, %857 : vector<2x128xf32>
    %865 = arith.mulf %864, %862 : vector<2x128xf32>
    %866 = arith.mulf %857, %822 : vector<2x128xf32>
    %867 = arith.addf %865, %866 : vector<2x128xf32>
    %868 = vector.extract_strided_slice %867 {offsets = [0, 0], sizes = [2, 32], strides = [1, 1]} : vector<2x128xf32> to vector<2x32xf32>
    %869 = arith.index_cast %c7_i32_332 : i32 to index
    %c0_342 = arith.constant 0 : index
    %c0_343 = arith.constant 0 : index
    %870 = vector.load %arg18[%869, %c0_342, %c0_343] : memref<8x2x64xf32, #tpu.memory_space<vmem>>, vector<1x2x32xf32>
    %871 = vector.shape_cast %870 : vector<1x2x32xf32> to vector<2x32xf32>
    %872 = vector.shape_cast %868 : vector<2x32xf32> to vector<1x2x32xf32>
    tpu.vector_store %arg18[%869, %c0_342, %c0_343], %872 {strides = array<i32>} : memref<8x2x64xf32, #tpu.memory_space<vmem>>, vector<1x2x32xf32>,
    %873 = vector.extract_strided_slice %867 {offsets = [0, 32], sizes = [2, 32], strides = [1, 1]} : vector<2x128xf32> to vector<2x32xf32>
    %874 = arith.index_cast %833 : i32 to index
    %c0_344 = arith.constant 0 : index
    %c32_345 = arith.constant 32 : index
    %875 = vector.load %arg18[%874, %c0_344, %c32_345] : memref<8x2x64xf32, #tpu.memory_space<vmem>>, vector<1x2x32xf32>
    %876 = vector.shape_cast %875 : vector<1x2x32xf32> to vector<2x32xf32>
    %877 = vector.shape_cast %873 : vector<2x32xf32> to vector<1x2x32xf32>
    tpu.vector_store %arg18[%874, %c0_344, %c32_345], %877 {strides = array<i32>} : memref<8x2x64xf32, #tpu.memory_space<vmem>>, vector<1x2x32xf32>,
    %c8_i32_346 = arith.constant 8 : i32
    %c0_347 = arith.constant 0 : index
    %c0_348 = arith.constant 0 : index
    %c0_349 = arith.constant 0 : index
    %878 = vector.load %arg18[%c0_347, %c0_348, %c0_349] : memref<8x2x64xf32, #tpu.memory_space<vmem>>, vector<8x2x64xf32>
    %879 = vector.extract_strided_slice %878 {offsets = [7, 0, 0], sizes = [1, 2, 64], strides = [1, 1, 1]} : vector<8x2x64xf32> to vector<1x2x64xf32>
    %880 = vector.shape_cast %879 : vector<1x2x64xf32> to vector<2x64xf32>
    %881 = vector.extract_strided_slice %878 {offsets = [0, 0, 0], sizes = [1, 2, 64], strides = [1, 1, 1]} : vector<8x2x64xf32> to vector<1x2x64xf32>
    %882 = vector.shape_cast %881 : vector<1x2x64xf32> to vector<2x64xf32>
    %883 = vector.extract_strided_slice %878 {offsets = [1, 0, 0], sizes = [1, 2, 64], strides = [1, 1, 1]} : vector<8x2x64xf32> to vector<1x2x64xf32>
    %884 = vector.shape_cast %883 : vector<1x2x64xf32> to vector<2x64xf32>
    %885 = vector.extract_strided_slice %878 {offsets = [2, 0, 0], sizes = [1, 2, 64], strides = [1, 1, 1]} : vector<8x2x64xf32> to vector<1x2x64xf32>
    %886 = vector.shape_cast %885 : vector<1x2x64xf32> to vector<2x64xf32>
    %887 = vector.extract_strided_slice %878 {offsets = [3, 0, 0], sizes = [1, 2, 64], strides = [1, 1, 1]} : vector<8x2x64xf32> to vector<1x2x64xf32>
    %888 = vector.shape_cast %887 : vector<1x2x64xf32> to vector<2x64xf32>
    %889 = vector.extract_strided_slice %878 {offsets = [4, 0, 0], sizes = [1, 2, 64], strides = [1, 1, 1]} : vector<8x2x64xf32> to vector<1x2x64xf32>
    %890 = vector.shape_cast %889 : vector<1x2x64xf32> to vector<2x64xf32>
    %891 = vector.extract_strided_slice %878 {offsets = [5, 0, 0], sizes = [1, 2, 64], strides = [1, 1, 1]} : vector<8x2x64xf32> to vector<1x2x64xf32>
    %892 = vector.shape_cast %891 : vector<1x2x64xf32> to vector<2x64xf32>
    %893 = vector.extract_strided_slice %878 {offsets = [6, 0, 0], sizes = [1, 2, 64], strides = [1, 1, 1]} : vector<8x2x64xf32> to vector<1x2x64xf32>
    %894 = vector.shape_cast %893 : vector<1x2x64xf32> to vector<2x64xf32>
    %895 = vector.extract_strided_slice %878 {offsets = [7, 0, 0], sizes = [1, 2, 64], strides = [1, 1, 1]} : vector<8x2x64xf32> to vector<1x2x64xf32>
    %896 = vector.shape_cast %895 : vector<1x2x64xf32> to vector<2x64xf32>
    %897 = tpu.concatenate %882, %884, %886, %888, %890, %892, %894, %896 in 0 : vector<2x64xf32>, vector<2x64xf32>, vector<2x64xf32>, vector<2x64xf32>, vector<2x64xf32>, vector<2x64xf32>, vector<2x64xf32>, vector<2x64xf32> -> vector<16x64xf32>
    %c0_350 = arith.constant 0 : index
    %c0_351 = arith.constant 0 : index
    %898 = vector.load %arg7[%c0_350, %c0_351] : memref<64x32xf32, #tpu.memory_space<vmem>>, vector<64x32xf32>
    %cst_352 = arith.constant dense<0.000000e+00> : vector<16x32xf32>
    %899 = tpu.matmul %897, %898, %cst_352 {dimension_numbers = #tpu.dot_dimension_numbers<[1], [0], [0], [1], [0, 0, 1, 1], [], []>} : vector<16x64xf32>, vector<64x32xf32>, vector<16x32xf32> -> vector<16x32xf32>
    %c0_353 = arith.constant 0 : index
    %c0_354 = arith.constant 0 : index
    %900 = vector.load %arg8[%c0_353, %c0_354] : memref<1x32xf32, #tpu.memory_space<vmem>>, vector<1x32xf32>
    %901 = vector.broadcast %900 : vector<1x32xf32> to vector<16x32xf32>
    %902 = arith.addf %899, %901 : vector<16x32xf32>
    %cst_355 = arith.constant 0.000000e+00 : f32
    %903 = vector.broadcast %cst_355 : f32 to vector<16x32xf32>
    %904 = arith.maximumf %902, %903 : vector<16x32xf32>
    %c0_356 = arith.constant 0 : index
    %c0_357 = arith.constant 0 : index
    %905 = vector.load %arg9[%c0_356, %c0_357] : memref<32x1xf32, #tpu.memory_space<vmem>>, vector<32x1xf32>
    %cst_358 = arith.constant dense<0.000000e+00> : vector<16x1xf32>
    %906 = tpu.matmul %904, %905, %cst_358 {dimension_numbers = #tpu.dot_dimension_numbers<[1], [0], [0], [1], [0, 0, 1, 1], [], []>} : vector<16x32xf32>, vector<32x1xf32>, vector<16x1xf32> -> vector<16x1xf32>
    %c0_359 = arith.constant 0 : index
    %c0_360 = arith.constant 0 : index
    %907 = vector.load %arg10[%c0_359, %c0_360] : memref<1x1xf32, #tpu.memory_space<vmem>>, vector<1x1xf32>
    %908 = vector.broadcast %907 : vector<1x1xf32> to vector<16x1xf32>
    %909 = arith.addf %906, %908 : vector<16x1xf32>
    %910 = vector.extract_strided_slice %909 {offsets = [0, 0], sizes = [2, 1], strides = [1, 1]} : vector<16x1xf32> to vector<2x1xf32>
    %911 = vector.extract_strided_slice %909 {offsets = [2, 0], sizes = [2, 1], strides = [1, 1]} : vector<16x1xf32> to vector<2x1xf32>
    %912 = vector.extract_strided_slice %909 {offsets = [4, 0], sizes = [2, 1], strides = [1, 1]} : vector<16x1xf32> to vector<2x1xf32>
    %913 = vector.extract_strided_slice %909 {offsets = [6, 0], sizes = [2, 1], strides = [1, 1]} : vector<16x1xf32> to vector<2x1xf32>
    %914 = vector.extract_strided_slice %909 {offsets = [8, 0], sizes = [2, 1], strides = [1, 1]} : vector<16x1xf32> to vector<2x1xf32>
    %915 = vector.extract_strided_slice %909 {offsets = [10, 0], sizes = [2, 1], strides = [1, 1]} : vector<16x1xf32> to vector<2x1xf32>
    %916 = vector.extract_strided_slice %909 {offsets = [12, 0], sizes = [2, 1], strides = [1, 1]} : vector<16x1xf32> to vector<2x1xf32>
    %917 = vector.extract_strided_slice %909 {offsets = [14, 0], sizes = [2, 1], strides = [1, 1]} : vector<16x1xf32> to vector<2x1xf32>
    %918 = vector.shape_cast %910 : vector<2x1xf32> to vector<1x2x1xf32>
    %919 = vector.shape_cast %911 : vector<2x1xf32> to vector<1x2x1xf32>
    %920 = vector.shape_cast %912 : vector<2x1xf32> to vector<1x2x1xf32>
    %921 = vector.shape_cast %913 : vector<2x1xf32> to vector<1x2x1xf32>
    %922 = vector.shape_cast %914 : vector<2x1xf32> to vector<1x2x1xf32>
    %923 = vector.shape_cast %915 : vector<2x1xf32> to vector<1x2x1xf32>
    %924 = vector.shape_cast %916 : vector<2x1xf32> to vector<1x2x1xf32>
    %925 = vector.shape_cast %917 : vector<2x1xf32> to vector<1x2x1xf32>
    %926 = tpu.concatenate %918, %919, %920, %921, %922, %923, %924, %925 in 0 : vector<1x2x1xf32>, vector<1x2x1xf32>, vector<1x2x1xf32>, vector<1x2x1xf32>, vector<1x2x1xf32>, vector<1x2x1xf32>, vector<1x2x1xf32>, vector<1x2x1xf32> -> vector<8x2x1xf32>
    %cst_361 = arith.constant dense<0xFF800000> : vector<2x1xf32>
    %927 = vector.multi_reduction <maximumf>, %926, %cst_361 [0] : vector<8x2x1xf32> to vector<2x1xf32>
    %928 = vector.shape_cast %927 : vector<2x1xf32> to vector<1x2x1xf32>
    %929 = vector.broadcast %928 : vector<1x2x1xf32> to vector<8x2x1xf32>
    %930 = arith.subf %926, %929 : vector<8x2x1xf32>
    %931 = math.exp %930 : vector<8x2x1xf32>
    %cst_362 = arith.constant dense<0.000000e+00> : vector<2x1xf32>
    %932 = vector.multi_reduction <add>, %931, %cst_362 [0] : vector<8x2x1xf32> to vector<2x1xf32>
    %933 = vector.shape_cast %932 : vector<2x1xf32> to vector<1x2x1xf32>
    %934 = vector.broadcast %933 : vector<1x2x1xf32> to vector<8x2x1xf32>
    %935 = arith.divf %931, %934 : vector<8x2x1xf32>
    %936 = vector.broadcast %935 : vector<8x2x1xf32> to vector<8x2x64xf32>
    %937 = arith.mulf %878, %936 : vector<8x2x64xf32>
    %cst_363 = arith.constant dense<0.000000e+00> : vector<2x64xf32>
    %938 = vector.multi_reduction <add>, %937, %cst_363 [0] : vector<8x2x64xf32> to vector<2x64xf32>
    %c0_364 = arith.constant 0 : index
    %c0_365 = arith.constant 0 : index
    %939 = vector.load %arg11[%c0_364, %c0_365] : memref<64x5xf32, #tpu.memory_space<vmem>>, vector<64x5xf32>
    %cst_366 = arith.constant dense<0.000000e+00> : vector<2x5xf32>
    %940 = tpu.matmul %880, %939, %cst_366 {dimension_numbers = #tpu.dot_dimension_numbers<[1], [0], [0], [1], [0, 0, 1, 1], [], []>} : vector<2x64xf32>, vector<64x5xf32>, vector<2x5xf32> -> vector<2x5xf32>
    %c0_367 = arith.constant 0 : index
    %c0_368 = arith.constant 0 : index
    %941 = vector.load %arg12[%c0_367, %c0_368] : memref<64x5xf32, #tpu.memory_space<vmem>>, vector<64x5xf32>
    %cst_369 = arith.constant dense<0.000000e+00> : vector<2x5xf32>
    %942 = tpu.matmul %938, %941, %cst_369 {dimension_numbers = #tpu.dot_dimension_numbers<[1], [0], [0], [1], [0, 0, 1, 1], [], []>} : vector<2x64xf32>, vector<64x5xf32>, vector<2x5xf32> -> vector<2x5xf32>
    %943 = arith.addf %940, %942 : vector<2x5xf32>
    %c0_370 = arith.constant 0 : index
    %c0_371 = arith.constant 0 : index
    %944 = vector.load %arg13[%c0_370, %c0_371] : memref<1x5xf32, #tpu.memory_space<vmem>>, vector<1x5xf32>
    %945 = vector.broadcast %944 : vector<1x5xf32> to vector<2x5xf32>
    %946 = arith.addf %943, %945 : vector<2x5xf32>
    %c0_372 = arith.constant 0 : index
    %c0_373 = arith.constant 0 : index
    %947 = vector.load %arg14[%c0_372, %c0_373] : memref<2x5xf32, #tpu.memory_space<vmem>>, vector<2x5xf32>
    tpu.vector_store %arg14[%c0_372, %c0_373], %946 {strides = array<i32>} : memref<2x5xf32, #tpu.memory_space<vmem>>, vector<2x5xf32>,
    return
  }
}

</mosaic_0001>

<bundles_post_ra>
// kernel: rnn_model_forward.1
= control target key start
LH: loop header
LB: loop body
LE: loop exit
PB: predicated region body
PF: predicated region fallthrough
CT: control target
= control target key end

     0   :  { %s5380_s0 = inlined_call_operand.vmem [shape: f32[16,4], index: 0, kind: input, shape index: {}]   ;;  %s5381_s1 = inlined_call_operand.vmem [shape: f32[4,384], index: 1, kind: input, shape index: {}]   ;;  %s5382_s2 = inlined_call_operand.vmem [shape: f32[4,384], index: 2, kind: input, shape index: {}]   ;;  %s5383_s3 = inlined_call_operand.hbm [shape: f32[128,384], index: 3, kind: input, shape index: {}]   ;;  %s5384_s4 = inlined_call_operand.hbm [shape: f32[64,384], index: 4, kind: input, shape index: {}]   ;;  %s5385_s5 = inlined_call_operand.hbm [shape: f32[64,384], index: 5, kind: input, shape index: {}]   ;;  %s5386_s6 = inlined_call_operand.hbm [shape: f32[128,384], index: 6, kind: input, shape index: {}]   ;;  %s5387_s7 = inlined_call_operand.vmem [shape: f32[64,32], index: 7, kind: input, shape index: {}]   ;;  %s5388_s8 = inlined_call_operand.vmem [shape: f32[1,32], index: 8, kind: input, shape index: {}]   ;;  %s5389_s9 = inlined_call_operand.vmem [shape: f32[32,1], index: 9, kind: input, shape index: {}]   ;;  %s5390_s10 = inlined_call_operand.<no memory space> [shape: f32[1,1], index: 10, kind: input, shape index: {}]   ;;  %s5391_s11 = inlined_call_operand.vmem [shape: f32[64,5], index: 11, kind: input, shape index: {}]   ;;  %s5392_s12 = inlined_call_operand.vmem [shape: f32[64,5], index: 12, kind: input, shape index: {}]   ;;  %s5393_s13 = inlined_call_operand.vmem [shape: f32[1,5], index: 13, kind: input, shape index: {}]   ;;  %s5394_s14 = inlined_call_operand.hbm [shape: f32[2,5], index: 14, kind: output, shape index: {}]  }
   0x1   :  { %v19_v0 = vstv %s5390_s10 }
   0x2   :  { %20 = vst [vmem:[#allocation6] sm:$0x1] %v19_v0 }
   0x3   :  { %21 = vsyncpa [#allocation8], 0 }
   0x4   :  { %22 = vsyncpa [#allocation11], 0 }
   0x5   :  { %23 = vsyncpa [#allocation14], 0 }
   0x6   :  { %24 = vsyncpa [#allocation9], 0  ;;  %s48_s17 = sshll.u32 %s5384_s4, 4  ;;  %s3598_s18 = smov [#allocation10]   ;;  %s49_s17 = int_to_ptr.hbm [resolvable:$true] %s48_s17 }
   0x7   :  { %s50_s19 = sshll.u32 %s3598_s18, 4  ;;  %s35_s22 = sshll.u32 %s5383_s3, 4  ;;  %s51_s19 = int_to_ptr.vmem [resolvable:$true] %s50_s19  ;;  %s36_s22 = int_to_ptr.hbm [resolvable:$true] %s35_s22 }
   0x8   :  { %s3599_s23 = smov 384   ;;  %s3600_s24 = smov 24  }
   0x9   :  { %56 = dma.hbm_to_vmem [thread:$0]  %s49_s17, 3072, %s51_s19, [#allocation11], %s3599_s23, %s3599_s23, %s3600_s24  }
   0xa   :  { %s3601_s10 = smov [#allocation7]   ;;  %s61_s28 = sshll.u32 %s5385_s5, 4  ;;  %s62_s28 = int_to_ptr.hbm [resolvable:$true] %s61_s28 }
   0xb   :  { %s37_s25 = sshll.u32 %s3601_s10, 4  ;;  %s74_s30 = sshll.u32 %s5386_s6, 4  ;;  %s38_s25 = int_to_ptr.vmem [resolvable:$true] %s37_s25  ;;  %s75_s30 = int_to_ptr.hbm [resolvable:$true] %s74_s30 }
   0xc   :  { %43 = dma.hbm_to_vmem [thread:$0]  %s36_s22, 6144, %s38_s25, [#allocation8], %s3599_s23, %s3599_s23, %s3600_s24  }
   0xd   :  { %s3602_s15 = smov [#allocation12]   ;;  %s3603_s3 = smov [#allocation13]  }
   0xe   :  { %s63_s16 = sshll.u32 %s3602_s15, 4  ;;  %s76_s17 = sshll.u32 %s3603_s3, 4  ;;  %s64_s16 = int_to_ptr.vmem [resolvable:$true] %s63_s16  ;;  %s77_s17 = int_to_ptr.vmem [resolvable:$true] %s76_s17 }
   0xf   :  { %69 = dma.hbm_to_vmem [thread:$0]  %s62_s28, 3072, %s64_s16, [#allocation11], %s3599_s23, %s3599_s23, %s3600_s24  }
  0x10   :  { %82 = dma.hbm_to_vmem [thread:$0]  %s75_s30, 6144, %s77_s17, [#allocation14], %s3599_s23, %s3599_s23, %s3600_s24  }
  0x11   :  { %3590 = dma.done.wait [#allocation8], 6144  }
  0x12   :  { %3591 = vsyncadd [#allocation8], 4294961152 }
  0x13   :  { %3592 = dma.done.wait [#allocation11], 6144  }
  0x14   :  { %3593 = vsyncadd [#allocation11], 4294961152 }
  0x15   :  { %3594 = dma.done.wait [#allocation14], 6144  }
  0x16   :  { %3595 = vsyncadd [#allocation14], 4294961152  ;;  %v115_v1 = vld [vmem:[%s5381_s1] sm:$0xff]  ;;  %v116_v2 = vld [vmem:[%s5381_s1 + $0x8] sm:$0xf]  ;;  %vm132_vm0 = vcmask 1043456  }
  0x17   :  { %119 = vst [vmem:[#allocation1] ss:$2 sm:$0xff] %v115_v1  ;;  %v208_v3 = vld [vmem:[%s5382_s2] sm:$0xff]  ;;  %v209_v4 = vld [vmem:[%s5382_s2 + $0x8] sm:$0xf]  ;;  %vm125_vm1 = vcmask 31744  }
  0x18   :  { %121 = vst [vmem:[#allocation1 + $0x10] ss:$2 sm:$0xff] %v116_v2  ;;  %v113_v5 = vld [vmem:[%s5380_s0] sm:$0xff]  ;;  %v3714_v9 = vld [vmem:[#allocation7 + $0x168] sm:$0xff]  ;;  %v3729_v12 = vld [vmem:[%s5380_s0 + $0x8] sm:$0xff]  ;;  %v5395_v49 = vmov 0.0  }
  0x19   :  { %v3720_v10 = vld [vmem:[#allocation7 + $0x150] sm:$0xff]  ;;  %v3723_v11 = vld [vmem:[#allocation7 + $0x138] sm:$0xff]  ;;  %v3734_v16 = vld [vmem:[#allocation7 + $0x120] sm:$0xff]  ;;  %vm298_vm2 = vcmask 1041408   ;;  %vm591_vm11 = vcmask 254976   ;;  %vm594_vm12 = vcmask 517376  }
  0x1a   :  { %v3739_v17 = vld [vmem:[#allocation7 + $0x170] sm:$0xff]  ;;  %v3745_v18 = vld [vmem:[#allocation7 + $0x108] sm:$0xff]  ;;  %v3748_v19 = vld [vmem:[#allocation7 + $0x158] sm:$0xff]  ;;  %s3606_s30 = smov [#allocation15]   ;;  %s3101_s16 = sshll.u32 %s5394_s14, 4  ;;  %s3102_s16 = int_to_ptr.hbm [resolvable:$true] %s3101_s16 }
  0x1b   :  { %v3751_v20 = vld [vmem:[#allocation7 + $0x178] sm:$0xff]  ;;  %v3753_v21 = vld [vmem:[#allocation7 + $0x160] sm:$0xff]  ;;  %v3756_v22 = vld [vmem:[#allocation7 + $0xf0] sm:$0xff] }
  0x1c   :  { %v3759_v23 = vld [vmem:[#allocation7 + $0x140] sm:$0xff]  ;;  %v3762_v24 = vld [vmem:[#allocation7 + $0x148] sm:$0xff]  ;;  %v3766_v25 = vld [vmem:[#allocation7 + $0xd8] sm:$0xff] }
  0x1d   :  { %v3769_v26 = vld [vmem:[#allocation7 + $0x128] sm:$0xff]  ;;  %v3774_v27 = vld [vmem:[#allocation7 + $0xc0] sm:$0xff]  ;;  %v3778_v28 = vld [vmem:[#allocation7 + $0x110] sm:$0xff] }
  0x1e   :  { %v122_v6 = vld.sshfl [vmem:[#allocation1] sm:$0xff pattern:$0x75316420]  ;;  %v123_v7 = vld.sshfl [vmem:[#allocation1 + $0x8] sm:$0xff pattern:$0x75316420] }
  0x1f   :  { %3113 = vmatpush.msk.msra.mxu0 %vm132_vm0, %v122_v6  ;;  %3116 = vmatpush.msk.msra.mxu1 %vm132_vm0, %v123_v7  ;;  %212 = vst [vmem:[#allocation1] ss:$2 sm:$0xff] %v208_v3  ;;  %v124_v8 = vld.sshfl [vmem:[#allocation1 + $0x10] sm:$0xff pattern:$0x75316420]  ;;  %v3781_v29 = vld [vmem:[#allocation7 + $0x130] sm:$0xff] }
  0x20   :  { %3119 = vmatpush.msk.msra.mxu2 %vm132_vm0, %v124_v8  ;;  %214 = vst [vmem:[#allocation1 + $0x10] ss:$2 sm:$0xff] %v209_v4  ;;  %3114 = vmatmul.msk.f32.vlgmr.msra.gmra.mxu0 %vm125_vm1, %v113_v5  ;;  %v3785_v30 = vld [vmem:[#allocation7 + $0xa8] sm:$0xff]  ;;  %v3789_v31 = vld [vmem:[#allocation7 + $0xf8] sm:$0xff]  ;;  %v3795_v33 = vld [vmem:[#allocation7 + $0x90] sm:$0xff] }
  0x21   :  { %3117 = vmatmul.msk.f32.vlgmr.msra.gmra.mxu1 %vm125_vm1, %v113_v5  ;;  %3120 = vmatmul.msk.f32.vlgmr.msra.gmra.mxu2 %vm125_vm1, %v113_v5  ;;  %v3792_v32 = vld [vmem:[#allocation7 + $0x118] sm:$0xff]  ;;  %v3798_v34 = vld [vmem:[#allocation7 + $0xe0] sm:$0xff]  ;;  %v3808_v37 = vld [vmem:[#allocation7 + $0xc8] sm:$0xff] }
  0x22   :  { %479 = vmatpush.msrb.mxu2 %v3714_v9  ;;  %v3801_v35 = vld [vmem:[#allocation7 + $0x100] sm:$0xff]  ;;  %v3805_v36 = vld [vmem:[#allocation7 + $0x78] sm:$0xff]  ;;  %v3818_v39 = vld [vmem:[#allocation7 + $0xb0] sm:$0xff] }
  0x23   :  { %v3813_v38 = vld [vmem:[#allocation7 + $0x60] sm:$0xff]  ;;  %v3824_v40 = vld [vmem:[#allocation7 + $0x48] sm:$0xff]  ;;  %v3826_v41 = vld [vmem:[#allocation7 + $0x98] sm:$0xff] }
  0x24   :  { %480 = vmatpush.msrb.mxu2 %v3720_v10  ;;  %v3831_v42 = vld [vmem:[#allocation7 + $0x30] sm:$0xff]  ;;  %v3833_v43 = vld [vmem:[#allocation7 + $0x80] sm:$0xff]  ;;  %v3838_v44 = vld [vmem:[#allocation7 + $0x18] sm:$0xff] }
  0x25   :  { %5425 = vst [vmem:[#allocation20_spill] sm:$0xff] %v3838_v44  ;;  %v3840_v45 = vld [vmem:[#allocation7 + $0x68] sm:$0xff]  ;;  %v3845_v46 = vld [vmem:[#allocation7] sm:$0xff]  ;;  %v3847_v47 = vld [vmem:[#allocation7 + $0x50] sm:$0xff] }
  0x26   :  { %v216_v13 = vld.sshfl [vmem:[#allocation1 + $0x8] sm:$0xff pattern:$0x75316420]  ;;  %v215_v14 = vld.sshfl [vmem:[#allocation1] sm:$0xff pattern:$0x75316420]  ;;  %481 = vmatpush.msrb.mxu2 %v3723_v11 }
  0x27   :  { %3125 = vmatpush.msk.msrb.mxu0 %vm132_vm0, %v216_v13  ;;  %v217_v15 = vld.sshfl [vmem:[#allocation1 + $0x10] sm:$0xff pattern:$0x75316420]  ;;  %3122 = vmatpush.msk.msra.mxu3 %vm132_vm0, %v215_v14  ;;  %5426 = vst [vmem:[#allocation21_spill] sm:$0xff] %v3845_v46  ;;  %v3852_v48 = vld [vmem:[#allocation7 + $0x38] sm:$0xff]  ;;  %v3921_v53 = vld [vmem:[#allocation7 + $0xd0] sm:$0xff] }
  0x28   :  { %3128 = vmatpush.msk.msrb.mxu1 %vm132_vm0, %v217_v15  ;;  %3115 = vmatmul.msk.f32.gmra.mxu0 %vm125_vm1, %v3729_v12  ;;  %5427 = vst [vmem:[#allocation22_spill] sm:$0xff] %v3852_v48  ;;  %v3858_v50 = vld [vmem:[#allocation7 + $0x20] sm:$0xff]  ;;  %v3863_v51 = vld [vmem:[#allocation7 + $0x8] sm:$0xff]  ;;  %v3926_v54 = vld [vmem:[#allocation7 + $0xb8] sm:$0xff] }
  0x29   :  { %3118 = vmatmul.msk.f32.gmra.mxu1 %vm125_vm1, %v3729_v12  ;;  %3121 = vmatmul.msk.f32.gmra.mxu2 %vm125_vm1, %v3729_v12  ;;  %5428 = vst [vmem:[#allocation23_spill] sm:$0xff] %v3858_v50  ;;  %v3917_v52 = vld [vmem:[#allocation7 + $0xe8] sm:$0xff]  ;;  %v3931_v55 = vld [vmem:[#allocation7 + $0xa0] sm:$0xff]  ;;  %v3941_v57 = vld [vmem:[#allocation7 + $0x70] sm:$0xff] }
  0x2a   :  { %3123 = vmatmul.msk.f32.vlgmr.msra.gmra.mxu3 %vm125_vm1, %v113_v5  ;;  %482 = vmatpush.msrb.mxu2 %v3734_v16  ;;  %5429 = vst [vmem:[#allocation24_spill] sm:$0xff] %v3863_v51  ;;  %v3936_v56 = vld [vmem:[#allocation7 + $0x88] sm:$0xff]  ;;  %v3946_v58 = vld [vmem:[#allocation7 + $0x58] sm:$0xff]  ;;  %v3951_v59 = vld [vmem:[#allocation7 + $0x40] sm:$0xff] }
  0x2b   :  { %499 = vmatpush.msrb.mxu3 %v3739_v17  ;;  %519 = vmatpush.msra.mxu0 %v3751_v20  ;;  %v3957_v60 = vld [vmem:[#allocation7 + $0x28] sm:$0xff]  ;;  %v3961_v61 = vld [vmem:[#allocation7 + $0x10] sm:$0xff] }
  0x2c   :  { %483 = vmatpush.msrb.mxu2 %v3745_v18  ;;  %599 = vmatpush.msra.mxu1 %v3714_v9  ;;  %5430 = vst [vmem:[#allocation25_spill] sm:$0xff] %v3957_v60 }
  0x2d   :  { %500 = vmatpush.msrb.mxu3 %v3748_v19  ;;  %520 = vmatpush.msra.mxu0 %v3753_v21  ;;  %5431 = vst [vmem:[#allocation26_spill] sm:$0xff] %v3961_v61 }
  0x2e   :  { %484 = vmatpush.msrb.mxu2 %v3756_v22  ;;  %600 = vmatpush.msra.mxu1 %v3720_v10 }
  0x2f   :  { %501 = vmatpush.msrb.mxu3 %v3759_v23  ;;  %521 = vmatpush.msra.mxu0 %v3762_v24 }
  0x30   :  { %3126 = vmatmul.msk.f32.vlgmr.msrb.gmra.mxu0 %vm125_vm1, %v113_v5  ;;  %485 = vmatpush.msrb.mxu2 %v3766_v25 }
  0x31   :  { %3129 = vmatmul.msk.f32.vlgmr.msrb.gmra.mxu1 %vm125_vm1, %v113_v5  ;;  %502 = vmatpush.msrb.mxu3 %v3769_v26 }
  0x32   :  { %3124 = vmatmul.msk.f32.gmra.mxu3 %vm125_vm1, %v3729_v12  ;;  %486 = vmatpush.msrb.mxu2 %v3774_v27 }
  0x33   :  { %503 = vmatpush.msrb.mxu3 %v3778_v28  ;;  %522 = vmatpush.msra.mxu0 %v3781_v29 }
  0x34   :  { %487 = vmatpush.msrb.mxu2 %v3785_v30  ;;  %601 = vmatpush.msra.mxu1 %v3723_v11 }
  0x35   :  { %504 = vmatpush.msrb.mxu3 %v3789_v31  ;;  %523 = vmatpush.msra.mxu0 %v3792_v32 }
  0x36   :  { %488 = vmatpush.msrb.mxu2 %v3795_v33  ;;  %602 = vmatpush.msra.mxu1 %v3734_v16 }
  0x37   :  { %505 = vmatpush.msrb.mxu3 %v3798_v34  ;;  %524 = vmatpush.msra.mxu0 %v3801_v35 }
  0x38   :  { %3127 = vmatmul.msk.f32.gmra.mxu0 %vm125_vm1, %v3729_v12  ;;  %489 = vmatpush.msrb.mxu2 %v3805_v36 }
  0x39   :  { %3130 = vmatmul.msk.f32.gmra.mxu1 %vm125_vm1, %v3729_v12  ;;  %506 = vmatpush.msrb.mxu3 %v3808_v37 }
  0x3a   :  { %490 = vmatpush.msrb.mxu2 %v3813_v38  ;;  %603 = vmatpush.msra.mxu1 %v3745_v18 }
  0x3b   :  { %507 = vmatpush.msrb.mxu3 %v3818_v39  ;;  %525 = vmatpush.msra.mxu0 %v3917_v52 }
  0x3c   :  { %491 = vmatpush.msrb.mxu2 %v3824_v40  ;;  %604 = vmatpush.msra.mxu1 %v3756_v22 }
  0x3d   :  { %508 = vmatpush.msrb.mxu3 %v3826_v41  ;;  %526 = vmatpush.msra.mxu0 %v3921_v53 }
  0x3e   :  { %492 = vmatpush.msrb.mxu2 %v3831_v42  ;;  %605 = vmatpush.msra.mxu1 %v3766_v25 }
  0x3f   :  { %509 = vmatpush.msrb.mxu3 %v3833_v43  ;;  %527 = vmatpush.msra.mxu0 %v3926_v54 }
  0x40   :  { %493 = vmatpush.msrb.mxu2 %v3838_v44  ;;  %606 = vmatpush.msra.mxu1 %v3774_v27 }
  0x41   :  { %510 = vmatpush.msrb.mxu3 %v3840_v45  ;;  %528 = vmatpush.msra.mxu0 %v3931_v55 }
  0x42   :  { %494 = vmatpush.msrb.mxu2 %v3845_v46  ;;  %607 = vmatpush.msra.mxu1 %v3785_v30 }
  0x43   :  { %511 = vmatpush.msrb.mxu3 %v3847_v47  ;;  %495 = vmatmul.f32.vlgmr.msrb.gmra.mxu2 %v5395_v49 }
  0x44   :  { %619 = vmatpush.msra.mxu2 %v3739_v17  ;;  %608 = vmatpush.msra.mxu1 %v3795_v33 }
  0x45   :  { %512 = vmatpush.msrb.mxu3 %v3852_v48  ;;  %529 = vmatpush.msra.mxu0 %v3936_v56 }
  0x46   :  { %620 = vmatpush.msra.mxu2 %v3748_v19  ;;  %609 = vmatpush.msra.mxu1 %v3805_v36 }
  0x47   :  { %513 = vmatpush.msrb.mxu3 %v3858_v50  ;;  %530 = vmatpush.msra.mxu0 %v3941_v57 }
  0x48   :  { %621 = vmatpush.msra.mxu2 %v3759_v23  ;;  %610 = vmatpush.msra.mxu1 %v3813_v38 }
  0x49   :  { %514 = vmatpush.msrb.mxu3 %v3863_v51  ;;  %531 = vmatpush.msra.mxu0 %v3946_v58 }
  0x4a   :  { %515 = vmatmul.f32.vlgmr.msrb.gmra.mxu3 %v5395_v49  ;;  %622 = vmatpush.msra.mxu2 %v3769_v26 }
  0x4b   :  { %639 = vmatpush.msra.mxu3 %v3751_v20  ;;  %611 = vmatpush.msra.mxu1 %v3824_v40 }
  0x4c   :  { %623 = vmatpush.msra.mxu2 %v3778_v28  ;;  %532 = vmatpush.msra.mxu0 %v3951_v59 }
  0x4d   :  { %640 = vmatpush.msra.mxu3 %v3753_v21  ;;  %612 = vmatpush.msra.mxu1 %v3831_v42 }
  0x4e   :  { %624 = vmatpush.msra.mxu2 %v3789_v31  ;;  %533 = vmatpush.msra.mxu0 %v3957_v60 }
  0x4f   :  { %641 = vmatpush.msra.mxu3 %v3762_v24  ;;  %613 = vmatpush.msra.mxu1 %v3838_v44 }
  0x50   :  { %625 = vmatpush.msra.mxu2 %v3798_v34  ;;  %534 = vmatpush.msra.mxu0 %v3961_v61 }
  0x51   :  { %642 = vmatpush.msra.mxu3 %v3781_v29  ;;  %614 = vmatpush.msra.mxu1 %v3845_v46 }
  0x52   :  { %626 = vmatpush.msra.mxu2 %v3808_v37  ;;  %535 = vmatmul.f32.vlgmr.msra.gmra.mxu0 %v5395_v49 }
  0x53   :  { %738 = vmatpush.msrb.mxu1 %v3739_v17  ;;  %643 = vmatpush.msra.mxu3 %v3792_v32 }
  0x54   :  { %627 = vmatpush.msra.mxu2 %v3818_v39  ;;  %718 = vmatpush.msrb.mxu0 %v3714_v9 }
  0x55   :  { %739 = vmatpush.msrb.mxu1 %v3748_v19  ;;  %644 = vmatpush.msra.mxu3 %v3801_v35 }
  0x56   :  { %628 = vmatpush.msra.mxu2 %v3826_v41  ;;  %719 = vmatpush.msrb.mxu0 %v3720_v10 }
  0x57   :  { %740 = vmatpush.msrb.mxu1 %v3759_v23  ;;  %645 = vmatpush.msra.mxu3 %v3917_v52 }
  0x58   :  { %629 = vmatpush.msra.mxu2 %v3833_v43  ;;  %720 = vmatpush.msrb.mxu0 %v3723_v11 }
  0x59   :  { %741 = vmatpush.msrb.mxu1 %v3769_v26  ;;  %646 = vmatpush.msra.mxu3 %v3921_v53 }
  0x5a   :  { %630 = vmatpush.msra.mxu2 %v3840_v45  ;;  %721 = vmatpush.msrb.mxu0 %v3734_v16 }
  0x5b   :  { %742 = vmatpush.msrb.mxu1 %v3778_v28  ;;  %647 = vmatpush.msra.mxu3 %v3926_v54 }
  0x5c   :  { %631 = vmatpush.msra.mxu2 %v3847_v47  ;;  %722 = vmatpush.msrb.mxu0 %v3745_v18 }
  0x5d   :  { %743 = vmatpush.msrb.mxu1 %v3789_v31  ;;  %648 = vmatpush.msra.mxu3 %v3931_v55 }
  0x5e   :  { %632 = vmatpush.msra.mxu2 %v3852_v48  ;;  %723 = vmatpush.msrb.mxu0 %v3756_v22 }
  0x5f   :  { %744 = vmatpush.msrb.mxu1 %v3798_v34  ;;  %649 = vmatpush.msra.mxu3 %v3936_v56 }
  0x60   :  { %633 = vmatpush.msra.mxu2 %v3858_v50  ;;  %724 = vmatpush.msrb.mxu0 %v3766_v25 }
  0x61   :  { %745 = vmatpush.msrb.mxu1 %v3808_v37  ;;  %650 = vmatpush.msra.mxu3 %v3941_v57 }
  0x62   :  { %634 = vmatpush.msra.mxu2 %v3863_v51  ;;  %725 = vmatpush.msrb.mxu0 %v3774_v27 }
  0x63   :  { %746 = vmatpush.msrb.mxu1 %v3818_v39  ;;  %651 = vmatpush.msra.mxu3 %v3946_v58 }
  0x64   :  { %758 = vmatpush.msrb.mxu2 %v3751_v20  ;;  %726 = vmatpush.msrb.mxu0 %v3785_v30 }
  0x65   :  { %747 = vmatpush.msrb.mxu1 %v3826_v41  ;;  %652 = vmatpush.msra.mxu3 %v3951_v59 }
  0x66   :  { %759 = vmatpush.msrb.mxu2 %v3753_v21  ;;  %727 = vmatpush.msrb.mxu0 %v3795_v33 }
  0x67   :  { %748 = vmatpush.msrb.mxu1 %v3833_v43  ;;  %653 = vmatpush.msra.mxu3 %v3957_v60 }
  0x68   :  { %760 = vmatpush.msrb.mxu2 %v3762_v24  ;;  %728 = vmatpush.msrb.mxu0 %v3805_v36 }
  0x69   :  { %749 = vmatpush.msrb.mxu1 %v3840_v45  ;;  %654 = vmatpush.msra.mxu3 %v3961_v61 }
  0x6a   :  { %761 = vmatpush.msrb.mxu2 %v3781_v29  ;;  %729 = vmatpush.msrb.mxu0 %v3813_v38 }
  0x6b   :  { %750 = vmatpush.msrb.mxu1 %v3847_v47  ;;  %837 = vmatpush.msrb.mxu3 %v3714_v9 }
  0x6c   :  { %762 = vmatpush.msrb.mxu2 %v3792_v32  ;;  %730 = vmatpush.msrb.mxu0 %v3824_v40 }
  0x6d   :  { %751 = vmatpush.msrb.mxu1 %v3852_v48  ;;  %838 = vmatpush.msrb.mxu3 %v3720_v10 }
  0x6e   :  { %763 = vmatpush.msrb.mxu2 %v3801_v35  ;;  %731 = vmatpush.msrb.mxu0 %v3831_v42 }
  0x6f   :  { %752 = vmatpush.msrb.mxu1 %v3858_v50  ;;  %839 = vmatpush.msrb.mxu3 %v3723_v11 }
  0x70   :  { %764 = vmatpush.msrb.mxu2 %v3917_v52  ;;  %732 = vmatpush.msrb.mxu0 %v3838_v44 }
  0x71   :  { %753 = vmatpush.msrb.mxu1 %v3863_v51  ;;  %840 = vmatpush.msrb.mxu3 %v3734_v16 }
  0x72   :  { %765 = vmatpush.msrb.mxu2 %v3921_v53  ;;  %733 = vmatpush.msrb.mxu0 %v3845_v46 }
  0x73   :  { %841 = vmatpush.msrb.mxu3 %v3745_v18 }
  0x74   :  { %766 = vmatpush.msrb.mxu2 %v3926_v54  ;;  %857 = vmatpush.msra.mxu0 %v3739_v17 }
  0x75   :  { %842 = vmatpush.msrb.mxu3 %v3756_v22 }
  0x76   :  { %767 = vmatpush.msrb.mxu2 %v3931_v55  ;;  %858 = vmatpush.msra.mxu0 %v3748_v19 }
  0x77   :  { %843 = vmatpush.msrb.mxu3 %v3766_v25 }
  0x78   :  { %768 = vmatpush.msrb.mxu2 %v3936_v56  ;;  %859 = vmatpush.msra.mxu0 %v3759_v23 }
  0x79   :  { %844 = vmatpush.msrb.mxu3 %v3774_v27 }
  0x7a   :  { %769 = vmatpush.msrb.mxu2 %v3941_v57  ;;  %860 = vmatpush.msra.mxu0 %v3769_v26 }
  0x7b   :  { %845 = vmatpush.msrb.mxu3 %v3785_v30 }
  0x7c   :  { %770 = vmatpush.msrb.mxu2 %v3946_v58  ;;  %861 = vmatpush.msra.mxu0 %v3778_v28 }
  0x7d   :  { %846 = vmatpush.msrb.mxu3 %v3795_v33 }
  0x7e   :  { %771 = vmatpush.msrb.mxu2 %v3951_v59  ;;  %862 = vmatpush.msra.mxu0 %v3789_v31 }
  0x7f   :  { %847 = vmatpush.msrb.mxu3 %v3805_v36 }
  0x80   :  { %772 = vmatpush.msrb.mxu2 %v3957_v60  ;;  %863 = vmatpush.msra.mxu0 %v3798_v34 }
  0x81   :  { %848 = vmatpush.msrb.mxu3 %v3813_v38 }
  0x82   :  { %773 = vmatpush.msrb.mxu2 %v3961_v61  ;;  %864 = vmatpush.msra.mxu0 %v3808_v37 }
  0x83   :  { %849 = vmatpush.msrb.mxu3 %v3824_v40 }
  0x84   :  { %865 = vmatpush.msra.mxu0 %v3818_v39 }
  0x85   :  { %850 = vmatpush.msrb.mxu3 %v3831_v42 }
  0x86   :  { %866 = vmatpush.msra.mxu0 %v3826_v41 }
  0x87   :  { %851 = vmatpush.msrb.mxu3 %v3838_v44 }
  0x88   :  { %867 = vmatpush.msra.mxu0 %v3833_v43 }
  0x89   :  { %852 = vmatpush.msrb.mxu3 %v3845_v46 }
  0x8a   :  { %868 = vmatpush.msra.mxu0 %v3840_v45 }
  0x8c   :  { %869 = vmatpush.msra.mxu0 %v3847_v47 }
  0x8e   :  { %870 = vmatpush.msra.mxu0 %v3852_v48 }
  0x90   :  { %871 = vmatpush.msra.mxu0 %v3858_v50 }
  0x92   :  { %872 = vmatpush.msra.mxu0 %v3863_v51 }
  0x9d   :  { %v3964_v62 = vpop.f32.mrf.mxu0 }
  0x9e   :  { %312 = vst.sshfl [vmem:[#allocation1] sm:$0xff pattern:$0x73625140] %v3964_v62  ;;  %v3969_v63 = vpop.f32.mrf.mxu1 }
  0x9f   :  { %313 = vst.sshfl [vmem:[#allocation1 + $0x8] sm:$0xff pattern:$0x73625140] %v3969_v63  ;;  %v296_v0 = vrot.slane %v3969_v63, 6 }
  0xa1   :  { %v299_v4 = vsel %vm298_vm2, %v3964_v62, %v296_v0 }
  0xa4   :  { %v3981_v1 = vpop.f32.mrf.mxu2 }
  0xa5   :  { %v297_v2 = vrot.slane %v3981_v1, 4  ;;  %314 = vst.sshfl [vmem:[#allocation1 + $0x10] sm:$0xff pattern:$0x73625140] %v3981_v1  ;;  %v3985_v3 = vpop.f32.mrf.mxu0 }
  0xa6   :  { %v3991_v5 = vpop.f32.mrf.mxu1 }
  0xa7   :  { %v300_v6 = vsel %vm132_vm0, %v299_v4, %v297_v2  ;;  %v363_v7 = vrot.slane %v3991_v5, 6 }
  0xa8   :  { %302 = vst [vmem:[#allocation2] sm:$0x3f] %v300_v6 }
  0xa9   :  { %v365_v0 = vsel %vm298_vm2, %v3985_v3, %v363_v7 }
  0xac   :  { %v316_v8 = vld [vmem:[#allocation1 + $0x1] ss:$4 sm:$0xff]  ;;  %v4001_v12 = vpop.f32.mrf.mxu2 }
  0xad   :  { %319 = vst [vmem:[#allocation2 + $0x6] sm:$0x3f] %v316_v8  ;;  %v364_v13 = vrot.slane %v4001_v12, 4  ;;  %v4004_v14 = vpop.f32.mrf.mxu3  ;;  %v4006_v15 = vpop.f32.mrf.mxu0 }
  0xae   :  { %320 = vst.sshfl [vmem:[#allocation1] sm:$0xff pattern:$0x73625140] %v4004_v14  ;;  %v306_v2 = vrot.slane %v4006_v15, 6  ;;  %v4014_v4 = vpop.f32.mrf.mxu1 }
  0xaf   :  { %v366_v6 = vsel %vm132_vm0, %v365_v0, %v364_v13  ;;  %321 = vst.sshfl [vmem:[#allocation1 + $0x8] sm:$0xff pattern:$0x73625140] %v4006_v15  ;;  %v307_v8 = vrot.slane %v4014_v4, 4 }
  0xb0   :  { %369 = vst [vmem:[#allocation2 + $0x18] sm:$0x3f] %v366_v6  ;;  %v308_v7 = vsel %vm298_vm2, %v4004_v14, %v306_v2 }
  0xb1   :  { %v309_v49 = vsel %vm132_vm0, %v308_v7, %v307_v8  ;;  %322 = vst.sshfl [vmem:[#allocation1 + $0x10] sm:$0xff pattern:$0x73625140] %v4014_v4 }
  0xb2   :  { %311 = vst [vmem:[#allocation3] sm:$0x3f] %v309_v49 }
  0xb5   :  { %v4031_v13 = vpop.f32.mrf.mxu0  ;;  %v4043_v8 = vpop.f32.mrf.mxu3 }
  0xb6   :  { %v373_v2 = vrot.slane %v4031_v13, 6  ;;  %v4036_v6 = vpop.f32.mrf.mxu1 }
  0xb7   :  { %v374_v49 = vrot.slane %v4036_v6, 4 }
  0xb8   :  { %v324_v0 = vld [vmem:[#allocation1 + $0x1] ss:$4 sm:$0xff]  ;;  %v375_v7 = vsel %vm298_vm2, %v4043_v8, %v373_v2 }
  0xb9   :  { %328 = vst.sshfl [vmem:[#allocation1] sm:$0xff pattern:$0x73625140] %v3964_v62  ;;  %v376_v61 = vsel %vm132_vm0, %v375_v7, %v374_v49  ;;  %v476_v2 = vld [vmem:[#allocation2] sm:$0x3f] }
  0xba   :  { %329 = vst.sshfl [vmem:[#allocation1 + $0x8] sm:$0xff pattern:$0x73625140] %v3969_v63 }
  0xbb   :  { %330 = vst.sshfl [vmem:[#allocation1 + $0x10] sm:$0xff pattern:$0x73625140] %v3981_v1 }
  0xbc   :  { %327 = vst [vmem:[#allocation3 + $0x6] sm:$0x3f] %v324_v0 }
  0xbd   :  { %379 = vst [vmem:[#allocation3 + $0x18] sm:$0x3f] %v376_v61 }
  0xc2   :  { %v332_v60 = vld [vmem:[#allocation1 + $0x2] ss:$4 sm:$0xff] }
  0xc3   :  { %336 = vst.sshfl [vmem:[#allocation1] sm:$0xff pattern:$0x73625140] %v4004_v14 }
  0xc4   :  { %337 = vst.sshfl [vmem:[#allocation1 + $0x8] sm:$0xff pattern:$0x73625140] %v4006_v15 }
  0xc5   :  { %338 = vst.sshfl [vmem:[#allocation1 + $0x10] sm:$0xff pattern:$0x73625140] %v4014_v4 }
  0xc6   :  { %335 = vst [vmem:[#allocation2 + $0xc] sm:$0x3f] %v332_v60  ;;  %v496_v7 = vpop.f32.mrf.mxu2 }
  0xcc   :  { %v340_v61 = vld [vmem:[#allocation1 + $0x2] ss:$4 sm:$0xff] }
  0xcd   :  { %344 = vst.sshfl [vmem:[#allocation1] sm:$0xff pattern:$0x73625140] %v3964_v62 }
  0xce   :  { %345 = vst.sshfl [vmem:[#allocation1 + $0x8] sm:$0xff pattern:$0x73625140] %v3969_v63 }
  0xcf   :  { %346 = vst.sshfl [vmem:[#allocation1 + $0x10] sm:$0xff pattern:$0x73625140] %v3981_v1 }
  0xd0   :  { %343 = vst [vmem:[#allocation3 + $0xc] sm:$0x3f] %v340_v61 }
  0xd6   :  { %v348_v60 = vld [vmem:[#allocation1 + $0x3] ss:$4 sm:$0xff] }
  0xd7   :  { %352 = vst.sshfl [vmem:[#allocation1] sm:$0xff pattern:$0x73625140] %v4004_v14 }
  0xd8   :  { %353 = vst.sshfl [vmem:[#allocation1 + $0x8] sm:$0xff pattern:$0x73625140] %v4006_v15 }
  0xd9   :  { %354 = vst.sshfl [vmem:[#allocation1 + $0x10] sm:$0xff pattern:$0x73625140] %v4014_v4 }
  0xda   :  { %351 = vst [vmem:[#allocation2 + $0x12] sm:$0x3f] %v348_v60 }
  0xe0   :  { %v356_v62 = vld [vmem:[#allocation1 + $0x3] ss:$4 sm:$0xff] }
  0xe1   :  { %380 = vst.sshfl [vmem:[#allocation1] sm:$0xff pattern:$0x73625140] %v3985_v3 }
  0xe2   :  { %381 = vst.sshfl [vmem:[#allocation1 + $0x8] sm:$0xff pattern:$0x73625140] %v3991_v5 }
  0xe3   :  { %382 = vst.sshfl [vmem:[#allocation1 + $0x10] sm:$0xff pattern:$0x73625140] %v4001_v12 }
  0xe4   :  { %359 = vst [vmem:[#allocation3 + $0x12] sm:$0x3f] %v356_v62 }
  0xea   :  { %v384_v63 = vld [vmem:[#allocation1 + $0x1] ss:$4 sm:$0xff] }
  0xeb   :  { %387 = vst [vmem:[#allocation2 + $0x1e] sm:$0x3f] %v384_v63 }
  0xec   :  { %389 = vst.sshfl [vmem:[#allocation1 + $0x8] sm:$0xff pattern:$0x73625140] %v4031_v13 }
  0xed   :  { %390 = vst.sshfl [vmem:[#allocation1 + $0x10] sm:$0xff pattern:$0x73625140] %v4036_v6 }
  0xee   :  { %388 = vst.sshfl [vmem:[#allocation1] sm:$0xff pattern:$0x73625140] %v4043_v8 }
  0xf5   :  { %v392_v1 = vld [vmem:[#allocation1 + $0x1] ss:$4 sm:$0xff] }
  0xf6   :  { %396 = vst.sshfl [vmem:[#allocation1] sm:$0xff pattern:$0x73625140] %v3985_v3 }
  0xf7   :  { %397 = vst.sshfl [vmem:[#allocation1 + $0x8] sm:$0xff pattern:$0x73625140] %v3991_v5 }
  0xf8   :  { %398 = vst.sshfl [vmem:[#allocation1 + $0x10] sm:$0xff pattern:$0x73625140] %v4001_v12 }
  0xf9   :  { %395 = vst [vmem:[#allocation3 + $0x1e] sm:$0x3f] %v392_v1 }
  0xff   :  { %v400_v14 = vld [vmem:[#allocation1 + $0x2] ss:$4 sm:$0xff] }
 0x100   :  { %404 = vst.sshfl [vmem:[#allocation1] sm:$0xff pattern:$0x73625140] %v4043_v8 }
 0x101   :  { %405 = vst.sshfl [vmem:[#allocation1 + $0x8] sm:$0xff pattern:$0x73625140] %v4031_v13 }
 0x102   :  { %406 = vst.sshfl [vmem:[#allocation1 + $0x10] sm:$0xff pattern:$0x73625140] %v4036_v6 }
 0x103   :  { %403 = vst [vmem:[#allocation2 + $0x24] sm:$0x3f] %v400_v14 }
 0x109   :  { %v408_v15 = vld [vmem:[#allocation1 + $0x2] ss:$4 sm:$0xff] }
 0x10a   :  { %412 = vst.sshfl [vmem:[#allocation1] sm:$0xff pattern:$0x73625140] %v3985_v3  ;;  %v516_v3 = vpop.f32.mrf.mxu3 }
 0x10b   :  { %413 = vst.sshfl [vmem:[#allocation1 + $0x8] sm:$0xff pattern:$0x73625140] %v3991_v5 }
 0x10c   :  { %414 = vst.sshfl [vmem:[#allocation1 + $0x10] sm:$0xff pattern:$0x73625140] %v4001_v12 }
 0x10d   :  { %411 = vst [vmem:[#allocation3 + $0x24] sm:$0x3f] %v408_v15 }
 0x113   :  { %v416_v4 = vld [vmem:[#allocation1 + $0x3] ss:$4 sm:$0xff] }
 0x114   :  { %420 = vst.sshfl [vmem:[#allocation1] sm:$0xff pattern:$0x73625140] %v4043_v8 }
 0x115   :  { %421 = vst.sshfl [vmem:[#allocation1 + $0x8] sm:$0xff pattern:$0x73625140] %v4031_v13 }
 0x116   :  { %422 = vst.sshfl [vmem:[#allocation1 + $0x10] sm:$0xff pattern:$0x73625140] %v4036_v6 }
 0x117   :  { %419 = vst [vmem:[#allocation2 + $0x2a] sm:$0x3f] %v416_v4 }
 0x11d   :  { %v424_v0 = vld [vmem:[#allocation1 + $0x3] ss:$4 sm:$0xff] }
 0x11e   :  { %427 = vst [vmem:[#allocation3 + $0x2a] sm:$0x3f] %v424_v0 }
 0x125   :  { %v477_v49 = vld [vmem:[#allocation3 + $0x2a] sm:$0x3f] }
 0x126   :  { %v478_v61 = vadd.f32 %v477_v49, %v476_v2 }
 0x128   :  { %v539_v60 = vadd.f32 %v496_v7, %v478_v61  ;;  %v560_v5 = vrot.slane %v478_v61, 2  ;;  %v583_v44 = vrot.slane %v478_v61, 4  ;;  %v597_v61 = vld [vmem:[#allocation3 + $0x24] sm:$0x3f] }
 0x12a   :  { %v3131_v62 = vmul.f32 -1.442695, %v539_v60  ;;  %v562_v12 = vadd.f32 %v560_v5, %v516_v3 }
 0x12c   :  { %3196 = vpow2.f32 %v3131_v62  ;;  %v3132_v63 = vmul.f32 -1.442695, %v562_v12  ;;  %v536_v62 = vpop.f32.mrf.mxu0 }
 0x12e   :  { %3198 = vpow2.f32 %v3132_v63 }
 0x132   :  { %v3197_v8 = vpop.eup %3196 }
 0x133   :  { %v543_v1 = vadd.f32 1.0, %v3197_v8 }
 0x134   :  { %v3199_v13 = vpop.eup %3198 }
 0x135   :  { %3200 = vrcp.f32 %v543_v1  ;;  %v566_v6 = vadd.f32 1.0, %v3199_v13  ;;  %v555_v2 = vand.u32 2147483648, %v543_v1  ;;  %v553_v60 = vand.u32 2147483647, %v543_v1 }
 0x136   :  { %vm549_vm4 = vweird.f32 %v543_v1 }
 0x137   :  { %3202 = vrcp.f32 %v566_v6  ;;  %v556_v12 = vor.u32 1.1754944e-38, %v555_v2  ;;  %vm554_vm6 = vcmp.eq.f32.partialorder %v553_v60, 8.507059e+37  ;;  %v578_v46 = vand.u32 2147483648, %v566_v6 }
 0x138   :  { %vm572_vm8 = vweird.f32 %v566_v6 }
 0x139   :  { %v579_v48 = vor.u32 1.1754944e-38, %v578_v46  ;;  %v5436_v46 = vld [vmem:[#allocation26_spill] sm:$0xff] }
 0x13b   :  { %v3201_v14 = vpop.eup %3200 }
 0x13c   :  { %v545_v15 = vmul.f32 %v3201_v14, %v543_v1  ;;  %vm550_vm3 = vweird.f32 %v3201_v14 }
 0x13d   :  { %v3203_v4 = vpop.eup %3202  ;;  %vm551_vm5 = vmor %vm549_vm4, %vm550_vm3 }
 0x13e   :  { %v568_v0 = vmul.f32 %v3203_v4, %v566_v6  ;;  %v546_v51 = vsub.f32 1.0, %v545_v15  ;;  %vm573_vm7 = vweird.f32 %v3203_v4  ;;  %v576_v15 = vand.u32 2147483647, %v566_v6  ;;  %v596_v6 = vld [vmem:[#allocation2 + $0x6] sm:$0x3f] }
 0x13f   :  { %vm574_vm9 = vmor %vm572_vm8, %vm573_vm7 }
 0x140   :  { %v569_v49 = vsub.f32 1.0, %v568_v0  ;;  %v547_v7 = vmul.f32 %v3201_v14, %v546_v51  ;;  %vm577_vm10 = vcmp.eq.f32.partialorder %v576_v15, 8.507059e+37 }
 0x142   :  { %v570_v3 = vmul.f32 %v3203_v4, %v569_v49  ;;  %v548_v5 = vadd.f32 %v3201_v14, %v547_v7 }
 0x144   :  { %v552_v63 = vsel %vm551_vm5, %v3201_v14, %v548_v5  ;;  %v571_v13 = vadd.f32 %v3203_v4, %v570_v3 }
 0x145   :  { %v557_v8 = vsel %vm554_vm6, %v556_v12, %v552_v63 }
 0x146   :  { %v582_v50 = vmul.f32 %v557_v8, %v536_v62  ;;  %v575_v0 = vsel %vm574_vm9, %v3203_v4, %v571_v13  ;;  %v598_v4 = vadd.f32 %v597_v61, %v596_v6 }
 0x147   :  { %v580_v1 = vsel %vm577_vm10, %v579_v48, %v575_v0  ;;  %v5437_v48 = vld [vmem:[#allocation21_spill] sm:$0xff] }
 0x148   :  { %v585_v51 = vadd.f32 %v583_v44, %v582_v50  ;;  %v587_v49 = vsub.f32 1.0, %v580_v1  ;;  %v589_v14 = vmul.f32 0.0, %v580_v1  ;;  %v5435_v44 = vld [vmem:[#allocation23_spill] sm:$0xff]  ;;  %v5438_v50 = vld [vmem:[#allocation24_spill] sm:$0xff]  ;;  %v680_v12 = vrot.slane %v598_v4, 2 }
 0x14a   :  { %3204 = vtanh.f32 %v585_v51 }
 0x150   :  { %v3205_v7 = vpop.eup %3204 }
 0x151   :  { %v588_v2 = vmul.f32 %v3205_v7, %v587_v49 }
 0x153   :  { %v4096_v60 = vadd.f32 %v589_v14, %v588_v2 }
 0x155   :  { %592 = vst.msk [vmem:[#allocation4] sm:$0x3] %vm591_vm11, %v4096_v60  ;;  %615 = vmatmul.f32.vlgmr.msra.gmra.mxu1 %v4096_v60  ;;  %635 = vmatmul.f32.vlgmr.msra.gmra.mxu2 %v4096_v60 }
 0x156   :  { %595 = vst.msk [vmem:[#allocation4 + $0xe] sm:$0x3] %vm594_vm12, %v4096_v60  ;;  %655 = vmatmul.f32.vlgmr.msra.gmra.mxu3 %v4096_v60  ;;  %877 = vmatpush.msra.mxu1 %v3751_v20 }
 0x157   :  { %956 = vmatpush.msra.mxu2 %v3714_v9  ;;  %976 = vmatpush.msra.mxu3 %v3739_v17  ;;  %v5432_v9 = vld [vmem:[#allocation22_spill] sm:$0xff] }
 0x158   :  { %878 = vmatpush.msra.mxu1 %v3753_v21 }
 0x159   :  { %957 = vmatpush.msra.mxu2 %v3720_v10  ;;  %977 = vmatpush.msra.mxu3 %v3748_v19  ;;  %v5433_v10 = vld [vmem:[#allocation25_spill] sm:$0xff] }
 0x15a   :  { %879 = vmatpush.msra.mxu1 %v3762_v24 }
 0x15b   :  { %958 = vmatpush.msra.mxu2 %v3723_v11  ;;  %978 = vmatpush.msra.mxu3 %v3759_v23  ;;  %v5434_v11 = vld [vmem:[#allocation20_spill] sm:$0xff] }
 0x15c   :  { %880 = vmatpush.msra.mxu1 %v3781_v29 }
 0x15d   :  { %959 = vmatpush.msra.mxu2 %v3734_v16  ;;  %979 = vmatpush.msra.mxu3 %v3769_v26 }
 0x15e   :  { %881 = vmatpush.msra.mxu1 %v3792_v32 }
 0x15f   :  { %960 = vmatpush.msra.mxu2 %v3745_v18  ;;  %980 = vmatpush.msra.mxu3 %v3778_v28 }
 0x160   :  { %882 = vmatpush.msra.mxu1 %v3801_v35 }
 0x161   :  { %961 = vmatpush.msra.mxu2 %v3756_v22  ;;  %981 = vmatpush.msra.mxu3 %v3789_v31 }
 0x162   :  { %883 = vmatpush.msra.mxu1 %v3917_v52 }
 0x163   :  { %962 = vmatpush.msra.mxu2 %v3766_v25  ;;  %982 = vmatpush.msra.mxu3 %v3798_v34 }
 0x164   :  { %884 = vmatpush.msra.mxu1 %v3921_v53 }
 0x165   :  { %963 = vmatpush.msra.mxu2 %v3774_v27  ;;  %983 = vmatpush.msra.mxu3 %v3808_v37 }
 0x166   :  { %885 = vmatpush.msra.mxu1 %v3926_v54 }
 0x167   :  { %964 = vmatpush.msra.mxu2 %v3785_v30  ;;  %984 = vmatpush.msra.mxu3 %v3818_v39 }
 0x168   :  { %886 = vmatpush.msra.mxu1 %v3931_v55 }
 0x169   :  { %965 = vmatpush.msra.mxu2 %v3795_v33  ;;  %985 = vmatpush.msra.mxu3 %v3826_v41 }
 0x16a   :  { %887 = vmatpush.msra.mxu1 %v3936_v56 }
 0x16b   :  { %966 = vmatpush.msra.mxu2 %v3805_v36  ;;  %986 = vmatpush.msra.mxu3 %v3833_v43 }
 0x16c   :  { %888 = vmatpush.msra.mxu1 %v3941_v57 }
 0x16d   :  { %967 = vmatpush.msra.mxu2 %v3813_v38  ;;  %987 = vmatpush.msra.mxu3 %v3840_v45 }
 0x16e   :  { %889 = vmatpush.msra.mxu1 %v3946_v58 }
 0x16f   :  { %968 = vmatpush.msra.mxu2 %v3824_v40  ;;  %988 = vmatpush.msra.mxu3 %v3847_v47 }
 0x170   :  { %890 = vmatpush.msra.mxu1 %v3951_v59 }
 0x171   :  { %969 = vmatpush.msra.mxu2 %v3831_v42  ;;  %989 = vmatpush.msra.mxu3 %v5432_v9 }
 0x172   :  { %891 = vmatpush.msra.mxu1 %v5433_v10 }
 0x173   :  { %970 = vmatpush.msra.mxu2 %v5434_v11  ;;  %990 = vmatpush.msra.mxu3 %v5435_v44 }
 0x174   :  { %892 = vmatpush.msra.mxu1 %v5436_v46 }
 0x175   :  { %971 = vmatpush.msra.mxu2 %v5437_v48  ;;  %991 = vmatpush.msra.mxu3 %v5438_v50 }
 0x1d2   :  { %v616_v3 = vpop.f32.mrf.mxu1 }
 0x1d3   :  { %v659_v5 = vadd.f32 %v616_v3, %v598_v4 }
 0x1d5   :  { %v3133_v62 = vmul.f32 -1.442695, %v659_v5 }
 0x1d7   :  { %3206 = vpow2.f32 %v3133_v62 }
 0x1d8   :  { %v636_v63 = vpop.f32.mrf.mxu2 }
 0x1d9   :  { %v682_v8 = vadd.f32 %v680_v12, %v636_v63 }
 0x1db   :  { %v3134_v13 = vmul.f32 -1.442695, %v682_v8 }
 0x1dd   :  { %v3207_v15 = vpop.eup %3206  ;;  %3208 = vpow2.f32 %v3134_v13  ;;  %v656_v13 = vpop.f32.mrf.mxu3 }
 0x1de   :  { %v663_v51 = vadd.f32 1.0, %v3207_v15 }
 0x1e0   :  { %3210 = vrcp.f32 %v663_v51  ;;  %v675_v14 = vand.u32 2147483648, %v663_v51  ;;  %v673_v6 = vand.u32 2147483647, %v663_v51  ;;  %vm669_vm14 = vweird.f32 %v663_v51 }
 0x1e2   :  { %v676_v12 = vor.u32 1.1754944e-38, %v675_v14  ;;  %vm674_vm1 = vcmp.eq.f32.partialorder %v673_v6, 8.507059e+37 }
 0x1e3   :  { %v3209_v0 = vpop.eup %3208 }
 0x1e4   :  { %v686_v1 = vadd.f32 1.0, %v3209_v0  ;;  %v703_v0 = vrot.slane %v598_v4, 4 }
 0x1e6   :  { %v3211_v49 = vpop.eup %3210  ;;  %3212 = vrcp.f32 %v686_v1  ;;  %v698_v48 = vand.u32 2147483648, %v686_v1  ;;  %v696_v46 = vand.u32 2147483647, %v686_v1  ;;  %vm692_vm4 = vweird.f32 %v686_v1 }
 0x1e7   :  { %v665_v7 = vmul.f32 %v3211_v49, %v663_v51  ;;  %vm670_vm13 = vweird.f32 %v3211_v49 }
 0x1e8   :  { %vm671_vm15 = vmor %vm669_vm14, %vm670_vm13  ;;  %v699_v11 = vor.u32 1.1754944e-38, %v698_v48  ;;  %vm697_vm6 = vcmp.eq.f32.partialorder %v696_v46, 8.507059e+37 }
 0x1e9   :  { %v666_v2 = vsub.f32 1.0, %v665_v7 }
 0x1eb   :  { %v667_v61 = vmul.f32 %v3211_v49, %v666_v2 }
 0x1ec   :  { %v3213_v3 = vpop.eup %3212 }
 0x1ed   :  { %v688_v5 = vmul.f32 %v3213_v3, %v686_v1  ;;  %v668_v62 = vadd.f32 %v3211_v49, %v667_v61  ;;  %vm693_vm3 = vweird.f32 %v3213_v3 }
 0x1ee   :  { %vm694_vm5 = vmor %vm692_vm4, %vm693_vm3 }
 0x1ef   :  { %v689_v63 = vsub.f32 1.0, %v688_v5  ;;  %v672_v8 = vsel %vm671_vm15, %v3211_v49, %v668_v62 }
 0x1f0   :  { %v677_v15 = vsel %vm674_vm1, %v676_v12, %v672_v8 }
 0x1f1   :  { %v690_v50 = vmul.f32 %v3213_v3, %v689_v63  ;;  %v702_v7 = vmul.f32 %v677_v15, %v656_v13 }
 0x1f3   :  { %v691_v2 = vadd.f32 %v3213_v3, %v690_v50  ;;  %v705_v44 = vadd.f32 %v703_v0, %v702_v7 }
 0x1f5   :  { %v695_v61 = vsel %vm694_vm5, %v3213_v3, %v691_v2  ;;  %3214 = vtanh.f32 %v705_v44  ;;  %v4174_v44 = vld [vmem:[#allocation7 + $0x138] sm:$0xff] }
 0x1f6   :  { %v700_v51 = vsel %vm697_vm6, %v699_v11, %v695_v61  ;;  %v4164_v11 = vld [vmem:[#allocation7 + $0x168] sm:$0xff] }
 0x1f7   :  { %v707_v14 = vsub.f32 1.0, %v700_v51  ;;  %v709_v5 = vmul.f32 %v700_v51, %v4096_v60  ;;  %v4169_v60 = vld [vmem:[#allocation7 + $0x150] sm:$0xff] }
 0x1fb   :  { %v3215_v49 = vpop.eup %3214 }
 0x1fc   :  { %v708_v6 = vmul.f32 %v3215_v49, %v707_v14  ;;  %v4227_v49 = vld [vmem:[#allocation7 + $0x178] sm:$0xff] }
 0x1fe   :  { %v4154_v4 = vadd.f32 %v709_v5, %v708_v6  ;;  %v4231_v6 = vld [vmem:[#allocation7 + $0x170] sm:$0xff]  ;;  %v4234_v5 = vld [vmem:[#allocation7 + $0x160] sm:$0xff] }
 0x200   :  { %712 = vst.msk [vmem:[#allocation4 + $0x2] sm:$0x3] %vm591_vm11, %v4154_v4  ;;  %734 = vmatmul.f32.vlgmr.msrb.gmra.mxu0 %v4154_v4  ;;  %754 = vmatmul.f32.vlgmr.msrb.gmra.mxu1 %v4154_v4 }
 0x201   :  { %714 = vst.msk [vmem:[#allocation4 + $0xc] sm:$0x3] %vm594_vm12, %v4154_v4  ;;  %774 = vmatmul.f32.vlgmr.msrb.gmra.mxu2 %v4154_v4  ;;  %996 = vmatpush.msrb.mxu0 %v3751_v20  ;;  %v5443_v20 = vld [vmem:[#allocation24_spill] sm:$0xff] }
 0x202   :  { %1073 = vmatpush.msrb.mxu1 %v4164_v11  ;;  %1093 = vmatpush.msrb.mxu2 %v3739_v17  ;;  %v5440_v17 = vld [vmem:[#allocation23_spill] sm:$0xff] }
 0x203   :  { %997 = vmatpush.msrb.mxu0 %v3753_v21  ;;  %v716_v21 = vld [vmem:[#allocation3 + $0x1e] sm:$0x3f] }
 0x204   :  { %1074 = vmatpush.msrb.mxu1 %v4169_v60  ;;  %1094 = vmatpush.msrb.mxu2 %v3748_v19  ;;  %v5442_v19 = vld [vmem:[#allocation21_spill] sm:$0xff] }
 0x205   :  { %998 = vmatpush.msrb.mxu0 %v3762_v24 }
 0x206   :  { %1075 = vmatpush.msrb.mxu1 %v4174_v44  ;;  %1095 = vmatpush.msrb.mxu2 %v3759_v23 }
 0x207   :  { %999 = vmatpush.msrb.mxu0 %v3781_v29 }
 0x208   :  { %1076 = vmatpush.msrb.mxu1 %v3734_v16  ;;  %1096 = vmatpush.msrb.mxu2 %v3769_v26  ;;  %v5439_v16 = vld [vmem:[#allocation20_spill] sm:$0xff] }
 0x209   :  { %1000 = vmatpush.msrb.mxu0 %v3792_v32 }
 0x20a   :  { %1077 = vmatpush.msrb.mxu1 %v3745_v18  ;;  %1097 = vmatpush.msrb.mxu2 %v3778_v28  ;;  %v5441_v18 = vld [vmem:[#allocation26_spill] sm:$0xff] }
 0x20b   :  { %1001 = vmatpush.msrb.mxu0 %v3801_v35 }
 0x20c   :  { %1078 = vmatpush.msrb.mxu1 %v3756_v22  ;;  %1098 = vmatpush.msrb.mxu2 %v3789_v31  ;;  %v715_v22 = vld [vmem:[#allocation2 + $0xc] sm:$0x3f] }
 0x20d   :  { %1002 = vmatpush.msrb.mxu0 %v3917_v52  ;;  %v717_v23 = vadd.f32 %v716_v21, %v715_v22  ;;  %v4254_v21 = vld [vmem:[#allocation7 + $0x128] sm:$0xff]  ;;  %v4257_v22 = vld [vmem:[#allocation7 + $0x118] sm:$0xff] }
 0x20e   :  { %1079 = vmatpush.msrb.mxu1 %v3766_v25  ;;  %1099 = vmatpush.msrb.mxu2 %v3798_v34 }
 0x20f   :  { %1003 = vmatpush.msrb.mxu0 %v3921_v53  ;;  %v799_v24 = vrot.slane %v717_v23, 2  ;;  %v822_v12 = vrot.slane %v717_v23, 4 }
 0x210   :  { %1080 = vmatpush.msrb.mxu1 %v3774_v27  ;;  %1100 = vmatpush.msrb.mxu2 %v3808_v37 }
 0x211   :  { %1004 = vmatpush.msrb.mxu0 %v3926_v54 }
 0x212   :  { %1081 = vmatpush.msrb.mxu1 %v3785_v30  ;;  %1101 = vmatpush.msrb.mxu2 %v3818_v39 }
 0x213   :  { %1005 = vmatpush.msrb.mxu0 %v3931_v55 }
 0x214   :  { %1082 = vmatpush.msrb.mxu1 %v3795_v33  ;;  %1102 = vmatpush.msrb.mxu2 %v3826_v41 }
 0x215   :  { %1006 = vmatpush.msrb.mxu0 %v3936_v56 }
 0x216   :  { %1083 = vmatpush.msrb.mxu1 %v3805_v36  ;;  %1103 = vmatpush.msrb.mxu2 %v3833_v43 }
 0x217   :  { %1007 = vmatpush.msrb.mxu0 %v3941_v57 }
 0x218   :  { %1084 = vmatpush.msrb.mxu1 %v3813_v38  ;;  %1104 = vmatpush.msrb.mxu2 %v3840_v45 }
 0x219   :  { %1008 = vmatpush.msrb.mxu0 %v3946_v58 }
 0x21a   :  { %1085 = vmatpush.msrb.mxu1 %v3824_v40  ;;  %1105 = vmatpush.msrb.mxu2 %v3847_v47 }
 0x21b   :  { %1009 = vmatpush.msrb.mxu0 %v3951_v59 }
 0x21c   :  { %1086 = vmatpush.msrb.mxu1 %v3831_v42  ;;  %1106 = vmatpush.msrb.mxu2 %v5432_v9 }
 0x21d   :  { %1010 = vmatpush.msrb.mxu0 %v5433_v10 }
 0x21e   :  { %1087 = vmatpush.msrb.mxu1 %v5439_v16  ;;  %1107 = vmatpush.msrb.mxu2 %v5440_v17  ;;  %v4241_v16 = vld [vmem:[#allocation7 + $0x148] sm:$0xff]  ;;  %v4245_v17 = vld [vmem:[#allocation7 + $0x140] sm:$0xff] }
 0x21f   :  { %1011 = vmatpush.msrb.mxu0 %v5441_v18 }
 0x220   :  { %1088 = vmatpush.msrb.mxu1 %v5442_v19  ;;  %1108 = vmatpush.msrb.mxu2 %v5443_v20  ;;  %v4248_v19 = vld [vmem:[#allocation7 + $0x130] sm:$0xff]  ;;  %v4251_v20 = vld [vmem:[#allocation7 + $0x120] sm:$0xff] }
 0x27d   :  { %v735_v25 = vpop.f32.mrf.mxu0  ;;  %v755_v26 = vpop.f32.mrf.mxu1 }
 0x27e   :  { %v778_v27 = vadd.f32 %v735_v25, %v717_v23  ;;  %v801_v28 = vadd.f32 %v799_v24, %v755_v26  ;;  %v4260_v23 = vld [vmem:[#allocation7 + $0x108] sm:$0xff]  ;;  %v4263_v24 = vld [vmem:[#allocation7 + $0x110] sm:$0xff]  ;;  %v4266_v25 = vld [vmem:[#allocation7 + $0x100] sm:$0xff] }
 0x27f   :  { %v4269_v26 = vld [vmem:[#allocation7 + $0xf0] sm:$0xff] }
 0x280   :  { %v3135_v29 = vmul.f32 -1.442695, %v778_v27  ;;  %v3136_v30 = vmul.f32 -1.442695, %v801_v28  ;;  %v4272_v27 = vld [vmem:[#allocation7 + $0xf8] sm:$0xff] }
 0x281   :  { %v4276_v28 = vld [vmem:[#allocation7 + $0xd8] sm:$0xff] }
 0x282   :  { %3216 = vpow2.f32 %v3135_v29  ;;  %v4279_v29 = vld [vmem:[#allocation7 + $0xe0] sm:$0xff] }
 0x283   :  { %3218 = vpow2.f32 %v3136_v30  ;;  %v4283_v30 = vld [vmem:[#allocation7 + $0xc0] sm:$0xff] }
 0x284   :  { %v775_v48 = vpop.f32.mrf.mxu2 }
 0x288   :  { %v3217_v31 = vpop.eup %3216 }
 0x289   :  { %v3219_v32 = vpop.eup %3218  ;;  %v782_v33 = vadd.f32 1.0, %v3217_v31  ;;  %v4286_v31 = vld [vmem:[#allocation7 + $0xc8] sm:$0xff] }
 0x28a   :  { %v805_v34 = vadd.f32 1.0, %v3219_v32  ;;  %v4293_v32 = vld [vmem:[#allocation7 + $0xb0] sm:$0xff] }
 0x28b   :  { %3220 = vrcp.f32 %v782_v33  ;;  %v794_v41 = vand.u32 2147483648, %v782_v33  ;;  %v792_v43 = vand.u32 2147483647, %v782_v33  ;;  %vm788_vm8 = vweird.f32 %v782_v33 }
 0x28c   :  { %3222 = vrcp.f32 %v805_v34  ;;  %v817_v3 = vand.u32 2147483648, %v805_v34  ;;  %vm811_vm14 = vweird.f32 %v805_v34  ;;  %v815_v63 = vand.u32 2147483647, %v805_v34 }
 0x28d   :  { %v795_v9 = vor.u32 1.1754944e-38, %v794_v41  ;;  %vm793_vm10 = vcmp.eq.f32.partialorder %v792_v43, 8.507059e+37 }
 0x28e   :  { %v818_v15 = vor.u32 1.1754944e-38, %v817_v3  ;;  %vm816_vm1 = vcmp.eq.f32.partialorder %v815_v63, 8.507059e+37 }
 0x291   :  { %v3221_v35 = vpop.eup %3220 }
 0x292   :  { %v3223_v36 = vpop.eup %3222  ;;  %v784_v37 = vmul.f32 %v3221_v35, %v782_v33  ;;  %vm789_vm7 = vweird.f32 %v3221_v35  ;;  %v4300_v33 = vld [vmem:[#allocation7 + $0x98] sm:$0xff] }
 0x293   :  { %v807_v38 = vmul.f32 %v3223_v36, %v805_v34  ;;  %vm790_vm9 = vmor %vm788_vm8, %vm789_vm7  ;;  %vm812_vm13 = vweird.f32 %v3223_v36  ;;  %v4307_v34 = vld [vmem:[#allocation7 + $0x80] sm:$0xff] }
 0x294   :  { %v785_v39 = vsub.f32 1.0, %v784_v37  ;;  %vm813_vm15 = vmor %vm811_vm14, %vm812_vm13  ;;  %v4328_v37 = vld [vmem:[#allocation7 + $0x38] sm:$0xff] }
 0x295   :  { %v808_v40 = vsub.f32 1.0, %v807_v38  ;;  %v4335_v38 = vld [vmem:[#allocation7 + $0x20] sm:$0xff] }
 0x296   :  { %v786_v42 = vmul.f32 %v3221_v35, %v785_v39  ;;  %v4342_v39 = vld [vmem:[#allocation7 + $0x8] sm:$0xff] }
 0x297   :  { %v809_v45 = vmul.f32 %v3223_v36, %v808_v40  ;;  %v834_v40 = vld [vmem:[#allocation2 + $0x12] sm:$0x3f] }
 0x298   :  { %v787_v47 = vadd.f32 %v3221_v35, %v786_v42 }
 0x299   :  { %v810_v1 = vadd.f32 %v3223_v36, %v809_v45 }
 0x29a   :  { %v791_v46 = vsel %vm790_vm9, %v3221_v35, %v787_v47  ;;  %v4314_v35 = vld [vmem:[#allocation7 + $0x68] sm:$0xff] }
 0x29b   :  { %v796_v50 = vsel %vm793_vm10, %v795_v9, %v791_v46  ;;  %v814_v13 = vsel %vm813_vm15, %v3223_v36, %v810_v1  ;;  %v4321_v36 = vld [vmem:[#allocation7 + $0x50] sm:$0xff] }
 0x29c   :  { %v821_v62 = vmul.f32 %v796_v50, %v775_v48  ;;  %v819_v0 = vsel %vm816_vm1, %v818_v15, %v814_v13 }
 0x29d   :  { %v826_v7 = vsub.f32 1.0, %v819_v0  ;;  %v828_v51 = vmul.f32 %v819_v0, %v4154_v4  ;;  %v4238_v4 = vld [vmem:[#allocation7 + $0x158] sm:$0xff] }
 0x29e   :  { %v824_v8 = vadd.f32 %v822_v12, %v821_v62 }
 0x2a0   :  { %3224 = vtanh.f32 %v824_v8 }
 0x2a6   :  { %v3225_v2 = vpop.eup %3224 }
 0x2a7   :  { %v827_v61 = vmul.f32 %v3225_v2, %v826_v7 }
 0x2a9   :  { %v4218_v14 = vadd.f32 %v828_v51, %v827_v61 }
 0x2ab   :  { %831 = vst.msk [vmem:[#allocation4 + $0x4] sm:$0x3] %vm591_vm11, %v4218_v14  ;;  %853 = vmatmul.f32.vlgmr.msrb.gmra.mxu3 %v4218_v14  ;;  %873 = vmatmul.f32.vlgmr.msra.gmra.mxu0 %v4218_v14 }
 0x2ac   :  { %833 = vst.msk [vmem:[#allocation4 + $0xa] sm:$0x3] %vm594_vm12, %v4218_v14  ;;  %893 = vmatmul.f32.vlgmr.msra.gmra.mxu1 %v4218_v14  ;;  %1113 = vmatpush.msrb.mxu3 %v4227_v49 }
 0x2ad   :  { %1190 = vmatpush.msra.mxu0 %v4164_v11  ;;  %1210 = vmatpush.msra.mxu1 %v4231_v6 }
 0x2ae   :  { %1114 = vmatpush.msrb.mxu3 %v4234_v5 }
 0x2af   :  { %1191 = vmatpush.msra.mxu0 %v4169_v60  ;;  %1211 = vmatpush.msra.mxu1 %v4238_v4 }
 0x2b0   :  { %1115 = vmatpush.msrb.mxu3 %v4241_v16 }
 0x2b1   :  { %1192 = vmatpush.msra.mxu0 %v4174_v44  ;;  %1212 = vmatpush.msra.mxu1 %v4245_v17 }
 0x2b2   :  { %1116 = vmatpush.msrb.mxu3 %v4248_v19 }
 0x2b3   :  { %1193 = vmatpush.msra.mxu0 %v4251_v20  ;;  %1213 = vmatpush.msra.mxu1 %v4254_v21 }
 0x2b4   :  { %1117 = vmatpush.msrb.mxu3 %v4257_v22 }
 0x2b5   :  { %1194 = vmatpush.msra.mxu0 %v4260_v23  ;;  %1214 = vmatpush.msra.mxu1 %v4263_v24 }
 0x2b6   :  { %1118 = vmatpush.msrb.mxu3 %v4266_v25 }
 0x2b7   :  { %1195 = vmatpush.msra.mxu0 %v4269_v26  ;;  %1215 = vmatpush.msra.mxu1 %v4272_v27 }
 0x2b8   :  { %1119 = vmatpush.msrb.mxu3 %v3917_v52  ;;  %v4290_v52 = vld [vmem:[#allocation7 + $0xa8] sm:$0xff] }
 0x2b9   :  { %1196 = vmatpush.msra.mxu0 %v4276_v28  ;;  %1216 = vmatpush.msra.mxu1 %v4279_v29 }
 0x2ba   :  { %1120 = vmatpush.msrb.mxu3 %v3921_v53  ;;  %v4297_v53 = vld [vmem:[#allocation7 + $0x90] sm:$0xff] }
 0x2bb   :  { %1197 = vmatpush.msra.mxu0 %v4283_v30  ;;  %1217 = vmatpush.msra.mxu1 %v4286_v31 }
 0x2bc   :  { %1121 = vmatpush.msrb.mxu3 %v3926_v54  ;;  %v4304_v54 = vld [vmem:[#allocation7 + $0x78] sm:$0xff] }
 0x2bd   :  { %1198 = vmatpush.msra.mxu0 %v4290_v52  ;;  %1218 = vmatpush.msra.mxu1 %v4293_v32 }
 0x2be   :  { %1122 = vmatpush.msrb.mxu3 %v3931_v55  ;;  %v4311_v55 = vld [vmem:[#allocation7 + $0x60] sm:$0xff] }
 0x2bf   :  { %1199 = vmatpush.msra.mxu0 %v4297_v53  ;;  %1219 = vmatpush.msra.mxu1 %v4300_v33 }
 0x2c0   :  { %1123 = vmatpush.msrb.mxu3 %v3936_v56  ;;  %v4318_v56 = vld [vmem:[#allocation7 + $0x48] sm:$0xff] }
 0x2c1   :  { %1200 = vmatpush.msra.mxu0 %v4304_v54  ;;  %1220 = vmatpush.msra.mxu1 %v4307_v34 }
 0x2c2   :  { %1124 = vmatpush.msrb.mxu3 %v3941_v57  ;;  %v4325_v57 = vld [vmem:[#allocation7 + $0x30] sm:$0xff] }
 0x2c3   :  { %1201 = vmatpush.msra.mxu0 %v4311_v55  ;;  %1221 = vmatpush.msra.mxu1 %v4314_v35 }
 0x2c4   :  { %1125 = vmatpush.msrb.mxu3 %v3946_v58  ;;  %v4332_v58 = vld [vmem:[#allocation7 + $0x18] sm:$0xff] }
 0x2c5   :  { %1202 = vmatpush.msra.mxu0 %v4318_v56  ;;  %1222 = vmatpush.msra.mxu1 %v4321_v36 }
 0x2c6   :  { %1126 = vmatpush.msrb.mxu3 %v3951_v59  ;;  %v4339_v59 = vld [vmem:[#allocation7] sm:$0xff] }
 0x2c7   :  { %1203 = vmatpush.msra.mxu0 %v4325_v57  ;;  %1223 = vmatpush.msra.mxu1 %v4328_v37 }
 0x2c8   :  { %1127 = vmatpush.msrb.mxu3 %v5433_v10  ;;  %v835_v10 = vld [vmem:[#allocation3 + $0x18] sm:$0x3f] }
 0x2c9   :  { %1204 = vmatpush.msra.mxu0 %v4332_v58  ;;  %1224 = vmatpush.msra.mxu1 %v4335_v38  ;;  %v836_v41 = vadd.f32 %v835_v10, %v834_v40 }
 0x2ca   :  { %1128 = vmatpush.msrb.mxu3 %v5441_v18 }
 0x2cb   :  { %1205 = vmatpush.msra.mxu0 %v4339_v59  ;;  %1225 = vmatpush.msra.mxu1 %v4342_v39  ;;  %v918_v42 = vrot.slane %v836_v41, 2 }
 0x328   :  { %v874_v43 = vpop.f32.mrf.mxu0 }
 0x329   :  { %v920_v45 = vadd.f32 %v918_v42, %v874_v43  ;;  %v894_v43 = vpop.f32.mrf.mxu1 }
 0x32b   :  { %v3138_v47 = vmul.f32 -1.442695, %v920_v45 }
 0x32d   :  { %3226 = vpow2.f32 %v3138_v47 }
 0x32e   :  { %v854_v9 = vpop.f32.mrf.mxu3 }
 0x32f   :  { %v897_v46 = vadd.f32 %v854_v9, %v836_v41  ;;  %v941_v9 = vrot.slane %v836_v41, 4 }
 0x331   :  { %v3137_v48 = vmul.f32 -1.442695, %v897_v46 }
 0x333   :  { %v3227_v18 = vpop.eup %3226  ;;  %3228 = vpow2.f32 %v3137_v48 }
 0x334   :  { %v924_v50 = vadd.f32 1.0, %v3227_v18 }
 0x336   :  { %3230 = vrcp.f32 %v924_v50  ;;  %v936_v47 = vand.u32 2147483648, %v924_v50  ;;  %vm930_vm8 = vweird.f32 %v924_v50  ;;  %v934_v48 = vand.u32 2147483647, %v924_v50 }
 0x338   :  { %vm935_vm10 = vcmp.eq.f32.partialorder %v934_v48, 8.507059e+37 }
 0x339   :  { %v3229_v1 = vpop.eup %3228 }
 0x33a   :  { %v901_v3 = vadd.f32 1.0, %v3229_v1 }
 0x33c   :  { %3232 = vrcp.f32 %v901_v3  ;;  %v3231_v62 = vpop.eup %3230  ;;  %v913_v0 = vand.u32 2147483648, %v901_v3  ;;  %v911_v2 = vand.u32 2147483647, %v901_v3  ;;  %vm907_vm4 = vweird.f32 %v901_v3 }
 0x33d   :  { %v926_v12 = vmul.f32 %v3231_v62, %v924_v50  ;;  %vm931_vm7 = vweird.f32 %v3231_v62 }
 0x33e   :  { %v914_v40 = vor.u32 1.1754944e-38, %v913_v0  ;;  %vm912_vm6 = vcmp.eq.f32.partialorder %v911_v2, 8.507059e+37  ;;  %vm932_vm9 = vmor %vm930_vm8, %vm931_vm7 }
 0x33f   :  { %v927_v13 = vsub.f32 1.0, %v926_v12  ;;  %v937_v12 = vor.u32 1.1754944e-38, %v936_v47 }
 0x341   :  { %v928_v61 = vmul.f32 %v3231_v62, %v927_v13 }
 0x342   :  { %v3233_v63 = vpop.eup %3232 }
 0x343   :  { %v903_v8 = vmul.f32 %v3233_v63, %v901_v3  ;;  %vm908_vm3 = vweird.f32 %v3233_v63  ;;  %v929_v42 = vadd.f32 %v3231_v62, %v928_v61 }
 0x344   :  { %vm909_vm5 = vmor %vm907_vm4, %vm908_vm3 }
 0x345   :  { %v904_v15 = vsub.f32 1.0, %v903_v8  ;;  %v933_v1 = vsel %vm932_vm9, %v3231_v62, %v929_v42 }
 0x346   :  { %v938_v3 = vsel %vm935_vm10, %v937_v12, %v933_v1 }
 0x347   :  { %v905_v7 = vmul.f32 %v3233_v63, %v904_v15  ;;  %v945_v8 = vsub.f32 1.0, %v938_v3  ;;  %v947_v15 = vmul.f32 %v938_v3, %v4218_v14  ;;  %v4388_v14 = vld [vmem:[#allocation7 + $0xa0] sm:$0xff] }
 0x349   :  { %v906_v51 = vadd.f32 %v3233_v63, %v905_v7 }
 0x34b   :  { %v910_v10 = vsel %vm909_vm5, %v3233_v63, %v906_v51 }
 0x34c   :  { %v915_v45 = vsel %vm912_vm6, %v914_v40, %v910_v10 }
 0x34d   :  { %v940_v46 = vmul.f32 %v915_v45, %v894_v43 }
 0x34f   :  { %v943_v18 = vadd.f32 %v941_v9, %v940_v46 }
 0x351   :  { %3234 = vtanh.f32 %v943_v18 }
 0x357   :  { %v3235_v13 = vpop.eup %3234 }
 0x358   :  { %v946_v63 = vmul.f32 %v3235_v13, %v945_v8 }
 0x35a   :  { %v4346_v0 = vadd.f32 %v947_v15, %v946_v63 }
 0x35c   :  { %950 = vst.msk [vmem:[#allocation4 + $0x6] sm:$0x3] %vm591_vm11, %v4346_v0  ;;  %972 = vmatmul.f32.vlgmr.msra.gmra.mxu2 %v4346_v0  ;;  %992 = vmatmul.f32.vlgmr.msra.gmra.mxu3 %v4346_v0 }
 0x35d   :  { %952 = vst.msk [vmem:[#allocation4 + $0x8] sm:$0x3] %vm594_vm12, %v4346_v0  ;;  %1012 = vmatmul.f32.vlgmr.msrb.gmra.mxu0 %v4346_v0  ;;  %1230 = vmatpush.msra.mxu2 %v4227_v49 }
 0x35e   :  { %1307 = vmatpush.msra.mxu3 %v4164_v11  ;;  %1327 = vmatpush.msrb.mxu0 %v4231_v6  ;;  %v4373_v11 = vld [vmem:[#allocation7 + $0xe8] sm:$0xff] }
 0x35f   :  { %1231 = vmatpush.msra.mxu2 %v4234_v5  ;;  %v4393_v6 = vld [vmem:[#allocation7 + $0x88] sm:$0xff] }
 0x360   :  { %1308 = vmatpush.msra.mxu3 %v4169_v60  ;;  %1328 = vmatpush.msrb.mxu0 %v4238_v4  ;;  %v4378_v60 = vld [vmem:[#allocation7 + $0xd0] sm:$0xff] }
 0x361   :  { %1232 = vmatpush.msra.mxu2 %v4241_v16  ;;  %v4398_v4 = vld [vmem:[#allocation7 + $0x70] sm:$0xff] }
 0x362   :  { %1309 = vmatpush.msra.mxu3 %v4174_v44  ;;  %1329 = vmatpush.msrb.mxu0 %v4245_v17  ;;  %v4383_v44 = vld [vmem:[#allocation7 + $0xb8] sm:$0xff] }
 0x363   :  { %1233 = vmatpush.msra.mxu2 %v4248_v19  ;;  %v4403_v17 = vld [vmem:[#allocation7 + $0x58] sm:$0xff] }
 0x364   :  { %1310 = vmatpush.msra.mxu3 %v4251_v20  ;;  %1330 = vmatpush.msrb.mxu0 %v4254_v21  ;;  %v4408_v20 = vld [vmem:[#allocation7 + $0x40] sm:$0xff]  ;;  %v4413_v21 = vld [vmem:[#allocation7 + $0x28] sm:$0xff] }
 0x365   :  { %1234 = vmatpush.msra.mxu2 %v4257_v22 }
 0x366   :  { %1311 = vmatpush.msra.mxu3 %v4260_v23  ;;  %1331 = vmatpush.msrb.mxu0 %v4263_v24  ;;  %v4418_v23 = vld [vmem:[#allocation7 + $0x10] sm:$0xff]  ;;  %v954_v24 = vld [vmem:[#allocation3 + $0x12] sm:$0x3f] }
 0x367   :  { %1235 = vmatpush.msra.mxu2 %v4266_v25 }
 0x368   :  { %1312 = vmatpush.msra.mxu3 %v4269_v26  ;;  %1332 = vmatpush.msrb.mxu0 %v4272_v27  ;;  %v953_v26 = vld [vmem:[#allocation2 + $0x18] sm:$0x3f] }
 0x369   :  { %1236 = vmatpush.msra.mxu2 %v4373_v11  ;;  %v955_v27 = vadd.f32 %v954_v24, %v953_v26 }
 0x36a   :  { %1313 = vmatpush.msra.mxu3 %v4276_v28  ;;  %1333 = vmatpush.msrb.mxu0 %v4279_v29 }
 0x36b   :  { %1237 = vmatpush.msra.mxu2 %v4378_v60  ;;  %v1037_v28 = vrot.slane %v955_v27, 2  ;;  %v1060_v10 = vrot.slane %v955_v27, 4 }
 0x36c   :  { %1314 = vmatpush.msra.mxu3 %v4283_v30  ;;  %1334 = vmatpush.msrb.mxu0 %v4286_v31 }
 0x36d   :  { %1238 = vmatpush.msra.mxu2 %v4383_v44 }
 0x36e   :  { %1315 = vmatpush.msra.mxu3 %v4290_v52  ;;  %1335 = vmatpush.msrb.mxu0 %v4293_v32 }
 0x36f   :  { %1239 = vmatpush.msra.mxu2 %v4388_v14 }
 0x370   :  { %1316 = vmatpush.msra.mxu3 %v4297_v53  ;;  %1336 = vmatpush.msrb.mxu0 %v4300_v33 }
 0x371   :  { %1240 = vmatpush.msra.mxu2 %v4393_v6 }
 0x372   :  { %1317 = vmatpush.msra.mxu3 %v4304_v54  ;;  %1337 = vmatpush.msrb.mxu0 %v4307_v34 }
 0x373   :  { %1241 = vmatpush.msra.mxu2 %v4398_v4 }
 0x374   :  { %1318 = vmatpush.msra.mxu3 %v4311_v55  ;;  %1338 = vmatpush.msrb.mxu0 %v4314_v35 }
 0x375   :  { %1242 = vmatpush.msra.mxu2 %v4403_v17 }
 0x376   :  { %1319 = vmatpush.msra.mxu3 %v4318_v56  ;;  %1339 = vmatpush.msrb.mxu0 %v4321_v36 }
 0x377   :  { %1243 = vmatpush.msra.mxu2 %v4408_v20 }
 0x378   :  { %1320 = vmatpush.msra.mxu3 %v4325_v57  ;;  %1340 = vmatpush.msrb.mxu0 %v4328_v37 }
 0x379   :  { %1244 = vmatpush.msra.mxu2 %v4413_v21 }
 0x37a   :  { %1321 = vmatpush.msra.mxu3 %v4332_v58  ;;  %1341 = vmatpush.msrb.mxu0 %v4335_v38 }
 0x37b   :  { %1245 = vmatpush.msra.mxu2 %v4418_v23 }
 0x37c   :  { %1322 = vmatpush.msra.mxu3 %v4339_v59  ;;  %1342 = vmatpush.msrb.mxu0 %v4342_v39 }
 0x3da   :  { %v1013_v2 = vpop.f32.mrf.mxu0 }
 0x3df   :  { %v973_v29 = vpop.f32.mrf.mxu2  ;;  %v993_v30 = vpop.f32.mrf.mxu3 }
 0x3e0   :  { %v1016_v31 = vadd.f32 %v973_v29, %v955_v27  ;;  %v1039_v52 = vadd.f32 %v1037_v28, %v993_v30 }
 0x3e2   :  { %v3139_v32 = vmul.f32 -1.442695, %v1016_v31  ;;  %v3140_v53 = vmul.f32 -1.442695, %v1039_v52 }
 0x3e4   :  { %3236 = vpow2.f32 %v3139_v32 }
 0x3e5   :  { %3238 = vpow2.f32 %v3140_v53 }
 0x3ea   :  { %v3237_v33 = vpop.eup %3236 }
 0x3eb   :  { %v3239_v54 = vpop.eup %3238  ;;  %v1020_v34 = vadd.f32 1.0, %v3237_v33 }
 0x3ec   :  { %v1043_v55 = vadd.f32 1.0, %v3239_v54 }
 0x3ed   :  { %3240 = vrcp.f32 %v1020_v34  ;;  %v1032_v58 = vand.u32 2147483648, %v1020_v34  ;;  %v1030_v39 = vand.u32 2147483647, %v1020_v34  ;;  %vm1026_vm14 = vweird.f32 %v1020_v34 }
 0x3ee   :  { %3242 = vrcp.f32 %v1043_v55  ;;  %v1055_v42 = vand.u32 2147483648, %v1043_v55  ;;  %vm1049_vm4 = vweird.f32 %v1043_v55  ;;  %v1053_v43 = vand.u32 2147483647, %v1043_v55 }
 0x3ef   :  { %v1033_v62 = vor.u32 1.1754944e-38, %v1032_v58  ;;  %vm1031_vm1 = vcmp.eq.f32.partialorder %v1030_v39, 8.507059e+37  ;;  %v1187_v39 = vld [vmem:[#allocation2 + $0x24] sm:$0x3f] }
 0x3f0   :  { %v1056_v9 = vor.u32 1.1754944e-38, %v1055_v42  ;;  %vm1054_vm6 = vcmp.eq.f32.partialorder %v1053_v43, 8.507059e+37 }
 0x3f3   :  { %v3241_v35 = vpop.eup %3240 }
 0x3f4   :  { %v3243_v56 = vpop.eup %3242  ;;  %v1022_v36 = vmul.f32 %v3241_v35, %v1020_v34  ;;  %vm1027_vm13 = vweird.f32 %v3241_v35 }
 0x3f5   :  { %v1045_v57 = vmul.f32 %v3243_v56, %v1043_v55  ;;  %vm1028_vm15 = vmor %vm1026_vm14, %vm1027_vm13  ;;  %vm1050_vm3 = vweird.f32 %v3243_v56 }
 0x3f6   :  { %v1023_v37 = vsub.f32 1.0, %v1022_v36  ;;  %vm1051_vm5 = vmor %vm1049_vm4, %vm1050_vm3 }
 0x3f7   :  { %v1046_v38 = vsub.f32 1.0, %v1045_v57 }
 0x3f8   :  { %v1024_v59 = vmul.f32 %v3241_v35, %v1023_v37 }
 0x3f9   :  { %v1047_v41 = vmul.f32 %v3243_v56, %v1046_v38 }
 0x3fa   :  { %v1025_v50 = vadd.f32 %v3241_v35, %v1024_v59 }
 0x3fb   :  { %v1048_v51 = vadd.f32 %v3243_v56, %v1047_v41  ;;  %v1188_v41 = vld [vmem:[#allocation3 + $0x6] sm:$0x3f] }
 0x3fc   :  { %v1029_v7 = vsel %vm1028_vm15, %v3241_v35, %v1025_v50  ;;  %v1189_v50 = vadd.f32 %v1188_v41, %v1187_v39  ;;  %v1572_v39 = vld [vmem:[#allocation12 + $0x90] sm:$0xff]  ;;  %v1469_v41 = vld [vmem:[#allocation10 + $0x78] sm:$0xff] }
 0x3fd   :  { %v1034_v61 = vsel %vm1031_vm1, %v1033_v62, %v1029_v7  ;;  %v1052_v47 = vsel %vm1051_vm5, %v3243_v56, %v1048_v51 }
 0x3fe   :  { %v1059_v40 = vmul.f32 %v1034_v61, %v1013_v2  ;;  %v1057_v46 = vsel %vm1054_vm6, %v1056_v9, %v1052_v47  ;;  %v1271_v62 = vrot.slane %v1189_v50, 2 }
 0x3ff   :  { %v1064_v48 = vsub.f32 1.0, %v1057_v46  ;;  %v1066_v12 = vmul.f32 %v1057_v46, %v4346_v0 }
 0x400   :  { %v1062_v45 = vadd.f32 %v1060_v10, %v1059_v40 }
 0x402   :  { %3244 = vtanh.f32 %v1062_v45 }
 0x408   :  { %v3245_v18 = vpop.eup %3244 }
 0x409   :  { %v1065_v1 = vmul.f32 %v3245_v18, %v1064_v48 }
 0x40b   :  { %v4424_v3 = vadd.f32 %v1066_v12, %v1065_v1 }
 0x40d   :  { %1068 = vst.msk [vmem:[#allocation4 + $0x8] sm:$0x3] %vm591_vm11, %v4424_v3  ;;  %1089 = vmatmul.f32.vlgmr.msrb.gmra.mxu1 %v4424_v3  ;;  %1109 = vmatmul.f32.vlgmr.msrb.gmra.mxu2 %v4424_v3 }
 0x40e   :  { %1069 = vst.msk [vmem:[#allocation4 + $0x6] sm:$0x3] %vm594_vm12, %v4424_v3  ;;  %1129 = vmatmul.f32.vlgmr.msrb.gmra.mxu3 %v4424_v3  ;;  %1347 = vmatpush.msrb.mxu1 %v4227_v49  ;;  %v1070_v49 = vld [vmem:[#allocation2 + $0x1e] sm:$0x3f] }
 0x410   :  { %1348 = vmatpush.msrb.mxu1 %v4234_v5  ;;  %v1071_v5 = vld [vmem:[#allocation3 + $0xc] sm:$0x3f] }
 0x412   :  { %1349 = vmatpush.msrb.mxu1 %v4241_v16  ;;  %v1072_v16 = vadd.f32 %v1071_v5, %v1070_v49 }
 0x414   :  { %1350 = vmatpush.msrb.mxu1 %v4248_v19  ;;  %v1154_v8 = vrot.slane %v1072_v16, 2  ;;  %v1177_v52 = vrot.slane %v1072_v16, 4 }
 0x416   :  { %1351 = vmatpush.msrb.mxu1 %v4257_v22 }
 0x418   :  { %1352 = vmatpush.msrb.mxu1 %v4266_v25 }
 0x41a   :  { %1353 = vmatpush.msrb.mxu1 %v4373_v11 }
 0x41c   :  { %1354 = vmatpush.msrb.mxu1 %v4378_v60 }
 0x41e   :  { %1355 = vmatpush.msrb.mxu1 %v4383_v44 }
 0x420   :  { %1356 = vmatpush.msrb.mxu1 %v4388_v14 }
 0x422   :  { %1357 = vmatpush.msrb.mxu1 %v4393_v6 }
 0x424   :  { %1358 = vmatpush.msrb.mxu1 %v4398_v4 }
 0x426   :  { %1359 = vmatpush.msrb.mxu1 %v4403_v17 }
 0x428   :  { %1360 = vmatpush.msrb.mxu1 %v4408_v20 }
 0x42a   :  { %1361 = vmatpush.msrb.mxu1 %v4413_v21 }
 0x42c   :  { %1362 = vmatpush.msrb.mxu1 %v4418_v23 }
 0x48a   :  { %v1090_v19 = vpop.f32.mrf.mxu1 }
 0x48b   :  { %v1133_v22 = vadd.f32 %v1090_v19, %v1072_v16 }
 0x48d   :  { %v3141_v25 = vmul.f32 -1.442695, %v1133_v22 }
 0x48f   :  { %3246 = vpow2.f32 %v3141_v25 }
 0x490   :  { %v1110_v13 = vpop.f32.mrf.mxu2 }
 0x491   :  { %v1156_v63 = vadd.f32 %v1154_v8, %v1110_v13  ;;  %v1130_v30 = vpop.f32.mrf.mxu3 }
 0x493   :  { %v3142_v15 = vmul.f32 -1.442695, %v1156_v63 }
 0x495   :  { %v3247_v0 = vpop.eup %3246  ;;  %3248 = vpow2.f32 %v3142_v15 }
 0x496   :  { %v1137_v11 = vadd.f32 1.0, %v3247_v0 }
 0x498   :  { %3250 = vrcp.f32 %v1137_v11  ;;  %v1149_v17 = vand.u32 2147483648, %v1137_v11  ;;  %v1147_v21 = vand.u32 2147483647, %v1137_v11  ;;  %vm1143_vm8 = vweird.f32 %v1137_v11 }
 0x49a   :  { %v1150_v27 = vor.u32 1.1754944e-38, %v1149_v17  ;;  %vm1148_vm10 = vcmp.eq.f32.partialorder %v1147_v21, 8.507059e+37 }
 0x49b   :  { %v3249_v60 = vpop.eup %3248 }
 0x49c   :  { %v1160_v44 = vadd.f32 1.0, %v3249_v60 }
 0x49e   :  { %v3251_v14 = vpop.eup %3250  ;;  %3252 = vrcp.f32 %v1160_v44  ;;  %v1172_v53 = vand.u32 2147483648, %v1160_v44  ;;  %v1170_v54 = vand.u32 2147483647, %v1160_v44  ;;  %vm1166_vm14 = vweird.f32 %v1160_v44 }
 0x49f   :  { %v1139_v6 = vmul.f32 %v3251_v14, %v1137_v11  ;;  %vm1144_vm7 = vweird.f32 %v3251_v14  ;;  %v1294_v11 = vrot.slane %v1189_v50, 4 }
 0x4a0   :  { %vm1145_vm9 = vmor %vm1143_vm8, %vm1144_vm7  ;;  %v1173_v35 = vor.u32 1.1754944e-38, %v1172_v53  ;;  %vm1171_vm1 = vcmp.eq.f32.partialorder %v1170_v54, 8.507059e+37 }
 0x4a1   :  { %v1140_v4 = vsub.f32 1.0, %v1139_v6 }
 0x4a3   :  { %v1141_v20 = vmul.f32 %v3251_v14, %v1140_v4 }
 0x4a4   :  { %v3253_v23 = vpop.eup %3252 }
 0x4a5   :  { %v1162_v24 = vmul.f32 %v3253_v23, %v1160_v44  ;;  %v1142_v26 = vadd.f32 %v3251_v14, %v1141_v20  ;;  %vm1167_vm13 = vweird.f32 %v3253_v23 }
 0x4a6   :  { %vm1168_vm15 = vmor %vm1166_vm14, %vm1167_vm13 }
 0x4a7   :  { %v1163_v28 = vsub.f32 1.0, %v1162_v24  ;;  %v1146_v29 = vsel %vm1145_vm9, %v3251_v14, %v1142_v26  ;;  %v1304_v26 = vld [vmem:[#allocation2 + $0x2a] sm:$0x3f] }
 0x4a8   :  { %v1151_v31 = vsel %vm1148_vm10, %v1150_v27, %v1146_v29  ;;  %v1305_v27 = vld [vmem:[#allocation3] sm:$0x3f] }
 0x4a9   :  { %v1164_v32 = vmul.f32 %v3253_v23, %v1163_v28  ;;  %v1176_v33 = vmul.f32 %v1151_v31, %v1130_v30  ;;  %v4461_v28 = vadd.f32 %v1305_v27, %v1304_v26  ;;  %v1570_v26 = vld [vmem:[#allocation12 + $0x80] sm:$0xff]  ;;  %v1571_v27 = vld [vmem:[#allocation12 + $0x88] sm:$0xff] }
 0x4ab   :  { %v1165_v34 = vadd.f32 %v3253_v23, %v1164_v32  ;;  %v1179_v55 = vadd.f32 %v1177_v52, %v1176_v33  ;;  %v1388_v29 = vrot.slane %v4461_v28, 2 }
 0x4ad   :  { %v1169_v56 = vsel %vm1168_vm15, %v3253_v23, %v1165_v34  ;;  %3254 = vtanh.f32 %v1179_v55  ;;  %v1475_v55 = vld [vmem:[#allocation10 + $0xa8] sm:$0xff] }
 0x4ae   :  { %v1174_v36 = vsel %vm1171_vm1, %v1173_v35, %v1169_v56  ;;  %v1476_v35 = vld [vmem:[#allocation10 + $0xb0] sm:$0xff]  ;;  %v1477_v56 = vld [vmem:[#allocation10 + $0xb8] sm:$0xff]  ;;  %1493 = vmatpush.msrb.mxu2 %v1475_v55 }
 0x4af   :  { %v1181_v57 = vsub.f32 1.0, %v1174_v36  ;;  %v1183_v38 = vmul.f32 %v1174_v36, %v4424_v3  ;;  %1516 = vmatpush.msrb.mxu3 %v1476_v35 }
 0x4b3   :  { %v3255_v37 = vpop.eup %3254 }
 0x4b4   :  { %v1182_v58 = vmul.f32 %v3255_v37, %v1181_v57  ;;  %v1575_v57 = vld [vmem:[#allocation12 + $0xa8] sm:$0xff] }
 0x4b6   :  { %v1184_v59 = vadd.f32 %v1183_v38, %v1182_v58  ;;  %v1472_v58 = vld [vmem:[#allocation10 + $0x90] sm:$0xff]  ;;  %v1473_v38 = vld [vmem:[#allocation10 + $0x98] sm:$0xff] }
 0x4b7   :  { %1494 = vmatpush.msrb.mxu2 %v1472_v58  ;;  %1517 = vmatpush.msrb.mxu3 %v1473_v38  ;;  %v1562_v58 = vld [vmem:[#allocation12 + $0x40] sm:$0xff] }
 0x4b8   :  { %1185 = vst.msk [vmem:[#allocation4 + $0xa] sm:$0x3] %vm591_vm11, %v1184_v59  ;;  %1206 = vmatmul.f32.vlgmr.msra.gmra.mxu0 %v1184_v59  ;;  %1226 = vmatmul.f32.vlgmr.msra.gmra.mxu1 %v1184_v59 }
 0x4b9   :  { %1186 = vst.msk [vmem:[#allocation4 + $0x4] sm:$0x3] %vm594_vm12, %v1184_v59  ;;  %1246 = vmatmul.f32.vlgmr.msra.gmra.mxu2 %v1184_v59  ;;  %1539 = vmatpush.msra.mxu0 %v1477_v56 }
 0x4ba   :  { %1586 = vmatpush.msra.mxu1 %v1575_v57  ;;  %1495 = vmatpush.msrb.mxu2 %v1469_v41  ;;  %v1564_v57 = vld [vmem:[#allocation12 + $0x50] sm:$0xff] }
 0x4bb   :  { %v1556_v41 = vld [vmem:[#allocation12 + $0x10] sm:$0xff] }
 0x4bc   :  { %1587 = vmatpush.msra.mxu1 %v1572_v39  ;;  %v1555_v39 = vld [vmem:[#allocation12 + $0x8] sm:$0xff] }
 0x535   :  { %v1207_v7 = vpop.f32.mrf.mxu0  ;;  %v1227_v2 = vpop.f32.mrf.mxu1 }
 0x536   :  { %v1250_v61 = vadd.f32 %v1207_v7, %v1189_v50  ;;  %v1273_v51 = vadd.f32 %v1271_v62, %v1227_v2  ;;  %v1470_v50 = vld [vmem:[#allocation10 + $0x80] sm:$0xff]  ;;  %v1471_v62 = vld [vmem:[#allocation10 + $0x88] sm:$0xff]  ;;  %v1569_v2 = vld [vmem:[#allocation12 + $0x78] sm:$0xff] }
 0x537   :  { %1518 = vmatpush.msrb.mxu3 %v1470_v50  ;;  %1588 = vmatpush.msra.mxu1 %v1569_v2 }
 0x538   :  { %v3143_v40 = vmul.f32 -1.442695, %v1250_v61  ;;  %v3144_v10 = vmul.f32 -1.442695, %v1273_v51  ;;  %v1466_v61 = vld [vmem:[#allocation10 + $0x60] sm:$0xff]  ;;  %v1467_v51 = vld [vmem:[#allocation10 + $0x68] sm:$0xff] }
 0x539   :  { %1496 = vmatpush.msrb.mxu2 %v1466_v61  ;;  %1519 = vmatpush.msrb.mxu3 %v1467_v51 }
 0x53a   :  { %3256 = vpow2.f32 %v3143_v40  ;;  %v1468_v40 = vld [vmem:[#allocation10 + $0x70] sm:$0xff] }
 0x53b   :  { %3258 = vpow2.f32 %v3144_v10  ;;  %v1566_v10 = vld [vmem:[#allocation12 + $0x60] sm:$0xff] }
 0x53c   :  { %v1247_v8 = vpop.f32.mrf.mxu2  ;;  %1589 = vmatpush.msra.mxu1 %v1566_v10  ;;  %v4492_v10 = vld [vmem:[#allocation13 + $0x150] sm:$0xff] }
 0x540   :  { %v3257_v42 = vpop.eup %3256 }
 0x541   :  { %v3259_v43 = vpop.eup %3258  ;;  %v1254_v45 = vadd.f32 1.0, %v3257_v42  ;;  %v1463_v42 = vld [vmem:[#allocation10 + $0x48] sm:$0xff] }
 0x542   :  { %v1277_v47 = vadd.f32 1.0, %v3259_v43  ;;  %v1464_v43 = vld [vmem:[#allocation10 + $0x50] sm:$0xff]  ;;  %1497 = vmatpush.msrb.mxu2 %v1463_v42 }
 0x543   :  { %3260 = vrcp.f32 %v1254_v45  ;;  %v1266_v3 = vand.u32 2147483648, %v1254_v45  ;;  %v1264_v5 = vand.u32 2147483647, %v1254_v45  ;;  %vm1260_vm4 = vweird.f32 %v1254_v45  ;;  %1520 = vmatpush.msrb.mxu3 %v1464_v43  ;;  %v4494_v42 = vld [vmem:[#allocation13 + $0x170] sm:$0xff]  ;;  %v1423_v43 = vld [vmem:[#allocation4 + $0x4] sm:$0x3] }
 0x544   :  { %3262 = vrcp.f32 %v1277_v47  ;;  %v1289_v15 = vand.u32 2147483648, %v1277_v47  ;;  %vm1283_vm8 = vweird.f32 %v1277_v47  ;;  %v1287_v60 = vand.u32 2147483647, %v1277_v47 }
 0x545   :  { %v1267_v22 = vor.u32 1.1754944e-38, %v1266_v3  ;;  %vm1265_vm6 = vcmp.eq.f32.partialorder %v1264_v5, 8.507059e+37  ;;  %v1457_v3 = vld [vmem:[#allocation10 + $0x18] sm:$0xff] }
 0x546   :  { %v1290_v6 = vor.u32 1.1754944e-38, %v1289_v15  ;;  %vm1288_vm10 = vcmp.eq.f32.partialorder %v1287_v60, 8.507059e+37  ;;  %v1554_v15 = vld [vmem:[#allocation12] sm:$0xff] }
 0x549   :  { %v3261_v9 = vpop.eup %3260 }
 0x54a   :  { %v3263_v46 = vpop.eup %3262  ;;  %v1256_v48 = vmul.f32 %v3261_v9, %v1254_v45  ;;  %vm1261_vm3 = vweird.f32 %v3261_v9  ;;  %v1465_v45 = vld [vmem:[#allocation10 + $0x58] sm:$0xff] }
 0x54b   :  { %v1279_v18 = vmul.f32 %v3263_v46, %v1277_v47  ;;  %vm1262_vm5 = vmor %vm1260_vm4, %vm1261_vm3  ;;  %vm1284_vm7 = vweird.f32 %v3263_v46 }
 0x54c   :  { %v1257_v1 = vsub.f32 1.0, %v1256_v48  ;;  %vm1285_vm9 = vmor %vm1283_vm8, %vm1284_vm7  ;;  %v1461_v48 = vld [vmem:[#allocation10 + $0x38] sm:$0xff]  ;;  %vm1449_vm7 = vcmask 1045504   ;;  %vm1478_vm8 = vcmask 523264  }
 0x54d   :  { %v1280_v12 = vsub.f32 1.0, %v1279_v18  ;;  %v1462_v18 = vld [vmem:[#allocation10 + $0x40] sm:$0xff]  ;;  %1521 = vmatpush.msrb.mxu3 %v1461_v48 }
 0x54e   :  { %v1258_v49 = vmul.f32 %v3261_v9, %v1257_v1  ;;  %v1560_v1 = vld [vmem:[#allocation12 + $0x30] sm:$0xff] }
 0x54f   :  { %v1281_v16 = vmul.f32 %v3263_v46, %v1280_v12 }
 0x550   :  { %v1259_v19 = vadd.f32 %v3261_v9, %v1258_v49  ;;  %v1458_v49 = vld [vmem:[#allocation10 + $0x20] sm:$0xff] }
 0x551   :  { %v1282_v63 = vadd.f32 %v3263_v46, %v1281_v16  ;;  %v1459_v16 = vld [vmem:[#allocation10 + $0x28] sm:$0xff]  ;;  %1522 = vmatpush.msrb.mxu3 %v1458_v49 }
 0x552   :  { %v1263_v25 = vsel %vm1262_vm5, %v3261_v9, %v1259_v19  ;;  %v1563_v9 = vld [vmem:[#allocation12 + $0x48] sm:$0xff]  ;;  %v1557_v19 = vld [vmem:[#allocation12 + $0x18] sm:$0xff] }
 0x553   :  { %v1268_v13 = vsel %vm1265_vm6, %v1267_v22, %v1263_v25  ;;  %v1286_v14 = vsel %vm1285_vm9, %v3263_v46, %v1282_v63  ;;  %v1460_v46 = vld [vmem:[#allocation10 + $0x30] sm:$0xff]  ;;  %1590 = vmatpush.msra.mxu1 %v1563_v9  ;;  %v1454_v25 = vld [vmem:[#allocation10] sm:$0xff] }
 0x554   :  { %v1293_v0 = vmul.f32 %v1268_v13, %v1247_v8  ;;  %v1291_v4 = vsel %vm1288_vm10, %v1290_v6, %v1286_v14  ;;  %1498 = vmatpush.msrb.mxu2 %v1460_v46  ;;  %v1455_v8 = vld [vmem:[#allocation10 + $0x8] sm:$0xff]  ;;  %v1456_v63 = vld [vmem:[#allocation10 + $0x10] sm:$0xff]  ;;  %v4502_v9 = vld [vmem:[#allocation13 + $0x140] sm:$0xff] }
 0x555   :  { %v1298_v17 = vsub.f32 1.0, %v1291_v4  ;;  %v1300_v23 = vmul.f32 %v1291_v4, %v1184_v59  ;;  %v1474_v59 = vld [vmem:[#allocation10 + $0xa0] sm:$0xff]  ;;  %1591 = vmatpush.msra.mxu1 %v1560_v1  ;;  %1523 = vmatpush.msrb.mxu3 %v1455_v8  ;;  %v1576_v6 = vld [vmem:[#allocation12 + $0xb0] sm:$0xff]  ;;  %v1577_v4 = vld [vmem:[#allocation12 + $0xb8] sm:$0xff] }
 0x556   :  { %v1296_v44 = vadd.f32 %v1294_v11, %v1293_v0  ;;  %1540 = vmatpush.msra.mxu0 %v1474_v59  ;;  %1499 = vmatpush.msrb.mxu2 %v1457_v3  ;;  %v1558_v59 = vld [vmem:[#allocation12 + $0x20] sm:$0xff]  ;;  %v4521_v8 = vld [vmem:[#allocation13 + $0x110] sm:$0xff] }
 0x557   :  { %1592 = vmatpush.msra.mxu1 %v1557_v19  ;;  %v4506_v1 = vld [vmem:[#allocation13 + $0x120] sm:$0xff] }
 0x558   :  { %3264 = vtanh.f32 %v1296_v44  ;;  %1541 = vmatpush.msra.mxu0 %v1471_v62  ;;  %1500 = vmatpush.msrb.mxu2 %v1454_v25  ;;  %v4518_v25 = vld [vmem:[#allocation13 + $0x108] sm:$0xff] }
 0x559   :  { %1593 = vmatpush.msra.mxu1 %v1554_v15  ;;  %v4531_v15 = vld [vmem:[#allocation13 + $0xf0] sm:$0xff] }
 0x55a   :  { %1542 = vmatpush.msra.mxu0 %v1468_v40  ;;  %1609 = vmatpush.msra.mxu2 %v1576_v6  ;;  %v4490_v40 = vld [vmem:[#allocation13 + $0x168] sm:$0xff]  ;;  %v4541_v6 = vld [vmem:[#allocation13 + $0xd8] sm:$0xff] }
 0x55c   :  { %1543 = vmatpush.msra.mxu0 %v1465_v45  ;;  %v1424_v45 = vld [vmem:[#allocation4 + $0x6] sm:$0x3] }
 0x55d   :  { %v1436_v3 = vrot.slane %v1424_v45, 2  ;;  %v4726_v45 = vld [vmem:[#allocation13 + $0x40] sm:$0xff] }
 0x55e   :  { %v3265_v20 = vpop.eup %3264  ;;  %1544 = vmatpush.msra.mxu0 %v1462_v18  ;;  %v1433_v18 = vrot.slane %v1423_v43, 4  ;;  %v4721_v43 = vld [vmem:[#allocation13 + $0x58] sm:$0xff] }
 0x55f   :  { %v1299_v21 = vmul.f32 %v3265_v20, %v1298_v17  ;;  %v1573_v17 = vld [vmem:[#allocation12 + $0x98] sm:$0xff] }
 0x560   :  { %1545 = vmatpush.msra.mxu0 %v1459_v16  ;;  %1610 = vmatpush.msra.mxu2 %v1573_v17  ;;  %v1426_v16 = vld [vmem:[#allocation4 + $0xa] sm:$0x3]  ;;  %v1425_v17 = vld [vmem:[#allocation4 + $0x8] sm:$0x3] }
 0x561   :  { %v4452_v24 = vadd.f32 %v1300_v23, %v1299_v21  ;;  %v1574_v21 = vld [vmem:[#allocation12 + $0xa0] sm:$0xff] }
 0x562   :  { %1546 = vmatpush.msra.mxu0 %v1456_v63  ;;  %1611 = vmatpush.msra.mxu2 %v1570_v26  ;;  %v1439_v63 = vrot.slane %v1426_v16, 6 }
 0x563   :  { %1302 = vst.msk [vmem:[#allocation4 + $0xc] sm:$0x3] %vm591_vm11, %v4452_v24  ;;  %1323 = vmatmul.f32.vlgmr.msra.gmra.mxu3 %v4452_v24  ;;  %1343 = vmatmul.f32.vlgmr.msrb.gmra.mxu0 %v4452_v24 }
 0x564   :  { %1303 = vst.msk [vmem:[#allocation4 + $0x2] sm:$0x3] %vm594_vm12, %v4452_v24  ;;  %1363 = vmatmul.f32.vlgmr.msrb.gmra.mxu1 %v4452_v24  ;;  %1632 = vmatpush.msra.mxu3 %v1577_v4  ;;  %v4543_v4 = vld [vmem:[#allocation13 + $0xe0] sm:$0xff] }
 0x565   :  { %1818 = vmatpush.msrb.mxu0 %v4490_v40  ;;  %1838 = vmatpush.msrb.mxu1 %v4494_v42 }
 0x566   :  { %1633 = vmatpush.msra.mxu3 %v1574_v21  ;;  %v1451_v21 = vsel %vm298_vm2, %v1425_v17, %v1439_v63 }
 0x567   :  { %1819 = vmatpush.msrb.mxu0 %v4492_v10 }
 0x568   :  { %1634 = vmatpush.msra.mxu3 %v1571_v27  ;;  %v4558_v27 = vld [vmem:[#allocation13 + $0xc0] sm:$0xff] }
 0x56b   :  { %v1422_v51 = vld [vmem:[#allocation4 + $0x2] sm:$0x3] }
 0x56c   :  { %v1430_v46 = vrot.slane %v1422_v51, 6  ;;  %v4716_v51 = vld [vmem:[#allocation13 + $0x70] sm:$0xff] }
 0x5e0   :  { %v1344_v30 = vpop.f32.mrf.mxu0 }
 0x5e1   :  { %v1390_v31 = vadd.f32 %v1388_v29, %v1344_v30  ;;  %v1364_v30 = vpop.f32.mrf.mxu1 }
 0x5e3   :  { %v3146_v52 = vmul.f32 -1.442695, %v1390_v31 }
 0x5e5   :  { %3266 = vpow2.f32 %v3146_v52 }
 0x5e6   :  { %v1324_v32 = vpop.f32.mrf.mxu3 }
 0x5e7   :  { %v1367_v53 = vadd.f32 %v1324_v32, %v4461_v28  ;;  %v1411_v32 = vrot.slane %v4461_v28, 4  ;;  %v1561_v28 = vld [vmem:[#allocation12 + $0x38] sm:$0xff] }
 0x5e9   :  { %v3145_v33 = vmul.f32 -1.442695, %v1367_v53 }
 0x5eb   :  { %v3267_v54 = vpop.eup %3266  ;;  %3268 = vpow2.f32 %v3145_v33  ;;  %v1567_v33 = vld [vmem:[#allocation12 + $0x68] sm:$0xff] }
 0x5ec   :  { %v4465_v34 = vadd.f32 1.0, %v3267_v54  ;;  %v1568_v54 = vld [vmem:[#allocation12 + $0x70] sm:$0xff]  ;;  %1612 = vmatpush.msra.mxu2 %v1567_v33  ;;  %v4580_v33 = vld [vmem:[#allocation13 + $0x98] sm:$0xff] }
 0x5ed   :  { %1635 = vmatpush.msra.mxu3 %v1568_v54  ;;  %v4586_v54 = vld [vmem:[#allocation13 + $0x100] sm:$0xff] }
 0x5ee   :  { %3270 = vrcp.f32 %v4465_v34  ;;  %v1406_v52 = vand.u32 2147483648, %v4465_v34  ;;  %vm1400_vm4 = vweird.f32 %v4465_v34  ;;  %v1404_v55 = vand.u32 2147483647, %v4465_v34  ;;  %1613 = vmatpush.msra.mxu2 %v1564_v57  ;;  %v4608_v57 = vld [vmem:[#allocation13 + $0x48] sm:$0xff] }
 0x5f0   :  { %vm1405_vm6 = vcmp.eq.f32.partialorder %v1404_v55, 8.507059e+37  ;;  %1614 = vmatpush.msra.mxu2 %v1561_v28  ;;  %v4591_v55 = vld [vmem:[#allocation13 + $0x78] sm:$0xff]  ;;  %v4615_v28 = vld [vmem:[#allocation13 + $0x30] sm:$0xff] }
 0x5f1   :  { %v3269_v36 = vpop.eup %3268 }
 0x5f2   :  { %v4468_v37 = vadd.f32 1.0, %v3269_v36  ;;  %v1407_v36 = vor.u32 1.1754944e-38, %v1406_v52  ;;  %1615 = vmatpush.msra.mxu2 %v1558_v59  ;;  %v4572_v52 = vld [vmem:[#allocation13 + $0xb0] sm:$0xff]  ;;  %v4624_v59 = vld [vmem:[#allocation13 + $0x20] sm:$0xff] }
 0x5f3   :  { %5446 = vst [vmem:[#allocation20_spill] sm:$0xff] %v4624_v59 }
 0x5f4   :  { %3272 = vrcp.f32 %v4468_v37  ;;  %v4471_v7 = vpop.eup %3270  ;;  %v1383_v0 = vand.u32 2147483648, %v4468_v37  ;;  %v1381_v60 = vand.u32 2147483647, %v4468_v37  ;;  %vm1377_vm14 = vweird.f32 %v4468_v37  ;;  %1616 = vmatpush.msra.mxu2 %v1555_v39  ;;  %v4633_v39 = vld [vmem:[#allocation13 + $0x8] sm:$0xff] }
 0x5f5   :  { %v1396_v47 = vmul.f32 %v4471_v7, %v4465_v34  ;;  %vm1401_vm3 = vweird.f32 %v4471_v7  ;;  %v1559_v34 = vld [vmem:[#allocation12 + $0x28] sm:$0xff]  ;;  %5448 = vst [vmem:[#allocation26_spill] sm:$0xff] %v4633_v39 }
 0x5f6   :  { %v1384_v20 = vor.u32 1.1754944e-38, %v1383_v0  ;;  %vm1382_vm1 = vcmp.eq.f32.partialorder %v1381_v60, 8.507059e+37  ;;  %vm1402_vm5 = vmor %vm1400_vm4, %vm1401_vm3  ;;  %v4533_v0 = vld [vmem:[#allocation13 + $0xf8] sm:$0xff] }
 0x5f7   :  { %v1397_v22 = vsub.f32 1.0, %v1396_v47  ;;  %v4500_v47 = vld [vmem:[#allocation13 + $0x138] sm:$0xff] }
 0x5f8   :  { %1820 = vmatpush.msrb.mxu0 %v4500_v47 }
 0x5f9   :  { %v1398_v44 = vmul.f32 %v4471_v7, %v1397_v22  ;;  %v1427_v22 = vld [vmem:[#allocation4 + $0xc] sm:$0x3] }
 0x5fa   :  { %v3273_v12 = vpop.eup %3272  ;;  %1821 = vmatpush.msrb.mxu0 %v4506_v1  ;;  %v1442_v60 = vrot.slane %v1427_v22, 4 }
 0x5fb   :  { %v1373_v5 = vmul.f32 %v3273_v12, %v4468_v37  ;;  %vm1378_vm13 = vweird.f32 %v3273_v12  ;;  %v1399_v29 = vadd.f32 %v4471_v7, %v1398_v44  ;;  %v1565_v37 = vld [vmem:[#allocation12 + $0x58] sm:$0xff]  ;;  %v4539_v44 = vld [vmem:[#allocation13 + $0x160] sm:$0xff] }
 0x5fc   :  { %vm1379_vm15 = vmor %vm1377_vm14, %vm1378_vm13  ;;  %1636 = vmatpush.msra.mxu3 %v1565_v37  ;;  %1822 = vmatpush.msrb.mxu0 %v4518_v25  ;;  %v4610_v37 = vld [vmem:[#allocation13 + $0x50] sm:$0xff] }
 0x5fd   :  { %v1374_v13 = vsub.f32 1.0, %v1373_v5  ;;  %v1403_v56 = vsel %vm1402_vm5, %v4471_v7, %v1399_v29  ;;  %v4560_v29 = vld [vmem:[#allocation13 + $0xc8] sm:$0xff] }
 0x5fe   :  { %v1408_v38 = vsel %vm1405_vm6, %v1407_v36, %v1403_v56  ;;  %1637 = vmatpush.msra.mxu3 %v1562_v58  ;;  %1823 = vmatpush.msrb.mxu0 %v4531_v15  ;;  %v4602_v56 = vld [vmem:[#allocation13 + $0x60] sm:$0xff]  ;;  %v4604_v36 = vld [vmem:[#allocation13 + $0x68] sm:$0xff]  ;;  %v4617_v58 = vld [vmem:[#allocation13 + $0x38] sm:$0xff] }
 0x5ff   :  { %v1375_v11 = vmul.f32 %v3273_v12, %v1374_v13  ;;  %v1415_v50 = vsub.f32 1.0, %v1408_v38  ;;  %v1417_v7 = vmul.f32 %v1408_v38, %v4452_v24  ;;  %v4498_v24 = vld [vmem:[#allocation13 + $0x158] sm:$0xff]  ;;  %5444 = vst [vmem:[#allocation22_spill] sm:$0xff] %v4617_v58 }
 0x600   :  { %1638 = vmatpush.msra.mxu3 %v1559_v34  ;;  %1839 = vmatpush.msrb.mxu1 %v4498_v24  ;;  %v4622_v38 = vld [vmem:[#allocation13 + $0x18] sm:$0xff]  ;;  %v4631_v34 = vld [vmem:[#allocation13] sm:$0xff] }
 0x601   :  { %v1376_v14 = vadd.f32 %v3273_v12, %v1375_v11  ;;  %v4535_v11 = vld [vmem:[#allocation13 + $0x178] sm:$0xff]  ;;  %1824 = vmatpush.msrb.mxu0 %v4541_v6  ;;  %5445 = vst [vmem:[#allocation25_spill] sm:$0xff] %v4622_v38 }
 0x602   :  { %1639 = vmatpush.msra.mxu3 %v1556_v41  ;;  %1840 = vmatpush.msrb.mxu1 %v4502_v9  ;;  %5447 = vst [vmem:[#allocation23_spill] sm:$0xff] %v4631_v34  ;;  %v5449_v41 = vmov 0.0  }
 0x603   :  { %v1380_v23 = vsel %vm1379_vm15, %v3273_v12, %v1376_v14  ;;  %v4508_v12 = vld [vmem:[#allocation13 + $0x128] sm:$0xff]  ;;  %1825 = vmatpush.msrb.mxu0 %v4558_v27 }
 0x604   :  { %v1385_v31 = vsel %vm1382_vm1, %v1384_v20, %v1380_v23  ;;  %1841 = vmatpush.msrb.mxu1 %v4508_v12  ;;  %v4549_v20 = vld [vmem:[#allocation13 + $0x148] sm:$0xff]  ;;  %v1452_v23 = vsel %vm132_vm0, %v1451_v21, %v1442_v60 }
 0x605   :  { %v1410_v53 = vmul.f32 %v1385_v31, %v1364_v30  ;;  %v4566_v30 = vld [vmem:[#allocation13 + $0x130] sm:$0xff]  ;;  %v4570_v31 = vld [vmem:[#allocation13 + $0xa8] sm:$0xff] }
 0x606   :  { %1842 = vmatpush.msrb.mxu1 %v4521_v8  ;;  %1826 = vmatpush.msrb.mxu0 %v4570_v31 }
 0x607   :  { %v1413_v35 = vadd.f32 %v1411_v32, %v1410_v53  ;;  %v4576_v32 = vld [vmem:[#allocation13 + $0x118] sm:$0xff]  ;;  %v4578_v53 = vld [vmem:[#allocation13 + $0x90] sm:$0xff] }
 0x608   :  { %1843 = vmatpush.msrb.mxu1 %v4533_v0  ;;  %1827 = vmatpush.msrb.mxu0 %v4578_v53 }
 0x609   :  { %3274 = vtanh.f32 %v1413_v35  ;;  %v4594_v35 = vld [vmem:[#allocation13 + $0x80] sm:$0xff] }
 0x60a   :  { %1844 = vmatpush.msrb.mxu1 %v4543_v4  ;;  %1828 = vmatpush.msrb.mxu0 %v4591_v55 }
 0x60c   :  { %1845 = vmatpush.msrb.mxu1 %v4560_v29  ;;  %1829 = vmatpush.msrb.mxu0 %v4602_v56 }
 0x60e   :  { %1846 = vmatpush.msrb.mxu1 %v4572_v52  ;;  %1830 = vmatpush.msrb.mxu0 %v4608_v57 }
 0x60f   :  { %v3275_v62 = vpop.eup %3274 }
 0x610   :  { %v1416_v2 = vmul.f32 %v3275_v62, %v1415_v50  ;;  %1847 = vmatpush.msrb.mxu1 %v4580_v33  ;;  %1831 = vmatpush.msrb.mxu0 %v4615_v28  ;;  %v4692_v50 = vld [vmem:[#allocation13 + $0xe8] sm:$0xff]  ;;  %v4696_v62 = vld [vmem:[#allocation13 + $0xd0] sm:$0xff] }
 0x612   :  { %v1418_v61 = vadd.f32 %v1417_v7, %v1416_v2  ;;  %1848 = vmatpush.msrb.mxu1 %v4594_v35  ;;  %1832 = vmatpush.msrb.mxu0 %v4622_v38  ;;  %v4698_v7 = vld [vmem:[#allocation13 + $0xb8] sm:$0xff]  ;;  %v4707_v2 = vld [vmem:[#allocation13 + $0xa0] sm:$0xff] }
 0x614   :  { %1419 = vst.msk [vmem:[#allocation4 + $0xe] sm:$0x3] %vm591_vm11, %v1418_v61  ;;  %1849 = vmatpush.msrb.mxu1 %v4604_v36  ;;  %1833 = vmatpush.msrb.mxu0 %v4631_v34 }
 0x615   :  { %1420 = vst.msk [vmem:[#allocation4] sm:$0x3] %vm594_vm12, %v1418_v61  ;;  %v4711_v61 = vld [vmem:[#allocation13 + $0x88] sm:$0xff] }
 0x616   :  { %1850 = vmatpush.msrb.mxu1 %v4610_v37 }
 0x618   :  { %1851 = vmatpush.msrb.mxu1 %v4617_v58 }
 0x61a   :  { %1852 = vmatpush.msrb.mxu1 %v4624_v59 }
 0x61b   :  { %v1428_v13 = vld [vmem:[#allocation4 + $0xe] sm:$0x3] }
 0x61c   :  { %v1421_v48 = vld [vmem:[#allocation4] sm:$0x3]  ;;  %v1445_v14 = vrot.slane %v1428_v13, 2  ;;  %1853 = vmatpush.msrb.mxu1 %v4633_v39 }
 0x61d   :  { %v1447_v49 = vsel %vm298_vm2, %v1421_v48, %v1430_v46  ;;  %v4731_v46 = vld [vmem:[#allocation13 + $0x28] sm:$0xff]  ;;  %v4736_v48 = vld [vmem:[#allocation13 + $0x10] sm:$0xff] }
 0x61e   :  { %v1448_v5 = vsel %vm132_vm0, %v1447_v49, %v1433_v18  ;;  %v1453_v26 = vsel %vm1449_vm7, %v1452_v23, %v1445_v14  ;;  %5450 = vst [vmem:[#allocation21_spill] sm:$0xff] %v4731_v46 }
 0x61f   :  { %v4515_v19 = vsel %vm1449_vm7, %v1448_v5, %v1436_v3  ;;  %5451 = vst [vmem:[#allocation24_spill] sm:$0xff] %v4736_v48 }
 0x620   :  { %3147 = vmatmul.msk.f32.vlgmr.msrb.gmra.mxu2 %vm1478_vm8, %v4515_v19  ;;  %3149 = vmatmul.msk.f32.vlgmr.msrb.gmra.mxu3 %vm1478_vm8, %v4515_v19 }
 0x621   :  { %3151 = vmatmul.msk.f32.vlgmr.msra.gmra.mxu0 %vm1478_vm8, %v4515_v19  ;;  %3153 = vmatmul.msk.f32.vlgmr.msra.gmra.mxu1 %vm1478_vm8, %v4515_v19 }
 0x622   :  { %1858 = vmatpush.msrb.mxu2 %v4535_v11  ;;  %1936 = vmatpush.msrb.mxu3 %v4490_v40 }
 0x623   :  { %1956 = vmatpush.msra.mxu0 %v4494_v42  ;;  %1976 = vmatpush.msra.mxu1 %v4535_v11 }
 0x624   :  { %1859 = vmatpush.msrb.mxu2 %v4539_v44  ;;  %1937 = vmatpush.msrb.mxu3 %v4492_v10 }
 0x625   :  { %1957 = vmatpush.msra.mxu0 %v4498_v24  ;;  %1977 = vmatpush.msra.mxu1 %v4539_v44 }
 0x626   :  { %1860 = vmatpush.msrb.mxu2 %v4549_v20  ;;  %1938 = vmatpush.msrb.mxu3 %v4500_v47 }
 0x627   :  { %1958 = vmatpush.msra.mxu0 %v4502_v9  ;;  %1978 = vmatpush.msra.mxu1 %v4549_v20 }
 0x628   :  { %3148 = vmatmul.msk.f32.gmra.mxu2 %vm1478_vm8, %v1453_v26  ;;  %3150 = vmatmul.msk.f32.gmra.mxu3 %vm1478_vm8, %v1453_v26 }
 0x629   :  { %3152 = vmatmul.msk.f32.gmra.mxu0 %vm1478_vm8, %v1453_v26  ;;  %3154 = vmatmul.msk.f32.gmra.mxu1 %vm1478_vm8, %v1453_v26 }
 0x62a   :  { %1861 = vmatpush.msrb.mxu2 %v4566_v30  ;;  %1939 = vmatpush.msrb.mxu3 %v4506_v1 }
 0x62b   :  { %1959 = vmatpush.msra.mxu0 %v4508_v12  ;;  %1979 = vmatpush.msra.mxu1 %v4566_v30 }
 0x62c   :  { %1862 = vmatpush.msrb.mxu2 %v4576_v32  ;;  %1940 = vmatpush.msrb.mxu3 %v4518_v25 }
 0x62d   :  { %1960 = vmatpush.msra.mxu0 %v4521_v8  ;;  %1980 = vmatpush.msra.mxu1 %v4576_v32 }
 0x62e   :  { %1863 = vmatpush.msrb.mxu2 %v4586_v54  ;;  %1941 = vmatpush.msrb.mxu3 %v4531_v15 }
 0x62f   :  { %1961 = vmatpush.msra.mxu0 %v4533_v0  ;;  %1981 = vmatpush.msra.mxu1 %v4586_v54 }
 0x630   :  { %3155 = vmatmul.msk.f32.vlgmr.msra.gmra.mxu2 %vm1478_vm8, %v4515_v19  ;;  %3157 = vmatmul.msk.f32.vlgmr.msra.gmra.mxu3 %vm1478_vm8, %v4515_v19 }
 0x631   :  { %1942 = vmatpush.msrb.mxu3 %v4541_v6  ;;  %1834 = vmatmul.f32.vlgmr.msrb.gmra.mxu0 %v5449_v41 }
 0x632   :  { %1854 = vmatmul.f32.vlgmr.msrb.gmra.mxu1 %v5449_v41  ;;  %1962 = vmatpush.msra.mxu0 %v4543_v4 }
 0x633   :  { %1943 = vmatpush.msrb.mxu3 %v4558_v27  ;;  %1864 = vmatpush.msrb.mxu2 %v4692_v50 }
 0x634   :  { %1963 = vmatpush.msra.mxu0 %v4560_v29  ;;  %1982 = vmatpush.msra.mxu1 %v4692_v50 }
 0x635   :  { %1944 = vmatpush.msrb.mxu3 %v4570_v31  ;;  %1865 = vmatpush.msrb.mxu2 %v4696_v62 }
 0x636   :  { %1964 = vmatpush.msra.mxu0 %v4572_v52  ;;  %1983 = vmatpush.msra.mxu1 %v4696_v62 }
 0x637   :  { %1945 = vmatpush.msrb.mxu3 %v4578_v53  ;;  %1866 = vmatpush.msrb.mxu2 %v4698_v7 }
 0x638   :  { %3156 = vmatmul.msk.f32.gmra.mxu2 %vm1478_vm8, %v1453_v26  ;;  %3158 = vmatmul.msk.f32.gmra.mxu3 %vm1478_vm8, %v1453_v26 }
 0x639   :  { %1946 = vmatpush.msrb.mxu3 %v4591_v55  ;;  %1965 = vmatpush.msra.mxu0 %v4580_v33 }
 0x63a   :  { %1984 = vmatpush.msra.mxu1 %v4698_v7  ;;  %1867 = vmatpush.msrb.mxu2 %v4707_v2 }
 0x63b   :  { %1947 = vmatpush.msrb.mxu3 %v4602_v56  ;;  %1966 = vmatpush.msra.mxu0 %v4594_v35 }
 0x63c   :  { %1985 = vmatpush.msra.mxu1 %v4707_v2  ;;  %1868 = vmatpush.msrb.mxu2 %v4711_v61 }
 0x63d   :  { %1948 = vmatpush.msrb.mxu3 %v4608_v57  ;;  %1967 = vmatpush.msra.mxu0 %v4604_v36 }
 0x63e   :  { %1986 = vmatpush.msra.mxu1 %v4711_v61  ;;  %1869 = vmatpush.msrb.mxu2 %v4716_v51 }
 0x63f   :  { %1949 = vmatpush.msrb.mxu3 %v4615_v28  ;;  %1968 = vmatpush.msra.mxu0 %v4610_v37 }
 0x640   :  { %1987 = vmatpush.msra.mxu1 %v4716_v51  ;;  %1870 = vmatpush.msrb.mxu2 %v4721_v43 }
 0x641   :  { %1950 = vmatpush.msrb.mxu3 %v4622_v38  ;;  %1969 = vmatpush.msra.mxu0 %v4617_v58 }
 0x642   :  { %1988 = vmatpush.msra.mxu1 %v4721_v43  ;;  %1871 = vmatpush.msrb.mxu2 %v4726_v45 }
 0x643   :  { %1951 = vmatpush.msrb.mxu3 %v4631_v34  ;;  %1970 = vmatpush.msra.mxu0 %v4624_v59 }
 0x644   :  { %1989 = vmatpush.msra.mxu1 %v4726_v45  ;;  %1872 = vmatpush.msrb.mxu2 %v4731_v46 }
 0x645   :  { %2075 = vmatpush.msra.mxu3 %v4494_v42  ;;  %1971 = vmatpush.msra.mxu0 %v4633_v39 }
 0x646   :  { %1990 = vmatpush.msra.mxu1 %v4731_v46  ;;  %1873 = vmatpush.msrb.mxu2 %v4736_v48 }
 0x647   :  { %2076 = vmatpush.msra.mxu3 %v4498_v24  ;;  %2095 = vmatpush.msrb.mxu0 %v4535_v11 }
 0x648   :  { %1991 = vmatpush.msra.mxu1 %v4736_v48  ;;  %1874 = vmatmul.f32.vlgmr.msrb.gmra.mxu2 %v5449_v41 }
 0x649   :  { %2077 = vmatpush.msra.mxu3 %v4502_v9  ;;  %2096 = vmatpush.msrb.mxu0 %v4539_v44 }
 0x64a   :  { %2055 = vmatpush.msra.mxu2 %v4490_v40  ;;  %2174 = vmatpush.msrb.mxu1 %v4490_v40 }
 0x64b   :  { %2078 = vmatpush.msra.mxu3 %v4508_v12  ;;  %2097 = vmatpush.msrb.mxu0 %v4549_v20 }
 0x64c   :  { %2056 = vmatpush.msra.mxu2 %v4492_v10  ;;  %2175 = vmatpush.msrb.mxu1 %v4492_v10 }
 0x64d   :  { %2079 = vmatpush.msra.mxu3 %v4521_v8  ;;  %2098 = vmatpush.msrb.mxu0 %v4566_v30 }
 0x64e   :  { %2057 = vmatpush.msra.mxu2 %v4500_v47  ;;  %2176 = vmatpush.msrb.mxu1 %v4500_v47 }
 0x64f   :  { %2080 = vmatpush.msra.mxu3 %v4533_v0  ;;  %2099 = vmatpush.msrb.mxu0 %v4576_v32 }
 0x650   :  { %2058 = vmatpush.msra.mxu2 %v4506_v1  ;;  %2177 = vmatpush.msrb.mxu1 %v4506_v1 }
 0x651   :  { %2081 = vmatpush.msra.mxu3 %v4543_v4  ;;  %2100 = vmatpush.msrb.mxu0 %v4586_v54 }
 0x652   :  { %2059 = vmatpush.msra.mxu2 %v4518_v25  ;;  %2178 = vmatpush.msrb.mxu1 %v4518_v25 }
 0x653   :  { %2082 = vmatpush.msra.mxu3 %v4560_v29  ;;  %2101 = vmatpush.msrb.mxu0 %v4692_v50 }
 0x654   :  { %2060 = vmatpush.msra.mxu2 %v4531_v15  ;;  %2179 = vmatpush.msrb.mxu1 %v4531_v15 }
 0x655   :  { %2083 = vmatpush.msra.mxu3 %v4572_v52  ;;  %2102 = vmatpush.msrb.mxu0 %v4696_v62 }
 0x656   :  { %2061 = vmatpush.msra.mxu2 %v4541_v6  ;;  %2180 = vmatpush.msrb.mxu1 %v4541_v6 }
 0x657   :  { %2084 = vmatpush.msra.mxu3 %v4580_v33  ;;  %2103 = vmatpush.msrb.mxu0 %v4698_v7 }
 0x658   :  { %2062 = vmatpush.msra.mxu2 %v4558_v27  ;;  %2181 = vmatpush.msrb.mxu1 %v4558_v27 }
 0x659   :  { %2085 = vmatpush.msra.mxu3 %v4594_v35  ;;  %2104 = vmatpush.msrb.mxu0 %v4707_v2 }
 0x65a   :  { %2063 = vmatpush.msra.mxu2 %v4570_v31  ;;  %2182 = vmatpush.msrb.mxu1 %v4570_v31 }
 0x65b   :  { %2086 = vmatpush.msra.mxu3 %v4604_v36  ;;  %2105 = vmatpush.msrb.mxu0 %v4711_v61 }
 0x65c   :  { %2064 = vmatpush.msra.mxu2 %v4578_v53  ;;  %2183 = vmatpush.msrb.mxu1 %v4578_v53 }
 0x65d   :  { %2087 = vmatpush.msra.mxu3 %v4610_v37  ;;  %2106 = vmatpush.msrb.mxu0 %v4716_v51 }
 0x65e   :  { %2065 = vmatpush.msra.mxu2 %v4591_v55  ;;  %2184 = vmatpush.msrb.mxu1 %v4591_v55 }
 0x65f   :  { %2088 = vmatpush.msra.mxu3 %v4617_v58  ;;  %2107 = vmatpush.msrb.mxu0 %v4721_v43 }
 0x660   :  { %2066 = vmatpush.msra.mxu2 %v4602_v56  ;;  %2185 = vmatpush.msrb.mxu1 %v4602_v56 }
 0x661   :  { %2089 = vmatpush.msra.mxu3 %v4624_v59  ;;  %2108 = vmatpush.msrb.mxu0 %v4726_v45 }
 0x662   :  { %2067 = vmatpush.msra.mxu2 %v4608_v57  ;;  %2186 = vmatpush.msrb.mxu1 %v4608_v57 }
 0x663   :  { %2090 = vmatpush.msra.mxu3 %v4633_v39  ;;  %2109 = vmatpush.msrb.mxu0 %v4731_v46 }
 0x664   :  { %2068 = vmatpush.msra.mxu2 %v4615_v28  ;;  %2187 = vmatpush.msrb.mxu1 %v4615_v28 }
 0x665   :  { %2110 = vmatpush.msrb.mxu0 %v4736_v48 }
 0x666   :  { %2069 = vmatpush.msra.mxu2 %v4622_v38  ;;  %2188 = vmatpush.msrb.mxu1 %v4622_v38 }
 0x668   :  { %2070 = vmatpush.msra.mxu2 %v4631_v34  ;;  %2189 = vmatpush.msrb.mxu1 %v4631_v34 }
 0x66a   :  { %2194 = vmatpush.msrb.mxu2 %v4494_v42 }
 0x66c   :  { %2195 = vmatpush.msrb.mxu2 %v4498_v24 }
 0x66e   :  { %2196 = vmatpush.msrb.mxu2 %v4502_v9 }
 0x670   :  { %2197 = vmatpush.msrb.mxu2 %v4508_v12 }
 0x672   :  { %2198 = vmatpush.msrb.mxu2 %v4521_v8 }
 0x674   :  { %2199 = vmatpush.msrb.mxu2 %v4533_v0 }
 0x676   :  { %2200 = vmatpush.msrb.mxu2 %v4543_v4 }
 0x678   :  { %2201 = vmatpush.msrb.mxu2 %v4560_v29 }
 0x67a   :  { %2202 = vmatpush.msrb.mxu2 %v4572_v52 }
 0x67c   :  { %2203 = vmatpush.msrb.mxu2 %v4580_v33 }
 0x67e   :  { %2204 = vmatpush.msrb.mxu2 %v4594_v35 }
 0x680   :  { %2205 = vmatpush.msrb.mxu2 %v4604_v36 }
 0x682   :  { %2206 = vmatpush.msrb.mxu2 %v4610_v37 }
 0x684   :  { %2207 = vmatpush.msrb.mxu2 %v4617_v58 }
 0x686   :  { %2208 = vmatpush.msrb.mxu2 %v4624_v59 }
 0x688   :  { %2209 = vmatpush.msrb.mxu2 %v4633_v39 }
 0x69e   :  { %v4755_v18 = vpop.f32.mrf.mxu0  ;;  %v1595_v21 = vpop.f32.mrf.mxu1 }
 0x69f   :  { %1667 = vst.sshfl [vmem:[#allocation1 + $0x10] sm:$0xff pattern:$0x73625140] %v4755_v18  ;;  %v1651_v16 = vrot.slane %v4755_v18, 4 }
 0x6a3   :  { %v4762_v3 = vpop.f32.mrf.mxu2  ;;  %v4764_v49 = vpop.f32.mrf.mxu3 }
 0x6a4   :  { %1665 = vst.sshfl [vmem:[#allocation1] sm:$0xff pattern:$0x73625140] %v4762_v3  ;;  %v1650_v5 = vrot.slane %v4764_v49, 6 }
 0x6a5   :  { %1666 = vst.sshfl [vmem:[#allocation1 + $0x8] sm:$0xff pattern:$0x73625140] %v4764_v49 }
 0x6a6   :  { %v1652_v19 = vsel %vm298_vm2, %v4762_v3, %v1650_v5  ;;  %v4781_v13 = vpop.f32.mrf.mxu0 }
 0x6a7   :  { %v1653_v22 = vsel %vm132_vm0, %v1652_v19, %v1651_v16  ;;  %v1711_v23 = vrot.slane %v4781_v13, 4 }
 0x6a8   :  { %1655 = vst [vmem:[#allocation2] sm:$0x3f] %v1653_v22 }
 0x6ab   :  { %v4783_v63 = vpop.f32.mrf.mxu2  ;;  %v4785_v60 = vpop.f32.mrf.mxu3 }
 0x6ac   :  { %v1669_v14 = vld [vmem:[#allocation1 + $0x1] ss:$4 sm:$0xff]  ;;  %v1710_v17 = vrot.slane %v4785_v60, 6 }
 0x6ad   :  { %1671 = vst [vmem:[#allocation2 + $0x6] sm:$0x3f] %v1669_v14 }
 0x6ae   :  { %1672 = vst.sshfl [vmem:[#allocation1] sm:$0xff pattern:$0x73625140] %v1595_v21  ;;  %v1712_v26 = vsel %vm298_vm2, %v4783_v63, %v1710_v17 }
 0x6af   :  { %v1713_v41 = vsel %vm132_vm0, %v1712_v26, %v1711_v23 }
 0x6b0   :  { %1715 = vst [vmem:[#allocation2 + $0x18] sm:$0x3f] %v1713_v41 }
 0x6b3   :  { %v1618_v5 = vpop.f32.mrf.mxu2  ;;  %v1641_v16 = vpop.f32.mrf.mxu3 }
 0x6b4   :  { %v1659_v19 = vrot.slane %v1618_v5, 6  ;;  %1673 = vst.sshfl [vmem:[#allocation1 + $0x8] sm:$0xff pattern:$0x73625140] %v1618_v5  ;;  %v1660_v22 = vrot.slane %v1641_v16, 4 }
 0x6b5   :  { %1674 = vst.sshfl [vmem:[#allocation1 + $0x10] sm:$0xff pattern:$0x73625140] %v1641_v16 }
 0x6b6   :  { %v1661_v14 = vsel %vm298_vm2, %v1595_v21, %v1659_v19  ;;  %v1598_v19 = vpop.f32.mrf.mxu1 }
 0x6b7   :  { %v1662_v17 = vsel %vm132_vm0, %v1661_v14, %v1660_v22 }
 0x6b8   :  { %1664 = vst [vmem:[#allocation3] sm:$0x3f] %v1662_v17 }
 0x6bb   :  { %v4807_v23 = vpop.f32.mrf.mxu2  ;;  %v4809_v26 = vpop.f32.mrf.mxu3 }
 0x6bc   :  { %v1676_v41 = vld [vmem:[#allocation1 + $0x1] ss:$4 sm:$0xff]  ;;  %v1719_v34 = vrot.slane %v4807_v23, 6  ;;  %v1720_v48 = vrot.slane %v4809_v26, 4 }
 0x6bd   :  { %1679 = vst.sshfl [vmem:[#allocation1] sm:$0xff pattern:$0x73625140] %v4762_v3 }
 0x6be   :  { %1680 = vst.sshfl [vmem:[#allocation1 + $0x8] sm:$0xff pattern:$0x73625140] %v4764_v49  ;;  %v1721_v22 = vsel %vm298_vm2, %v1598_v19, %v1719_v34 }
 0x6bf   :  { %1681 = vst.sshfl [vmem:[#allocation1 + $0x10] sm:$0xff pattern:$0x73625140] %v4755_v18  ;;  %v1722_v14 = vsel %vm132_vm0, %v1721_v22, %v1720_v48 }
 0x6c0   :  { %1678 = vst [vmem:[#allocation3 + $0x6] sm:$0x3f] %v1676_v41 }
 0x6c1   :  { %1724 = vst [vmem:[#allocation3 + $0x18] sm:$0x3f] %v1722_v14 }
 0x6c6   :  { %v1683_v17 = vld [vmem:[#allocation1 + $0x2] ss:$4 sm:$0xff] }
 0x6c7   :  { %1686 = vst.sshfl [vmem:[#allocation1] sm:$0xff pattern:$0x73625140] %v1595_v21 }
 0x6c8   :  { %1687 = vst.sshfl [vmem:[#allocation1 + $0x8] sm:$0xff pattern:$0x73625140] %v1618_v5 }
 0x6c9   :  { %1688 = vst.sshfl [vmem:[#allocation1 + $0x10] sm:$0xff pattern:$0x73625140] %v1641_v16 }
 0x6ca   :  { %1685 = vst [vmem:[#allocation2 + $0xc] sm:$0x3f] %v1683_v17  ;;  %v1835_v17 = vpop.f32.mrf.mxu0 }
 0x6d0   :  { %v1690_v34 = vld [vmem:[#allocation1 + $0x2] ss:$4 sm:$0xff] }
 0x6d1   :  { %1693 = vst.sshfl [vmem:[#allocation1] sm:$0xff pattern:$0x73625140] %v4762_v3 }
 0x6d2   :  { %1694 = vst.sshfl [vmem:[#allocation1 + $0x8] sm:$0xff pattern:$0x73625140] %v4764_v49 }
 0x6d3   :  { %1695 = vst.sshfl [vmem:[#allocation1 + $0x10] sm:$0xff pattern:$0x73625140] %v4755_v18 }
 0x6d4   :  { %1692 = vst [vmem:[#allocation3 + $0xc] sm:$0x3f] %v1690_v34 }
 0x6da   :  { %v1697_v48 = vld [vmem:[#allocation1 + $0x3] ss:$4 sm:$0xff] }
 0x6db   :  { %1700 = vst.sshfl [vmem:[#allocation1] sm:$0xff pattern:$0x73625140] %v1595_v21 }
 0x6dc   :  { %1701 = vst.sshfl [vmem:[#allocation1 + $0x8] sm:$0xff pattern:$0x73625140] %v1618_v5 }
 0x6dd   :  { %1702 = vst.sshfl [vmem:[#allocation1 + $0x10] sm:$0xff pattern:$0x73625140] %v1641_v16  ;;  %v1815_v16 = vld [vmem:[#allocation2] sm:$0x3f] }
 0x6de   :  { %1699 = vst [vmem:[#allocation2 + $0x12] sm:$0x3f] %v1697_v48  ;;  %v1855_v48 = vpop.f32.mrf.mxu1 }
 0x6e4   :  { %v1704_v41 = vld [vmem:[#allocation1 + $0x3] ss:$4 sm:$0xff] }
 0x6e5   :  { %1725 = vst.sshfl [vmem:[#allocation1] sm:$0xff pattern:$0x73625140] %v4783_v63 }
 0x6e6   :  { %1726 = vst.sshfl [vmem:[#allocation1 + $0x8] sm:$0xff pattern:$0x73625140] %v4785_v60 }
 0x6e7   :  { %1727 = vst.sshfl [vmem:[#allocation1 + $0x10] sm:$0xff pattern:$0x73625140] %v4781_v13 }
 0x6e8   :  { %1706 = vst [vmem:[#allocation3 + $0x12] sm:$0x3f] %v1704_v41 }
 0x6ee   :  { %v1729_v22 = vld [vmem:[#allocation1 + $0x1] ss:$4 sm:$0xff] }
 0x6ef   :  { %1732 = vst.sshfl [vmem:[#allocation1] sm:$0xff pattern:$0x73625140] %v1598_v19 }
 0x6f0   :  { %1731 = vst [vmem:[#allocation2 + $0x1e] sm:$0x3f] %v1729_v22 }
 0x6f1   :  { %1733 = vst.sshfl [vmem:[#allocation1 + $0x8] sm:$0xff pattern:$0x73625140] %v4807_v23 }
 0x6f2   :  { %1734 = vst.sshfl [vmem:[#allocation1 + $0x10] sm:$0xff pattern:$0x73625140] %v4809_v26 }
 0x6f9   :  { %v1736_v18 = vld [vmem:[#allocation1 + $0x1] ss:$4 sm:$0xff] }
 0x6fa   :  { %1739 = vst.sshfl [vmem:[#allocation1] sm:$0xff pattern:$0x73625140] %v4783_v63 }
 0x6fb   :  { %1740 = vst.sshfl [vmem:[#allocation1 + $0x8] sm:$0xff pattern:$0x73625140] %v4785_v60 }
 0x6fc   :  { %1741 = vst.sshfl [vmem:[#allocation1 + $0x10] sm:$0xff pattern:$0x73625140] %v4781_v13 }
 0x6fd   :  { %1738 = vst [vmem:[#allocation3 + $0x1e] sm:$0x3f] %v1736_v18 }
 0x703   :  { %v1743_v3 = vld [vmem:[#allocation1 + $0x2] ss:$4 sm:$0xff] }
 0x704   :  { %1746 = vst.sshfl [vmem:[#allocation1] sm:$0xff pattern:$0x73625140] %v1598_v19 }
 0x705   :  { %1747 = vst.sshfl [vmem:[#allocation1 + $0x8] sm:$0xff pattern:$0x73625140] %v4807_v23 }
 0x706   :  { %1748 = vst.sshfl [vmem:[#allocation1 + $0x10] sm:$0xff pattern:$0x73625140] %v4809_v26 }
 0x707   :  { %1745 = vst [vmem:[#allocation2 + $0x24] sm:$0x3f] %v1743_v3 }
 0x70d   :  { %v1750_v49 = vld [vmem:[#allocation1 + $0x2] ss:$4 sm:$0xff] }
 0x70e   :  { %1752 = vst [vmem:[#allocation3 + $0x24] sm:$0x3f] %v1750_v49 }
 0x70f   :  { %1753 = vst.sshfl [vmem:[#allocation1] sm:$0xff pattern:$0x73625140] %v4783_v63 }
 0x710   :  { %1754 = vst.sshfl [vmem:[#allocation1 + $0x8] sm:$0xff pattern:$0x73625140] %v4785_v60 }
 0x711   :  { %1755 = vst.sshfl [vmem:[#allocation1 + $0x10] sm:$0xff pattern:$0x73625140] %v4781_v13 }
 0x718   :  { %v1757_v21 = vld [vmem:[#allocation1 + $0x3] ss:$4 sm:$0xff] }
 0x719   :  { %1760 = vst.sshfl [vmem:[#allocation1] sm:$0xff pattern:$0x73625140] %v1598_v19 }
 0x71a   :  { %1761 = vst.sshfl [vmem:[#allocation1 + $0x8] sm:$0xff pattern:$0x73625140] %v4807_v23 }
 0x71b   :  { %1762 = vst.sshfl [vmem:[#allocation1 + $0x10] sm:$0xff pattern:$0x73625140] %v4809_v26 }
 0x71c   :  { %1759 = vst [vmem:[#allocation2 + $0x2a] sm:$0x3f] %v1757_v21 }
 0x722   :  { %v1764_v5 = vld [vmem:[#allocation1 + $0x3] ss:$4 sm:$0xff] }
 0x723   :  { %1766 = vst [vmem:[#allocation3 + $0x2a] sm:$0x3f] %v1764_v5 }
 0x72a   :  { %v1816_v14 = vld [vmem:[#allocation3 + $0x2a] sm:$0x3f] }
 0x72b   :  { %v1817_v34 = vadd.f32 %v1816_v14, %v1815_v16 }
 0x72d   :  { %v1878_v41 = vadd.f32 %v1835_v17, %v1817_v34  ;;  %v1899_v63 = vrot.slane %v1817_v34, 2  ;;  %v1922_v46 = vrot.slane %v1817_v34, 4 }
 0x72f   :  { %v3159_v22 = vmul.f32 -1.442695, %v1878_v41  ;;  %v1901_v60 = vadd.f32 %v1899_v63, %v1855_v48 }
 0x731   :  { %3276 = vpow2.f32 %v3159_v22  ;;  %v3160_v13 = vmul.f32 -1.442695, %v1901_v60  ;;  %v1875_v22 = vpop.f32.mrf.mxu2 }
 0x733   :  { %3278 = vpow2.f32 %v3160_v13 }
 0x737   :  { %v3277_v19 = vpop.eup %3276 }
 0x738   :  { %v1882_v18 = vadd.f32 1.0, %v3277_v19 }
 0x739   :  { %v3279_v23 = vpop.eup %3278 }
 0x73a   :  { %3280 = vrcp.f32 %v1882_v18  ;;  %v1905_v26 = vadd.f32 1.0, %v3279_v23  ;;  %v1894_v16 = vand.u32 2147483648, %v1882_v18  ;;  %v1892_v41 = vand.u32 2147483647, %v1882_v18 }
 0x73b   :  { %vm1888_vm10 = vweird.f32 %v1882_v18 }
 0x73c   :  { %3282 = vrcp.f32 %v1905_v26  ;;  %v1895_v60 = vor.u32 1.1754944e-38, %v1894_v16  ;;  %vm1893_vm14 = vcmp.eq.f32.partialorder %v1892_v41, 8.507059e+37  ;;  %v1917_v59 = vand.u32 2147483648, %v1905_v26 }
 0x73d   :  { %vm1911_vm1 = vweird.f32 %v1905_v26 }
 0x73e   :  { %v1918_v58 = vor.u32 1.1754944e-38, %v1917_v59 }
 0x740   :  { %v3281_v3 = vpop.eup %3280 }
 0x741   :  { %v1884_v49 = vmul.f32 %v3281_v3, %v1882_v18  ;;  %vm1889_vm9 = vweird.f32 %v3281_v3 }
 0x742   :  { %v3283_v21 = vpop.eup %3282  ;;  %vm1890_vm13 = vmor %vm1888_vm10, %vm1889_vm9 }
 0x743   :  { %v1907_v5 = vmul.f32 %v3283_v21, %v1905_v26  ;;  %v1885_v39 = vsub.f32 1.0, %v1884_v49  ;;  %vm1912_vm15 = vweird.f32 %v3283_v21  ;;  %v1915_v49 = vand.u32 2147483647, %v1905_v26 }
 0x744   :  { %vm1913_vm3 = vmor %vm1911_vm1, %vm1912_vm15 }
 0x745   :  { %v1908_v14 = vsub.f32 1.0, %v1907_v5  ;;  %v1886_v17 = vmul.f32 %v3281_v3, %v1885_v39  ;;  %vm1916_vm4 = vcmp.eq.f32.partialorder %v1915_v49, 8.507059e+37 }
 0x747   :  { %v1909_v48 = vmul.f32 %v3283_v21, %v1908_v14  ;;  %v1887_v63 = vadd.f32 %v3281_v3, %v1886_v17 }
 0x749   :  { %v1891_v13 = vsel %vm1890_vm13, %v3281_v3, %v1887_v63  ;;  %v1910_v23 = vadd.f32 %v3283_v21, %v1909_v48 }
 0x74a   :  { %v1896_v19 = vsel %vm1893_vm14, %v1895_v60, %v1891_v13 }
 0x74b   :  { %v1921_v38 = vmul.f32 %v1896_v19, %v1875_v22  ;;  %v1914_v5 = vsel %vm1913_vm3, %v3283_v21, %v1910_v23 }
 0x74c   :  { %v1919_v18 = vsel %vm1916_vm4, %v1918_v58, %v1914_v5  ;;  %v1933_v58 = vld [vmem:[#allocation2 + $0x6] sm:$0x3f] }
 0x74d   :  { %v1924_v39 = vadd.f32 %v1922_v46, %v1921_v38  ;;  %v1926_v14 = vsub.f32 1.0, %v1919_v18  ;;  %v1928_v3 = vmul.f32 0.0, %v1919_v18 }
 0x74f   :  { %3284 = vtanh.f32 %v1924_v39 }
 0x755   :  { %v3285_v17 = vpop.eup %3284 }
 0x756   :  { %v1927_v16 = vmul.f32 %v3285_v17, %v1926_v14 }
 0x758   :  { %v4847_v41 = vadd.f32 %v1928_v3, %v1927_v16 }
 0x75a   :  { %1930 = vst.msk [vmem:[#allocation5] sm:$0x3] %vm591_vm11, %v4847_v41  ;;  %1952 = vmatmul.f32.vlgmr.msrb.gmra.mxu3 %v4847_v41  ;;  %1972 = vmatmul.f32.vlgmr.msra.gmra.mxu0 %v4847_v41 }
 0x75b   :  { %1932 = vst.msk [vmem:[#allocation5 + $0xe] sm:$0x3] %vm594_vm12, %v4847_v41  ;;  %1992 = vmatmul.f32.vlgmr.msra.gmra.mxu1 %v4847_v41  ;;  %2214 = vmatpush.msrb.mxu3 %v4535_v11 }
 0x75c   :  { %2293 = vmatpush.msra.mxu0 %v4490_v40  ;;  %2313 = vmatpush.msra.mxu1 %v4494_v42  ;;  %v5452_v40 = vld [vmem:[#allocation22_spill] sm:$0xff]  ;;  %v5454_v42 = vld [vmem:[#allocation25_spill] sm:$0xff] }
 0x75d   :  { %2215 = vmatpush.msrb.mxu3 %v4539_v44 }
 0x75e   :  { %2294 = vmatpush.msra.mxu0 %v4492_v10  ;;  %2314 = vmatpush.msra.mxu1 %v4498_v24  ;;  %v5453_v10 = vld [vmem:[#allocation21_spill] sm:$0xff]  ;;  %v5455_v24 = vld [vmem:[#allocation20_spill] sm:$0xff] }
 0x75f   :  { %2216 = vmatpush.msrb.mxu3 %v4549_v20 }
 0x760   :  { %2295 = vmatpush.msra.mxu0 %v4500_v47  ;;  %2315 = vmatpush.msra.mxu1 %v4502_v9  ;;  %v5456_v47 = vld [vmem:[#allocation24_spill] sm:$0xff]  ;;  %v5457_v9 = vld [vmem:[#allocation23_spill] sm:$0xff] }
 0x761   :  { %2217 = vmatpush.msrb.mxu3 %v4566_v30 }
 0x762   :  { %2296 = vmatpush.msra.mxu0 %v4506_v1  ;;  %2316 = vmatpush.msra.mxu1 %v4508_v12  ;;  %v5458_v1 = vld [vmem:[#allocation26_spill] sm:$0xff] }
 0x763   :  { %2218 = vmatpush.msrb.mxu3 %v4576_v32  ;;  %v1934_v12 = vld [vmem:[#allocation3 + $0x24] sm:$0x3f] }
 0x764   :  { %2297 = vmatpush.msra.mxu0 %v4518_v25  ;;  %2317 = vmatpush.msra.mxu1 %v4521_v8  ;;  %v1935_v38 = vadd.f32 %v1934_v12, %v1933_v58 }
 0x765   :  { %2219 = vmatpush.msrb.mxu3 %v4586_v54 }
 0x766   :  { %2298 = vmatpush.msra.mxu0 %v4531_v15  ;;  %2318 = vmatpush.msra.mxu1 %v4533_v0  ;;  %v2017_v59 = vrot.slane %v1935_v38, 2 }
 0x767   :  { %2220 = vmatpush.msrb.mxu3 %v4692_v50 }
 0x768   :  { %2299 = vmatpush.msra.mxu0 %v4541_v6  ;;  %2319 = vmatpush.msra.mxu1 %v4543_v4 }
 0x769   :  { %2221 = vmatpush.msrb.mxu3 %v4696_v62 }
 0x76a   :  { %2300 = vmatpush.msra.mxu0 %v4558_v27  ;;  %2320 = vmatpush.msra.mxu1 %v4560_v29 }
 0x76b   :  { %2222 = vmatpush.msrb.mxu3 %v4698_v7 }
 0x76c   :  { %2301 = vmatpush.msra.mxu0 %v4570_v31  ;;  %2321 = vmatpush.msra.mxu1 %v4572_v52 }
 0x76d   :  { %2223 = vmatpush.msrb.mxu3 %v4707_v2 }
 0x76e   :  { %2302 = vmatpush.msra.mxu0 %v4578_v53  ;;  %2322 = vmatpush.msra.mxu1 %v4580_v33 }
 0x76f   :  { %2224 = vmatpush.msrb.mxu3 %v4711_v61 }
 0x770   :  { %2303 = vmatpush.msra.mxu0 %v4591_v55  ;;  %2323 = vmatpush.msra.mxu1 %v4594_v35 }
 0x771   :  { %2225 = vmatpush.msrb.mxu3 %v4716_v51 }
 0x772   :  { %2304 = vmatpush.msra.mxu0 %v4602_v56  ;;  %2324 = vmatpush.msra.mxu1 %v4604_v36 }
 0x773   :  { %2226 = vmatpush.msrb.mxu3 %v4721_v43 }
 0x774   :  { %2305 = vmatpush.msra.mxu0 %v4608_v57  ;;  %2325 = vmatpush.msra.mxu1 %v4610_v37 }
 0x775   :  { %2227 = vmatpush.msrb.mxu3 %v4726_v45 }
 0x776   :  { %2306 = vmatpush.msra.mxu0 %v4615_v28  ;;  %2326 = vmatpush.msra.mxu1 %v5452_v40 }
 0x777   :  { %2228 = vmatpush.msrb.mxu3 %v5453_v10 }
 0x778   :  { %2307 = vmatpush.msra.mxu0 %v5454_v42  ;;  %2327 = vmatpush.msra.mxu1 %v5455_v24 }
 0x779   :  { %2229 = vmatpush.msrb.mxu3 %v5456_v47 }
 0x77a   :  { %2308 = vmatpush.msra.mxu0 %v5457_v9  ;;  %2328 = vmatpush.msra.mxu1 %v5458_v1 }
 0x7d7   :  { %v1973_v46 = vpop.f32.mrf.mxu0 }
 0x7d8   :  { %v2019_v34 = vadd.f32 %v2017_v59, %v1973_v46 }
 0x7da   :  { %v3162_v26 = vmul.f32 -1.442695, %v2019_v34 }
 0x7dc   :  { %3286 = vpow2.f32 %v3162_v26  ;;  %v1993_v26 = vpop.f32.mrf.mxu1 }
 0x7dd   :  { %v1953_v21 = vpop.f32.mrf.mxu3 }
 0x7de   :  { %v1996_v48 = vadd.f32 %v1953_v21, %v1935_v38 }
 0x7e0   :  { %v3161_v63 = vmul.f32 -1.442695, %v1996_v48 }
 0x7e2   :  { %v3287_v22 = vpop.eup %3286  ;;  %3288 = vpow2.f32 %v3161_v63  ;;  %v2040_v63 = vrot.slane %v1935_v38, 4  ;;  %v4915_v38 = vld [vmem:[#allocation13 + $0x168] sm:$0xff] }
 0x7e3   :  { %v2023_v60 = vadd.f32 1.0, %v3287_v22 }
 0x7e5   :  { %3290 = vrcp.f32 %v2023_v60  ;;  %v2035_v48 = vand.u32 2147483648, %v2023_v60  ;;  %vm2029_vm14 = vweird.f32 %v2023_v60 }
 0x7e8   :  { %v3289_v13 = vpop.eup %3288 }
 0x7e9   :  { %v2000_v19 = vadd.f32 1.0, %v3289_v13  ;;  %v2033_v13 = vand.u32 2147483647, %v2023_v60 }
 0x7eb   :  { %3292 = vrcp.f32 %v2000_v19  ;;  %v3291_v23 = vpop.eup %3290  ;;  %v2012_v17 = vand.u32 2147483648, %v2000_v19  ;;  %v2010_v3 = vand.u32 2147483647, %v2000_v19  ;;  %vm2006_vm6 = vweird.f32 %v2000_v19 }
 0x7ec   :  { %v2025_v49 = vmul.f32 %v3291_v23, %v2023_v60  ;;  %vm2030_vm13 = vweird.f32 %v3291_v23  ;;  %vm2034_vm1 = vcmp.eq.f32.partialorder %v2033_v13, 8.507059e+37  ;;  %v4922_v60 = vld [vmem:[#allocation13 + $0x150] sm:$0xff] }
 0x7ed   :  { %v2013_v59 = vor.u32 1.1754944e-38, %v2012_v17  ;;  %vm2011_vm10 = vcmp.eq.f32.partialorder %v2010_v3, 8.507059e+37  ;;  %vm2031_vm15 = vmor %vm2029_vm14, %vm2030_vm13 }
 0x7ee   :  { %v2026_v18 = vsub.f32 1.0, %v2025_v49 }
 0x7f0   :  { %v2027_v12 = vmul.f32 %v3291_v23, %v2026_v18 }
 0x7f1   :  { %v3293_v39 = vpop.eup %3292 }
 0x7f2   :  { %v2002_v5 = vmul.f32 %v3293_v39, %v2000_v19  ;;  %vm2007_vm5 = vweird.f32 %v3293_v39  ;;  %v2028_v34 = vadd.f32 %v3291_v23, %v2027_v12  ;;  %v4932_v12 = vld [vmem:[#allocation13 + $0x140] sm:$0xff] }
 0x7f3   :  { %vm2008_vm9 = vmor %vm2006_vm6, %vm2007_vm5 }
 0x7f4   :  { %v2003_v14 = vsub.f32 1.0, %v2002_v5  ;;  %v2032_v5 = vsel %vm2031_vm15, %v3291_v23, %v2028_v34  ;;  %v4925_v23 = vld [vmem:[#allocation13 + $0x158] sm:$0xff] }
 0x7f6   :  { %v2004_v16 = vmul.f32 %v3293_v39, %v2003_v14  ;;  %v2036_v14 = vor.u32 1.1754944e-38, %v2035_v48 }
 0x7f8   :  { %v2005_v58 = vadd.f32 %v3293_v39, %v2004_v16  ;;  %v2037_v19 = vsel %vm2034_vm1, %v2036_v14, %v2032_v5 }
 0x7f9   :  { %v2044_v18 = vsub.f32 1.0, %v2037_v19  ;;  %v2046_v16 = vmul.f32 %v2037_v19, %v4847_v41  ;;  %v4918_v41 = vld [vmem:[#allocation13 + $0x170] sm:$0xff] }
 0x7fa   :  { %v2009_v46 = vsel %vm2008_vm9, %v3293_v39, %v2005_v58  ;;  %v4939_v58 = vld [vmem:[#allocation13 + $0x128] sm:$0xff] }
 0x7fb   :  { %v2014_v21 = vsel %vm2011_vm10, %v2013_v59, %v2009_v46 }
 0x7fc   :  { %v2039_v22 = vmul.f32 %v2014_v21, %v1993_v26 }
 0x7fe   :  { %v2042_v49 = vadd.f32 %v2040_v63, %v2039_v22 }
 0x800   :  { %3294 = vtanh.f32 %v2042_v49 }
 0x806   :  { %v3295_v17 = vpop.eup %3294 }
 0x807   :  { %v2045_v39 = vmul.f32 %v3295_v17, %v2044_v18 }
 0x809   :  { %v4905_v3 = vadd.f32 %v2046_v16, %v2045_v39  ;;  %v4988_v39 = vld [vmem:[#allocation13 + $0x178] sm:$0xff]  ;;  %v4993_v16 = vld [vmem:[#allocation13 + $0x160] sm:$0xff] }
 0x80b   :  { %2049 = vst.msk [vmem:[#allocation5 + $0x2] sm:$0x3] %vm591_vm11, %v4905_v3  ;;  %2071 = vmatmul.f32.vlgmr.msra.gmra.mxu2 %v4905_v3  ;;  %2091 = vmatmul.f32.vlgmr.msra.gmra.mxu3 %v4905_v3 }
 0x80c   :  { %2051 = vst.msk [vmem:[#allocation5 + $0xc] sm:$0x3] %vm594_vm12, %v4905_v3  ;;  %2111 = vmatmul.f32.vlgmr.msrb.gmra.mxu0 %v4905_v3  ;;  %2333 = vmatpush.msra.mxu2 %v4535_v11  ;;  %v4929_v11 = vld [vmem:[#allocation13 + $0x138] sm:$0xff] }
 0x80d   :  { %2410 = vmatpush.msra.mxu3 %v4915_v38  ;;  %2430 = vmatpush.msrb.mxu0 %v4918_v41 }
 0x80e   :  { %2334 = vmatpush.msra.mxu2 %v4539_v44  ;;  %v4936_v44 = vld [vmem:[#allocation13 + $0x120] sm:$0xff] }
 0x80f   :  { %2411 = vmatpush.msra.mxu3 %v4922_v60  ;;  %2431 = vmatpush.msrb.mxu0 %v4925_v23 }
 0x810   :  { %2335 = vmatpush.msra.mxu2 %v4549_v20 }
 0x811   :  { %2412 = vmatpush.msra.mxu3 %v4929_v11  ;;  %2432 = vmatpush.msrb.mxu0 %v4932_v12 }
 0x812   :  { %2336 = vmatpush.msra.mxu2 %v4566_v30 }
 0x813   :  { %2413 = vmatpush.msra.mxu3 %v4936_v44  ;;  %2433 = vmatpush.msrb.mxu0 %v4939_v58 }
 0x814   :  { %2337 = vmatpush.msra.mxu2 %v4576_v32 }
 0x815   :  { %2414 = vmatpush.msra.mxu3 %v4518_v25  ;;  %2434 = vmatpush.msrb.mxu0 %v4521_v8  ;;  %v2053_v25 = vld [vmem:[#allocation3 + $0x1e] sm:$0x3f] }
 0x816   :  { %2338 = vmatpush.msra.mxu2 %v4586_v54  ;;  %v2052_v8 = vld [vmem:[#allocation2 + $0xc] sm:$0x3f] }
 0x817   :  { %2415 = vmatpush.msra.mxu3 %v4531_v15  ;;  %2435 = vmatpush.msrb.mxu0 %v4533_v0  ;;  %v2054_v15 = vadd.f32 %v2053_v25, %v2052_v8  ;;  %v5003_v25 = vld [vmem:[#allocation13 + $0x130] sm:$0xff]  ;;  %v5008_v8 = vld [vmem:[#allocation13 + $0x118] sm:$0xff] }
 0x818   :  { %2339 = vmatpush.msra.mxu2 %v4692_v50 }
 0x819   :  { %2416 = vmatpush.msra.mxu3 %v4541_v6  ;;  %2436 = vmatpush.msrb.mxu0 %v4543_v4  ;;  %v2136_v0 = vrot.slane %v2054_v15, 2  ;;  %v2159_v26 = vrot.slane %v2054_v15, 4 }
 0x81a   :  { %2340 = vmatpush.msra.mxu2 %v4696_v62 }
 0x81b   :  { %2417 = vmatpush.msra.mxu3 %v4558_v27  ;;  %2437 = vmatpush.msrb.mxu0 %v4560_v29 }
 0x81c   :  { %2341 = vmatpush.msra.mxu2 %v4698_v7 }
 0x81d   :  { %2418 = vmatpush.msra.mxu3 %v4570_v31  ;;  %2438 = vmatpush.msrb.mxu0 %v4572_v52 }
 0x81e   :  { %2342 = vmatpush.msra.mxu2 %v4707_v2 }
 0x81f   :  { %2419 = vmatpush.msra.mxu3 %v4578_v53  ;;  %2439 = vmatpush.msrb.mxu0 %v4580_v33 }
 0x820   :  { %2343 = vmatpush.msra.mxu2 %v4711_v61 }
 0x821   :  { %2420 = vmatpush.msra.mxu3 %v4591_v55  ;;  %2440 = vmatpush.msrb.mxu0 %v4594_v35 }
 0x822   :  { %2344 = vmatpush.msra.mxu2 %v4716_v51 }
 0x823   :  { %2421 = vmatpush.msra.mxu3 %v4602_v56  ;;  %2441 = vmatpush.msrb.mxu0 %v4604_v36 }
 0x824   :  { %2345 = vmatpush.msra.mxu2 %v4721_v43 }
 0x825   :  { %2422 = vmatpush.msra.mxu3 %v4608_v57  ;;  %2442 = vmatpush.msrb.mxu0 %v4610_v37 }
 0x826   :  { %2346 = vmatpush.msra.mxu2 %v4726_v45 }
 0x827   :  { %2423 = vmatpush.msra.mxu3 %v4615_v28  ;;  %2443 = vmatpush.msrb.mxu0 %v5452_v40 }
 0x828   :  { %2347 = vmatpush.msra.mxu2 %v5453_v10 }
 0x829   :  { %2424 = vmatpush.msra.mxu3 %v5454_v42  ;;  %2444 = vmatpush.msrb.mxu0 %v5455_v24 }
 0x82a   :  { %2348 = vmatpush.msra.mxu2 %v5456_v47 }
 0x82b   :  { %2425 = vmatpush.msra.mxu3 %v5457_v9  ;;  %2445 = vmatpush.msrb.mxu0 %v5458_v1 }
 0x889   :  { %v2112_v1 = vpop.f32.mrf.mxu0 }
 0x88e   :  { %v2072_v6 = vpop.f32.mrf.mxu2  ;;  %v2092_v4 = vpop.f32.mrf.mxu3 }
 0x88f   :  { %v2115_v20 = vadd.f32 %v2072_v6, %v2054_v15  ;;  %v2138_v27 = vadd.f32 %v2136_v0, %v2092_v4  ;;  %v5011_v15 = vld [vmem:[#allocation13 + $0x108] sm:$0xff]  ;;  %v5014_v0 = vld [vmem:[#allocation13 + $0x110] sm:$0xff]  ;;  %v5017_v6 = vld [vmem:[#allocation13 + $0x100] sm:$0xff] }
 0x890   :  { %v5020_v4 = vld [vmem:[#allocation13 + $0xf0] sm:$0xff] }
 0x891   :  { %v3163_v29 = vmul.f32 -1.442695, %v2115_v20  ;;  %v3164_v30 = vmul.f32 -1.442695, %v2138_v27  ;;  %v5023_v20 = vld [vmem:[#allocation13 + $0xf8] sm:$0xff] }
 0x892   :  { %v5027_v27 = vld [vmem:[#allocation13 + $0xd8] sm:$0xff] }
 0x893   :  { %3296 = vpow2.f32 %v3163_v29  ;;  %v5030_v29 = vld [vmem:[#allocation13 + $0xe0] sm:$0xff] }
 0x894   :  { %3298 = vpow2.f32 %v3164_v30  ;;  %v5034_v30 = vld [vmem:[#allocation13 + $0xc0] sm:$0xff] }
 0x899   :  { %v3297_v31 = vpop.eup %3296 }
 0x89a   :  { %v3299_v52 = vpop.eup %3298  ;;  %v2119_v32 = vadd.f32 1.0, %v3297_v31  ;;  %v5037_v31 = vld [vmem:[#allocation13 + $0xc8] sm:$0xff] }
 0x89b   :  { %v2142_v53 = vadd.f32 1.0, %v3299_v52  ;;  %v5044_v52 = vld [vmem:[#allocation13 + $0xb0] sm:$0xff] }
 0x89c   :  { %3300 = vrcp.f32 %v2119_v32  ;;  %v2131_v36 = vand.u32 2147483648, %v2119_v32  ;;  %v2129_v28 = vand.u32 2147483647, %v2119_v32  ;;  %vm2125_vm4 = vweird.f32 %v2119_v32 }
 0x89d   :  { %3302 = vrcp.f32 %v2142_v53  ;;  %v2154_v21 = vand.u32 2147483648, %v2142_v53  ;;  %vm2148_vm10 = vweird.f32 %v2142_v53  ;;  %v2152_v48 = vand.u32 2147483647, %v2142_v53 }
 0x89e   :  { %v2132_v24 = vor.u32 1.1754944e-38, %v2131_v36  ;;  %vm2130_vm6 = vcmp.eq.f32.partialorder %v2129_v28, 8.507059e+37  ;;  %v2171_v36 = vld [vmem:[#allocation2 + $0x12] sm:$0x3f] }
 0x89f   :  { %v2155_v13 = vor.u32 1.1754944e-38, %v2154_v21  ;;  %vm2153_vm14 = vcmp.eq.f32.partialorder %v2152_v48, 8.507059e+37 }
 0x8a2   :  { %v3301_v33 = vpop.eup %3300 }
 0x8a3   :  { %v3303_v54 = vpop.eup %3302  ;;  %v2121_v55 = vmul.f32 %v3301_v33, %v2119_v32  ;;  %vm2126_vm3 = vweird.f32 %v3301_v33  ;;  %v5051_v32 = vld [vmem:[#allocation13 + $0x98] sm:$0xff] }
 0x8a4   :  { %v2144_v35 = vmul.f32 %v3303_v54, %v2142_v53  ;;  %vm2127_vm5 = vmor %vm2125_vm4, %vm2126_vm3  ;;  %vm2149_vm9 = vweird.f32 %v3303_v54  ;;  %v5058_v53 = vld [vmem:[#allocation13 + $0x80] sm:$0xff] }
 0x8a5   :  { %v2122_v56 = vsub.f32 1.0, %v2121_v55  ;;  %vm2150_vm13 = vmor %vm2148_vm10, %vm2149_vm9  ;;  %v5079_v55 = vld [vmem:[#allocation13 + $0x38] sm:$0xff] }
 0x8a6   :  { %v2145_v57 = vsub.f32 1.0, %v2144_v35  ;;  %v5086_v35 = vld [vmem:[#allocation13 + $0x20] sm:$0xff] }
 0x8a7   :  { %v2123_v37 = vmul.f32 %v3301_v33, %v2122_v56  ;;  %v5093_v56 = vld [vmem:[#allocation13 + $0x8] sm:$0xff] }
 0x8a8   :  { %v2146_v40 = vmul.f32 %v3303_v54, %v2145_v57 }
 0x8a9   :  { %v2124_v42 = vadd.f32 %v3301_v33, %v2123_v37 }
 0x8aa   :  { %v2147_v46 = vadd.f32 %v3303_v54, %v2146_v40 }
 0x8ab   :  { %v2128_v9 = vsel %vm2127_vm5, %v3301_v33, %v2124_v42  ;;  %v5065_v33 = vld [vmem:[#allocation13 + $0x68] sm:$0xff] }
 0x8ac   :  { %v2133_v59 = vsel %vm2130_vm6, %v2132_v24, %v2128_v9  ;;  %v2151_v22 = vsel %vm2150_vm13, %v3303_v54, %v2147_v46  ;;  %v5072_v54 = vld [vmem:[#allocation13 + $0x50] sm:$0xff] }
 0x8ad   :  { %v2158_v34 = vmul.f32 %v2133_v59, %v2112_v1  ;;  %v2156_v49 = vsel %vm2153_vm14, %v2155_v13, %v2151_v22 }
 0x8ae   :  { %v2163_v5 = vsub.f32 1.0, %v2156_v49  ;;  %v2165_v18 = vmul.f32 %v2156_v49, %v4905_v3  ;;  %v4998_v3 = vld [vmem:[#allocation13 + $0x148] sm:$0xff] }
 0x8af   :  { %v2161_v63 = vadd.f32 %v2159_v26, %v2158_v34 }
 0x8b1   :  { %3304 = vtanh.f32 %v2161_v63 }
 0x8b7   :  { %v3305_v14 = vpop.eup %3304 }
 0x8b8   :  { %v2164_v19 = vmul.f32 %v3305_v14, %v2163_v5 }
 0x8ba   :  { %v4979_v17 = vadd.f32 %v2165_v18, %v2164_v19 }
 0x8bc   :  { %2168 = vst.msk [vmem:[#allocation5 + $0x4] sm:$0x3] %vm591_vm11, %v4979_v17  ;;  %2190 = vmatmul.f32.vlgmr.msrb.gmra.mxu1 %v4979_v17  ;;  %2210 = vmatmul.f32.vlgmr.msrb.gmra.mxu2 %v4979_v17 }
 0x8bd   :  { %2170 = vst.msk [vmem:[#allocation5 + $0xa] sm:$0x3] %vm594_vm12, %v4979_v17  ;;  %2230 = vmatmul.f32.vlgmr.msrb.gmra.mxu3 %v4979_v17  ;;  %2450 = vmatpush.msrb.mxu1 %v4988_v39 }
 0x8be   :  { %2527 = vmatpush.msrb.mxu2 %v4915_v38  ;;  %2547 = vmatpush.msrb.mxu3 %v4918_v41 }
 0x8bf   :  { %2451 = vmatpush.msrb.mxu1 %v4993_v16 }
 0x8c0   :  { %2528 = vmatpush.msrb.mxu2 %v4922_v60  ;;  %2548 = vmatpush.msrb.mxu3 %v4925_v23 }
 0x8c1   :  { %2452 = vmatpush.msrb.mxu1 %v4998_v3 }
 0x8c2   :  { %2529 = vmatpush.msrb.mxu2 %v4929_v11  ;;  %2549 = vmatpush.msrb.mxu3 %v4932_v12 }
 0x8c3   :  { %2453 = vmatpush.msrb.mxu1 %v5003_v25 }
 0x8c4   :  { %2530 = vmatpush.msrb.mxu2 %v4936_v44  ;;  %2550 = vmatpush.msrb.mxu3 %v4939_v58 }
 0x8c5   :  { %2454 = vmatpush.msrb.mxu1 %v5008_v8 }
 0x8c6   :  { %2531 = vmatpush.msrb.mxu2 %v5011_v15  ;;  %2551 = vmatpush.msrb.mxu3 %v5014_v0 }
 0x8c7   :  { %2455 = vmatpush.msrb.mxu1 %v5017_v6 }
 0x8c8   :  { %2532 = vmatpush.msrb.mxu2 %v5020_v4  ;;  %2552 = vmatpush.msrb.mxu3 %v5023_v20 }
 0x8c9   :  { %2456 = vmatpush.msrb.mxu1 %v4692_v50  ;;  %v5041_v50 = vld [vmem:[#allocation13 + $0xa8] sm:$0xff] }
 0x8ca   :  { %2533 = vmatpush.msrb.mxu2 %v5027_v27  ;;  %2553 = vmatpush.msrb.mxu3 %v5030_v29 }
 0x8cb   :  { %2457 = vmatpush.msrb.mxu1 %v4696_v62  ;;  %v5048_v62 = vld [vmem:[#allocation13 + $0x90] sm:$0xff] }
 0x8cc   :  { %2534 = vmatpush.msrb.mxu2 %v5034_v30  ;;  %2554 = vmatpush.msrb.mxu3 %v5037_v31 }
 0x8cd   :  { %2458 = vmatpush.msrb.mxu1 %v4698_v7  ;;  %v5055_v7 = vld [vmem:[#allocation13 + $0x78] sm:$0xff] }
 0x8ce   :  { %2535 = vmatpush.msrb.mxu2 %v5041_v50  ;;  %2555 = vmatpush.msrb.mxu3 %v5044_v52 }
 0x8cf   :  { %2459 = vmatpush.msrb.mxu1 %v4707_v2  ;;  %v5062_v2 = vld [vmem:[#allocation13 + $0x60] sm:$0xff] }
 0x8d0   :  { %2536 = vmatpush.msrb.mxu2 %v5048_v62  ;;  %2556 = vmatpush.msrb.mxu3 %v5051_v32 }
 0x8d1   :  { %2460 = vmatpush.msrb.mxu1 %v4711_v61  ;;  %v5069_v61 = vld [vmem:[#allocation13 + $0x48] sm:$0xff] }
 0x8d2   :  { %2537 = vmatpush.msrb.mxu2 %v5055_v7  ;;  %2557 = vmatpush.msrb.mxu3 %v5058_v53 }
 0x8d3   :  { %2461 = vmatpush.msrb.mxu1 %v4716_v51  ;;  %v5076_v51 = vld [vmem:[#allocation13 + $0x30] sm:$0xff] }
 0x8d4   :  { %2538 = vmatpush.msrb.mxu2 %v5062_v2  ;;  %2558 = vmatpush.msrb.mxu3 %v5065_v33 }
 0x8d5   :  { %2462 = vmatpush.msrb.mxu1 %v4721_v43  ;;  %v5083_v43 = vld [vmem:[#allocation13 + $0x18] sm:$0xff] }
 0x8d6   :  { %2539 = vmatpush.msrb.mxu2 %v5069_v61  ;;  %2559 = vmatpush.msrb.mxu3 %v5072_v54 }
 0x8d7   :  { %2463 = vmatpush.msrb.mxu1 %v4726_v45  ;;  %v5090_v45 = vld [vmem:[#allocation13] sm:$0xff] }
 0x8d8   :  { %2540 = vmatpush.msrb.mxu2 %v5076_v51  ;;  %2560 = vmatpush.msrb.mxu3 %v5079_v55 }
 0x8d9   :  { %2464 = vmatpush.msrb.mxu1 %v5453_v10  ;;  %v2172_v10 = vld [vmem:[#allocation3 + $0x18] sm:$0x3f] }
 0x8da   :  { %2541 = vmatpush.msrb.mxu2 %v5083_v43  ;;  %2561 = vmatpush.msrb.mxu3 %v5086_v35  ;;  %v2173_v57 = vadd.f32 %v2172_v10, %v2171_v36 }
 0x8db   :  { %2465 = vmatpush.msrb.mxu1 %v5456_v47 }
 0x8dc   :  { %2542 = vmatpush.msrb.mxu2 %v5090_v45  ;;  %2562 = vmatpush.msrb.mxu3 %v5093_v56  ;;  %v2255_v42 = vrot.slane %v2173_v57, 2 }
 0x939   :  { %v2191_v37 = vpop.f32.mrf.mxu1 }
 0x93a   :  { %v2234_v28 = vadd.f32 %v2191_v37, %v2173_v57 }
 0x93c   :  { %v3165_v40 = vmul.f32 -1.442695, %v2234_v28  ;;  %v2278_v28 = vrot.slane %v2173_v57, 4 }
 0x93e   :  { %3306 = vpow2.f32 %v3165_v40 }
 0x93f   :  { %v2211_v24 = vpop.f32.mrf.mxu2 }
 0x940   :  { %v2257_v9 = vadd.f32 %v2255_v42, %v2211_v24  ;;  %v2231_v10 = vpop.f32.mrf.mxu3 }
 0x942   :  { %v3166_v1 = vmul.f32 -1.442695, %v2257_v9 }
 0x944   :  { %v3307_v47 = vpop.eup %3306  ;;  %3308 = vpow2.f32 %v3166_v1 }
 0x945   :  { %v2238_v59 = vadd.f32 1.0, %v3307_v47 }
 0x947   :  { %3310 = vrcp.f32 %v2238_v59  ;;  %v2250_v63 = vand.u32 2147483648, %v2238_v59  ;;  %v2248_v13 = vand.u32 2147483647, %v2238_v59  ;;  %vm2244_vm1 = vweird.f32 %v2238_v59 }
 0x949   :  { %v2251_v19 = vor.u32 1.1754944e-38, %v2250_v63  ;;  %vm2249_vm4 = vcmp.eq.f32.partialorder %v2248_v13, 8.507059e+37 }
 0x94a   :  { %v3309_v46 = vpop.eup %3308 }
 0x94b   :  { %v2261_v34 = vadd.f32 1.0, %v3309_v46 }
 0x94d   :  { %v3311_v26 = vpop.eup %3310  ;;  %3312 = vrcp.f32 %v2261_v34  ;;  %v2273_v42 = vand.u32 2147483648, %v2261_v34  ;;  %v2271_v9 = vand.u32 2147483647, %v2261_v34  ;;  %vm2267_vm6 = vweird.f32 %v2261_v34 }
 0x94e   :  { %v2240_v21 = vmul.f32 %v3311_v26, %v2238_v59  ;;  %vm2245_vm15 = vweird.f32 %v3311_v26 }
 0x94f   :  { %vm2246_vm3 = vmor %vm2244_vm1, %vm2245_vm15  ;;  %v2274_v46 = vor.u32 1.1754944e-38, %v2273_v42  ;;  %vm2272_vm10 = vcmp.eq.f32.partialorder %v2271_v9, 8.507059e+37 }
 0x950   :  { %v2241_v48 = vsub.f32 1.0, %v2240_v21 }
 0x952   :  { %v2242_v22 = vmul.f32 %v3311_v26, %v2241_v48 }
 0x953   :  { %v3313_v49 = vpop.eup %3312 }
 0x954   :  { %v2263_v5 = vmul.f32 %v3313_v49, %v2261_v34  ;;  %v2243_v14 = vadd.f32 %v3311_v26, %v2242_v22  ;;  %vm2268_vm5 = vweird.f32 %v3313_v49 }
 0x955   :  { %vm2269_vm9 = vmor %vm2267_vm6, %vm2268_vm5 }
 0x956   :  { %v2264_v18 = vsub.f32 1.0, %v2263_v5  ;;  %v2247_v36 = vsel %vm2246_vm3, %v3311_v26, %v2243_v14 }
 0x957   :  { %v2252_v37 = vsel %vm2249_vm4, %v2251_v19, %v2247_v36 }
 0x958   :  { %v2265_v40 = vmul.f32 %v3313_v49, %v2264_v18  ;;  %v2277_v24 = vmul.f32 %v2252_v37, %v2231_v10 }
 0x95a   :  { %v2266_v1 = vadd.f32 %v3313_v49, %v2265_v40  ;;  %v2280_v47 = vadd.f32 %v2278_v28, %v2277_v24 }
 0x95c   :  { %v2270_v21 = vsel %vm2269_vm9, %v3313_v49, %v2266_v1  ;;  %3314 = vtanh.f32 %v2280_v47 }
 0x95d   :  { %v2275_v59 = vsel %vm2272_vm10, %v2274_v46, %v2270_v21 }
 0x95e   :  { %v2282_v48 = vsub.f32 1.0, %v2275_v59  ;;  %v2284_v22 = vmul.f32 %v2275_v59, %v4979_v17  ;;  %v5164_v17 = vld [vmem:[#allocation13 + $0x28] sm:$0xff] }
 0x962   :  { %v3315_v26 = vpop.eup %3314 }
 0x963   :  { %v2283_v63 = vmul.f32 %v3315_v26, %v2282_v48 }
 0x965   :  { %v5097_v57 = vadd.f32 %v2284_v22, %v2283_v63 }
 0x967   :  { %2287 = vst.msk [vmem:[#allocation5 + $0x6] sm:$0x3] %vm591_vm11, %v5097_v57  ;;  %2309 = vmatmul.f32.vlgmr.msra.gmra.mxu0 %v5097_v57  ;;  %2329 = vmatmul.f32.vlgmr.msra.gmra.mxu1 %v5097_v57 }
 0x968   :  { %2289 = vst.msk [vmem:[#allocation5 + $0x8] sm:$0x3] %vm594_vm12, %v5097_v57  ;;  %2349 = vmatmul.f32.vlgmr.msra.gmra.mxu2 %v5097_v57  ;;  %2567 = vmatpush.msra.mxu0 %v4988_v39 }
 0x969   :  { %2644 = vmatpush.msra.mxu1 %v4915_v38  ;;  %2664 = vmatpush.msra.mxu2 %v4918_v41  ;;  %v5124_v38 = vld [vmem:[#allocation13 + $0xe8] sm:$0xff]  ;;  %v5129_v41 = vld [vmem:[#allocation13 + $0xd0] sm:$0xff] }
 0x96a   :  { %2568 = vmatpush.msra.mxu0 %v4993_v16 }
 0x96b   :  { %2645 = vmatpush.msra.mxu1 %v4922_v60  ;;  %2665 = vmatpush.msra.mxu2 %v4925_v23  ;;  %v5134_v60 = vld [vmem:[#allocation13 + $0xb8] sm:$0xff]  ;;  %v5139_v23 = vld [vmem:[#allocation13 + $0xa0] sm:$0xff] }
 0x96c   :  { %2569 = vmatpush.msra.mxu0 %v4998_v3 }
 0x96d   :  { %2646 = vmatpush.msra.mxu1 %v4929_v11  ;;  %2666 = vmatpush.msra.mxu2 %v4932_v12  ;;  %v5144_v11 = vld [vmem:[#allocation13 + $0x88] sm:$0xff]  ;;  %v5149_v12 = vld [vmem:[#allocation13 + $0x70] sm:$0xff] }
 0x96e   :  { %2570 = vmatpush.msra.mxu0 %v5003_v25 }
 0x96f   :  { %2647 = vmatpush.msra.mxu1 %v4936_v44  ;;  %2667 = vmatpush.msra.mxu2 %v4939_v58  ;;  %v5154_v44 = vld [vmem:[#allocation13 + $0x58] sm:$0xff]  ;;  %v5159_v58 = vld [vmem:[#allocation13 + $0x40] sm:$0xff] }
 0x970   :  { %2571 = vmatpush.msra.mxu0 %v5008_v8 }
 0x971   :  { %2648 = vmatpush.msra.mxu1 %v5011_v15  ;;  %2668 = vmatpush.msra.mxu2 %v5014_v0  ;;  %v5169_v15 = vld [vmem:[#allocation13 + $0x10] sm:$0xff]  ;;  %v2291_v0 = vld [vmem:[#allocation3 + $0x12] sm:$0x3f] }
 0x972   :  { %2572 = vmatpush.msra.mxu0 %v5017_v6 }
 0x973   :  { %2649 = vmatpush.msra.mxu1 %v5020_v4  ;;  %2669 = vmatpush.msra.mxu2 %v5023_v20  ;;  %v2290_v4 = vld [vmem:[#allocation2 + $0x18] sm:$0x3f] }
 0x974   :  { %2573 = vmatpush.msra.mxu0 %v5124_v38  ;;  %v2292_v20 = vadd.f32 %v2291_v0, %v2290_v4 }
 0x975   :  { %2650 = vmatpush.msra.mxu1 %v5027_v27  ;;  %2670 = vmatpush.msra.mxu2 %v5030_v29 }
 0x976   :  { %2574 = vmatpush.msra.mxu0 %v5129_v41  ;;  %v2374_v27 = vrot.slane %v2292_v20, 2  ;;  %v2397_v37 = vrot.slane %v2292_v20, 4 }
 0x977   :  { %2651 = vmatpush.msra.mxu1 %v5034_v30  ;;  %2671 = vmatpush.msra.mxu2 %v5037_v31 }
 0x978   :  { %2575 = vmatpush.msra.mxu0 %v5134_v60 }
 0x979   :  { %2652 = vmatpush.msra.mxu1 %v5041_v50  ;;  %2672 = vmatpush.msra.mxu2 %v5044_v52 }
 0x97a   :  { %2576 = vmatpush.msra.mxu0 %v5139_v23 }
 0x97b   :  { %2653 = vmatpush.msra.mxu1 %v5048_v62  ;;  %2673 = vmatpush.msra.mxu2 %v5051_v32 }
 0x97c   :  { %2577 = vmatpush.msra.mxu0 %v5144_v11 }
 0x97d   :  { %2654 = vmatpush.msra.mxu1 %v5055_v7  ;;  %2674 = vmatpush.msra.mxu2 %v5058_v53 }
 0x97e   :  { %2578 = vmatpush.msra.mxu0 %v5149_v12 }
 0x97f   :  { %2655 = vmatpush.msra.mxu1 %v5062_v2  ;;  %2675 = vmatpush.msra.mxu2 %v5065_v33 }
 0x980   :  { %2579 = vmatpush.msra.mxu0 %v5154_v44 }
 0x981   :  { %2656 = vmatpush.msra.mxu1 %v5069_v61  ;;  %2676 = vmatpush.msra.mxu2 %v5072_v54 }
 0x982   :  { %2580 = vmatpush.msra.mxu0 %v5159_v58 }
 0x983   :  { %2657 = vmatpush.msra.mxu1 %v5076_v51  ;;  %2677 = vmatpush.msra.mxu2 %v5079_v55 }
 0x984   :  { %2581 = vmatpush.msra.mxu0 %v5164_v17 }
 0x985   :  { %2658 = vmatpush.msra.mxu1 %v5083_v43  ;;  %2678 = vmatpush.msra.mxu2 %v5086_v35 }
 0x986   :  { %2582 = vmatpush.msra.mxu0 %v5169_v15 }
 0x987   :  { %2659 = vmatpush.msra.mxu1 %v5090_v45  ;;  %2679 = vmatpush.msra.mxu2 %v5093_v56 }
 0x9e4   :  { %v2310_v29 = vpop.f32.mrf.mxu0  ;;  %v2330_v30 = vpop.f32.mrf.mxu1 }
 0x9e5   :  { %v2353_v31 = vadd.f32 %v2310_v29, %v2292_v20  ;;  %v2376_v50 = vadd.f32 %v2374_v27, %v2330_v30 }
 0x9e7   :  { %v3167_v52 = vmul.f32 -1.442695, %v2353_v31  ;;  %v3168_v62 = vmul.f32 -1.442695, %v2376_v50 }
 0x9e9   :  { %3316 = vpow2.f32 %v3167_v52 }
 0x9ea   :  { %3318 = vpow2.f32 %v3168_v62 }
 0x9eb   :  { %v2350_v14 = vpop.f32.mrf.mxu2 }
 0x9ef   :  { %v3317_v32 = vpop.eup %3316 }
 0x9f0   :  { %v3319_v7 = vpop.eup %3318  ;;  %v2357_v53 = vadd.f32 1.0, %v3317_v32 }
 0x9f1   :  { %v2380_v2 = vadd.f32 1.0, %v3319_v7 }
 0x9f2   :  { %3320 = vrcp.f32 %v2357_v53  ;;  %v2369_v35 = vand.u32 2147483648, %v2357_v53  ;;  %v2367_v56 = vand.u32 2147483647, %v2357_v53  ;;  %vm2363_vm14 = vweird.f32 %v2357_v53 }
 0x9f3   :  { %3322 = vrcp.f32 %v2380_v2  ;;  %v2392_v36 = vand.u32 2147483648, %v2380_v2  ;;  %vm2386_vm4 = vweird.f32 %v2380_v2  ;;  %v2390_v28 = vand.u32 2147483647, %v2380_v2 }
 0x9f4   :  { %v2370_v49 = vor.u32 1.1754944e-38, %v2369_v35  ;;  %vm2368_vm1 = vcmp.eq.f32.partialorder %v2367_v56, 8.507059e+37  ;;  %v2524_v56 = vld [vmem:[#allocation2 + $0x24] sm:$0x3f] }
 0x9f5   :  { %v2393_v24 = vor.u32 1.1754944e-38, %v2392_v36  ;;  %vm2391_vm6 = vcmp.eq.f32.partialorder %v2390_v28, 8.507059e+37 }
 0x9f8   :  { %v3321_v33 = vpop.eup %3320 }
 0x9f9   :  { %v3323_v61 = vpop.eup %3322  ;;  %v2359_v54 = vmul.f32 %v3321_v33, %v2357_v53  ;;  %vm2364_vm13 = vweird.f32 %v3321_v33 }
 0x9fa   :  { %v2382_v51 = vmul.f32 %v3323_v61, %v2380_v2  ;;  %vm2365_vm15 = vmor %vm2363_vm14, %vm2364_vm13  ;;  %vm2387_vm3 = vweird.f32 %v3323_v61 }
 0x9fb   :  { %v2360_v55 = vsub.f32 1.0, %v2359_v54  ;;  %vm2388_vm5 = vmor %vm2386_vm4, %vm2387_vm3 }
 0x9fc   :  { %v2383_v43 = vsub.f32 1.0, %v2382_v51 }
 0x9fd   :  { %v2361_v45 = vmul.f32 %v3321_v33, %v2360_v55 }
 0x9fe   :  { %v2384_v34 = vmul.f32 %v3323_v61, %v2383_v43 }
 0x9ff   :  { %v2362_v13 = vadd.f32 %v3321_v33, %v2361_v45 }
 0xa00   :  { %v2385_v18 = vadd.f32 %v3323_v61, %v2384_v34  ;;  %v2525_v34 = vld [vmem:[#allocation3 + $0x6] sm:$0x3f] }
 0xa01   :  { %v2366_v5 = vsel %vm2365_vm15, %v3321_v33, %v2362_v13  ;;  %v2526_v13 = vadd.f32 %v2525_v34, %v2524_v56  ;;  %v3028_v56 = vld [vmem:[%s5391_s11 + $0x10] sm:$0xff]  ;;  %v2793_v34 = vld [vmem:[%s5387_s7 + $0x18] sm:$0xff] }
 0xa02   :  { %v2371_v19 = vsel %vm2368_vm1, %v2370_v49, %v2366_v5  ;;  %v2389_v42 = vsel %vm2388_vm5, %v3323_v61, %v2385_v18 }
 0xa03   :  { %v2396_v10 = vmul.f32 %v2371_v19, %v2350_v14  ;;  %v2394_v9 = vsel %vm2391_vm6, %v2393_v24, %v2389_v42  ;;  %v2608_v49 = vrot.slane %v2526_v13, 2 }
 0xa04   :  { %v2401_v1 = vsub.f32 1.0, %v2394_v9  ;;  %v2403_v21 = vmul.f32 %v2394_v9, %v5097_v57 }
 0xa05   :  { %v2399_v40 = vadd.f32 %v2397_v37, %v2396_v10 }
 0xa07   :  { %3324 = vtanh.f32 %v2399_v40 }
 0xa0d   :  { %v3325_v47 = vpop.eup %3324 }
 0xa0e   :  { %v2402_v46 = vmul.f32 %v3325_v47, %v2401_v1 }
 0xa10   :  { %v5175_v59 = vadd.f32 %v2403_v21, %v2402_v46 }
 0xa12   :  { %2405 = vst.msk [vmem:[#allocation5 + $0x8] sm:$0x3] %vm591_vm11, %v5175_v59  ;;  %2426 = vmatmul.f32.vlgmr.msra.gmra.mxu3 %v5175_v59  ;;  %2446 = vmatmul.f32.vlgmr.msrb.gmra.mxu0 %v5175_v59 }
 0xa13   :  { %2406 = vst.msk [vmem:[#allocation5 + $0x6] sm:$0x3] %vm594_vm12, %v5175_v59  ;;  %2466 = vmatmul.f32.vlgmr.msrb.gmra.mxu1 %v5175_v59  ;;  %2684 = vmatpush.msra.mxu3 %v4988_v39  ;;  %v2407_v39 = vld [vmem:[#allocation2 + $0x1e] sm:$0x3f] }
 0xa15   :  { %2685 = vmatpush.msra.mxu3 %v4993_v16  ;;  %v2408_v16 = vld [vmem:[#allocation3 + $0xc] sm:$0x3f] }
 0xa17   :  { %2686 = vmatpush.msra.mxu3 %v4998_v3  ;;  %v2409_v3 = vadd.f32 %v2408_v16, %v2407_v39 }
 0xa19   :  { %2687 = vmatpush.msra.mxu3 %v5003_v25  ;;  %v2491_v25 = vrot.slane %v2409_v3, 2  ;;  %v2514_v32 = vrot.slane %v2409_v3, 4 }
 0xa1b   :  { %2688 = vmatpush.msra.mxu3 %v5008_v8 }
 0xa1d   :  { %2689 = vmatpush.msra.mxu3 %v5017_v6 }
 0xa1f   :  { %2690 = vmatpush.msra.mxu3 %v5124_v38 }
 0xa21   :  { %2691 = vmatpush.msra.mxu3 %v5129_v41 }
 0xa23   :  { %2692 = vmatpush.msra.mxu3 %v5134_v60 }
 0xa25   :  { %2693 = vmatpush.msra.mxu3 %v5139_v23 }
 0xa27   :  { %2694 = vmatpush.msra.mxu3 %v5144_v11 }
 0xa29   :  { %2695 = vmatpush.msra.mxu3 %v5149_v12 }
 0xa2b   :  { %2696 = vmatpush.msra.mxu3 %v5154_v44 }
 0xa2d   :  { %2697 = vmatpush.msra.mxu3 %v5159_v58 }
 0xa2f   :  { %2698 = vmatpush.msra.mxu3 %v5164_v17 }
 0xa31   :  { %2699 = vmatpush.msra.mxu3 %v5169_v15 }
 0xa8f   :  { %v2447_v8 = vpop.f32.mrf.mxu0 }
 0xa90   :  { %v2493_v6 = vadd.f32 %v2491_v25, %v2447_v8  ;;  %v2467_v50 = vpop.f32.mrf.mxu1 }
 0xa92   :  { %v3170_v48 = vmul.f32 -1.442695, %v2493_v6 }
 0xa94   :  { %3326 = vpow2.f32 %v3170_v48 }
 0xa95   :  { %v2427_v26 = vpop.f32.mrf.mxu3 }
 0xa96   :  { %v2470_v63 = vadd.f32 %v2427_v26, %v2409_v3 }
 0xa98   :  { %v3169_v22 = vmul.f32 -1.442695, %v2470_v63 }
 0xa9a   :  { %v3327_v57 = vpop.eup %3326  ;;  %3328 = vpow2.f32 %v3169_v22 }
 0xa9b   :  { %v2497_v38 = vadd.f32 1.0, %v3327_v57  ;;  %v2631_v57 = vrot.slane %v2526_v13, 4 }
 0xa9d   :  { %3330 = vrcp.f32 %v2497_v38  ;;  %v2509_v62 = vand.u32 2147483648, %v2497_v38  ;;  %vm2503_vm1 = vweird.f32 %v2497_v38  ;;  %v2507_v53 = vand.u32 2147483647, %v2497_v38 }
 0xa9f   :  { %v2510_v61 = vor.u32 1.1754944e-38, %v2509_v62  ;;  %vm2508_vm4 = vcmp.eq.f32.partialorder %v2507_v53, 8.507059e+37  ;;  %v3032_v53 = vld [vmem:[%s5391_s11 + $0x30] sm:$0xff] }
 0xaa0   :  { %v3329_v41 = vpop.eup %3328 }
 0xaa1   :  { %v2474_v60 = vadd.f32 1.0, %v3329_v41 }
 0xaa3   :  { %3332 = vrcp.f32 %v2474_v60  ;;  %v3331_v23 = vpop.eup %3330  ;;  %v2486_v15 = vand.u32 2147483648, %v2474_v60  ;;  %v2484_v4 = vand.u32 2147483647, %v2474_v60  ;;  %vm2480_vm10 = vweird.f32 %v2474_v60 }
 0xaa4   :  { %v2499_v11 = vmul.f32 %v3331_v23, %v2497_v38  ;;  %vm2504_vm15 = vweird.f32 %v3331_v23 }
 0xaa5   :  { %v2487_v29 = vor.u32 1.1754944e-38, %v2486_v15  ;;  %vm2485_vm14 = vcmp.eq.f32.partialorder %v2484_v4, 8.507059e+37  ;;  %vm2505_vm3 = vmor %vm2503_vm1, %vm2504_vm15  ;;  %v2641_v4 = vld [vmem:[#allocation2 + $0x2a] sm:$0x3f] }
 0xaa6   :  { %v2500_v58 = vsub.f32 1.0, %v2499_v11 }
 0xaa8   :  { %v2501_v20 = vmul.f32 %v3331_v23, %v2500_v58 }
 0xaa9   :  { %v3333_v12 = vpop.eup %3332 }
 0xaaa   :  { %v2476_v44 = vmul.f32 %v3333_v12, %v2474_v60  ;;  %vm2481_vm9 = vweird.f32 %v3333_v12  ;;  %v2502_v31 = vadd.f32 %v3331_v23, %v2501_v20  ;;  %v2642_v20 = vld [vmem:[#allocation3] sm:$0x3f] }
 0xaab   :  { %vm2482_vm13 = vmor %vm2480_vm10, %vm2481_vm9 }
 0xaac   :  { %v2477_v17 = vsub.f32 1.0, %v2476_v44  ;;  %v2506_v33 = vsel %vm2505_vm3, %v3331_v23, %v2502_v31 }
 0xaad   :  { %v2511_v54 = vsel %vm2508_vm4, %v2510_v61, %v2506_v33  ;;  %v3031_v61 = vld [vmem:[%s5391_s11 + $0x28] sm:$0xff] }
 0xaae   :  { %v2478_v0 = vmul.f32 %v3333_v12, %v2477_v17  ;;  %v2518_v51 = vsub.f32 1.0, %v2511_v54  ;;  %v2520_v35 = vmul.f32 %v2511_v54, %v5175_v59 }
 0xab0   :  { %v2479_v27 = vadd.f32 %v3333_v12, %v2478_v0 }
 0xab2   :  { %v2483_v30 = vsel %vm2482_vm13, %v3333_v12, %v2479_v27  ;;  %v5212_v27 = vadd.f32 %v2642_v20, %v2641_v4 }
 0xab3   :  { %v2488_v52 = vsel %vm2485_vm14, %v2487_v29, %v2483_v30 }
 0xab4   :  { %v2513_v7 = vmul.f32 %v2488_v52, %v2467_v50  ;;  %v2725_v50 = vrot.slane %v5212_v27, 2 }
 0xab6   :  { %v2516_v2 = vadd.f32 %v2514_v32, %v2513_v7  ;;  %v3033_v32 = vld [vmem:[%s5391_s11 + $0x38] sm:$0xff] }
 0xab8   :  { %3334 = vtanh.f32 %v2516_v2  ;;  %v2797_v2 = vld [vmem:[%s5387_s7 + $0x38] sm:$0xff] }
 0xab9   :  { %2816 = vmatpush.msrb.mxu0 %v2797_v2  ;;  %v5298_v2 = vld [vmem:[#allocation5 + $0x8] sm:$0x3] }
 0xabe   :  { %v3335_v55 = vpop.eup %3334 }
 0xabf   :  { %v2519_v43 = vmul.f32 %v3335_v55, %v2518_v51  ;;  %v2796_v51 = vld [vmem:[%s5387_s7 + $0x30] sm:$0xff]  ;;  %v3030_v55 = vld [vmem:[%s5391_s11 + $0x20] sm:$0xff] }
 0xac0   :  { %2817 = vmatpush.msrb.mxu0 %v2796_v51  ;;  %v2835_v51 = vld [vmem:[%s5389_s9 + $0x10] sm:$0xff] }
 0xac1   :  { %v2521_v45 = vadd.f32 %v2520_v35, %v2519_v43  ;;  %v2795_v43 = vld [vmem:[%s5387_s7 + $0x28] sm:$0xff]  ;;  %v3029_v35 = vld [vmem:[%s5391_s11 + $0x18] sm:$0xff] }
 0xac2   :  { %2818 = vmatpush.msrb.mxu0 %v2795_v43  ;;  %v2833_v43 = vld [vmem:[%s5389_s9] sm:$0xff] }
 0xac3   :  { %2522 = vst.msk [vmem:[#allocation5 + $0xa] sm:$0x3] %vm591_vm11, %v2521_v45  ;;  %2543 = vmatmul.f32.vlgmr.msrb.gmra.mxu2 %v2521_v45  ;;  %2563 = vmatmul.f32.vlgmr.msrb.gmra.mxu3 %v2521_v45 }
 0xac4   :  { %2523 = vst.msk [vmem:[#allocation5 + $0x4] sm:$0x3] %vm594_vm12, %v2521_v45  ;;  %2583 = vmatmul.f32.vlgmr.msra.gmra.mxu0 %v2521_v45  ;;  %3075 = vmatpush.msrb.mxu3 %v3033_v32 }
 0xac6   :  { %3076 = vmatpush.msrb.mxu3 %v3032_v53 }
 0xac8   :  { %3077 = vmatpush.msrb.mxu3 %v3031_v61 }
 0xaca   :  { %3078 = vmatpush.msrb.mxu3 %v3030_v55  ;;  %v2834_v55 = vld [vmem:[%s5389_s9 + $0x8] sm:$0xff] }
 0xacc   :  { %3079 = vmatpush.msrb.mxu3 %v3029_v35  ;;  %v3193_v35 = vld [vmem:[%s5388_s8] ss:$0 sm:$0xff] }
 0xace   :  { %3080 = vmatpush.msrb.mxu3 %v3028_v56 }
 0xb41   :  { %v2584_v48 = vpop.f32.mrf.mxu0 }
 0xb46   :  { %v2544_v5 = vpop.f32.mrf.mxu2  ;;  %v2564_v14 = vpop.f32.mrf.mxu3 }
 0xb47   :  { %v2587_v19 = vadd.f32 %v2544_v5, %v2526_v13  ;;  %v2610_v18 = vadd.f32 %v2608_v49, %v2564_v14  ;;  %v3027_v49 = vld [vmem:[%s5391_s11 + $0x8] sm:$0xff]  ;;  %v2792_v14 = vld [vmem:[%s5387_s7 + $0x10] sm:$0xff] }
 0xb48   :  { %3081 = vmatpush.msrb.mxu3 %v3027_v49 }
 0xb49   :  { %v3171_v36 = vmul.f32 -1.442695, %v2587_v19  ;;  %v3172_v10 = vmul.f32 -1.442695, %v2610_v18  ;;  %v3026_v19 = vld [vmem:[%s5391_s11] sm:$0xff] }
 0xb4a   :  { %3082 = vmatpush.msrb.mxu3 %v3026_v19 }
 0xb4b   :  { %3336 = vpow2.f32 %v3171_v36  ;;  %v2791_v36 = vld [vmem:[%s5387_s7 + $0x8] sm:$0xff] }
 0xb4c   :  { %3338 = vpow2.f32 %v3172_v10 }
 0xb51   :  { %v3337_v37 = vpop.eup %3336 }
 0xb52   :  { %v3339_v28 = vpop.eup %3338  ;;  %v2591_v40 = vadd.f32 1.0, %v3337_v37  ;;  %v2790_v37 = vld [vmem:[%s5387_s7] sm:$0xff] }
 0xb53   :  { %v2614_v42 = vadd.f32 1.0, %v3339_v28 }
 0xb54   :  { %3340 = vrcp.f32 %v2591_v40  ;;  %v2603_v21 = vand.u32 2147483648, %v2591_v40  ;;  %v2601_v16 = vand.u32 2147483647, %v2591_v40  ;;  %vm2597_vm6 = vweird.f32 %v2591_v40 }
 0xb55   :  { %3342 = vrcp.f32 %v2614_v42  ;;  %v2626_v38 = vand.u32 2147483648, %v2614_v42  ;;  %vm2620_vm14 = vweird.f32 %v2614_v42  ;;  %v2624_v41 = vand.u32 2147483647, %v2614_v42 }
 0xb56   :  { %v2604_v8 = vor.u32 1.1754944e-38, %v2603_v21  ;;  %vm2602_vm10 = vcmp.eq.f32.partialorder %v2601_v16, 8.507059e+37 }
 0xb57   :  { %v2627_v11 = vor.u32 1.1754944e-38, %v2626_v38  ;;  %vm2625_vm1 = vcmp.eq.f32.partialorder %v2624_v41, 8.507059e+37 }
 0xb5a   :  { %v3341_v24 = vpop.eup %3340 }
 0xb5b   :  { %v3343_v9 = vpop.eup %3342  ;;  %v2593_v1 = vmul.f32 %v3341_v24, %v2591_v40  ;;  %vm2598_vm5 = vweird.f32 %v3341_v24 }
 0xb5c   :  { %v2616_v47 = vmul.f32 %v3343_v9, %v2614_v42  ;;  %vm2599_vm9 = vmor %vm2597_vm6, %vm2598_vm5  ;;  %vm2621_vm13 = vweird.f32 %v3343_v9 }
 0xb5d   :  { %v2594_v46 = vsub.f32 1.0, %v2593_v1  ;;  %vm2622_vm15 = vmor %vm2620_vm14, %vm2621_vm13 }
 0xb5e   :  { %v2617_v59 = vsub.f32 1.0, %v2616_v47 }
 0xb5f   :  { %v2595_v39 = vmul.f32 %v3341_v24, %v2594_v46 }
 0xb60   :  { %v2618_v3 = vmul.f32 %v3343_v9, %v2617_v59 }
 0xb61   :  { %v2596_v25 = vadd.f32 %v3341_v24, %v2595_v39 }
 0xb62   :  { %v2619_v63 = vadd.f32 %v3343_v9, %v2618_v3  ;;  %v2748_v3 = vrot.slane %v5212_v27, 4 }
 0xb63   :  { %v2600_v6 = vsel %vm2599_vm9, %v3341_v24, %v2596_v25 }
 0xb64   :  { %v2605_v26 = vsel %vm2602_vm10, %v2604_v8, %v2600_v6  ;;  %v2623_v23 = vsel %vm2622_vm15, %v3343_v9, %v2619_v63 }
 0xb65   :  { %v2630_v22 = vmul.f32 %v2605_v26, %v2584_v48  ;;  %v2628_v12 = vsel %vm2625_vm1, %v2627_v11, %v2623_v23  ;;  %vm3010_vm1 = vcmask 517120  }
 0xb66   :  { %v2635_v44 = vsub.f32 1.0, %v2628_v12  ;;  %v2637_v15 = vmul.f32 %v2628_v12, %v2521_v45  ;;  %v2794_v45 = vld [vmem:[%s5387_s7 + $0x20] sm:$0xff]  ;;  %s3099_s7 = sshll.u32 %s3606_s30, 4  ;;  %s3100_s7 = int_to_ptr.vmem [resolvable:$true] %s3099_s7 }
 0xb67   :  { %v2633_v60 = vadd.f32 %v2631_v57, %v2630_v22  ;;  %2819 = vmatpush.msrb.mxu0 %v2794_v45  ;;  %v2836_v22 = vld [vmem:[%s5389_s9 + $0x18] sm:$0xff] }
 0xb68   :  { %2860 = vmatpush.msrb.mxu1 %v2836_v22 }
 0xb69   :  { %3344 = vtanh.f32 %v2633_v60  ;;  %2820 = vmatpush.msrb.mxu0 %v2793_v34 }
 0xb6a   :  { %2861 = vmatpush.msrb.mxu1 %v2835_v51 }
 0xb6b   :  { %2821 = vmatpush.msrb.mxu0 %v2792_v14  ;;  %v3194_v14 = vld [vmem:[#allocation6] ss:$0 sm:$0xff] }
 0xb6c   :  { %2862 = vmatpush.msrb.mxu1 %v2834_v55 }
 0xb6d   :  { %2822 = vmatpush.msrb.mxu0 %v2791_v36 }
 0xb6e   :  { %2863 = vmatpush.msrb.mxu1 %v2833_v43 }
 0xb6f   :  { %v3345_v58 = vpop.eup %3344  ;;  %2823 = vmatpush.msrb.mxu0 %v2790_v37 }
 0xb70   :  { %v2636_v17 = vmul.f32 %v3345_v58, %v2635_v44 }
 0xb72   :  { %v5203_v0 = vadd.f32 %v2637_v15, %v2636_v17  ;;  %v5273_v17 = vld [vmem:[#allocation5 + $0x4] sm:$0x3]  ;;  %v5275_v15 = vld [vmem:[#allocation5 + $0x6] sm:$0x3] }
 0xb74   :  { %2639 = vst.msk [vmem:[#allocation5 + $0xc] sm:$0x3] %vm591_vm11, %v5203_v0  ;;  %2660 = vmatmul.f32.vlgmr.msra.gmra.mxu1 %v5203_v0  ;;  %2680 = vmatmul.f32.vlgmr.msra.gmra.mxu2 %v5203_v0 }
 0xb75   :  { %2640 = vst.msk [vmem:[#allocation5 + $0x2] sm:$0x3] %vm594_vm12, %v5203_v0  ;;  %2700 = vmatmul.f32.vlgmr.msra.gmra.mxu3 %v5203_v0 }
 0xb7c   :  { %v5271_v58 = vld [vmem:[#allocation5 + $0x2] sm:$0x3] }
 0xb7d   :  { %v2767_v20 = vrot.slane %v5271_v58, 6 }
 0xbf1   :  { %v2661_v29 = vpop.f32.mrf.mxu1 }
 0xbf2   :  { %v2704_v30 = vadd.f32 %v2661_v29, %v5212_v27  ;;  %v2773_v29 = vrot.slane %v5275_v15, 2 }
 0xbf4   :  { %v3173_v31 = vmul.f32 -1.442695, %v2704_v30 }
 0xbf6   :  { %3346 = vpow2.f32 %v3173_v31 }
 0xbf7   :  { %v2681_v52 = vpop.f32.mrf.mxu2 }
 0xbf8   :  { %v2727_v62 = vadd.f32 %v2725_v50, %v2681_v52  ;;  %v2701_v39 = vpop.f32.mrf.mxu3  ;;  %v5289_v50 = vld [vmem:[#allocation5 + $0xa] sm:$0x3] }
 0xbf9   :  { %v2776_v32 = vrot.slane %v5289_v50, 6 }
 0xbfa   :  { %v3174_v7 = vmul.f32 -1.442695, %v2727_v62  ;;  %v5292_v62 = vld [vmem:[#allocation5 + $0xc] sm:$0x3] }
 0xbfc   :  { %v3347_v33 = vpop.eup %3346  ;;  %3348 = vpow2.f32 %v3174_v7  ;;  %v2779_v7 = vrot.slane %v5292_v62, 4 }
 0xbfd   :  { %v2708_v54 = vadd.f32 1.0, %v3347_v33  ;;  %v2787_v33 = vsel %vm298_vm2, %v5298_v2, %v2776_v32 }
 0xbfe   :  { %v2788_v61 = vsel %vm132_vm0, %v2787_v33, %v2779_v7 }
 0xbff   :  { %3350 = vrcp.f32 %v2708_v54  ;;  %v2720_v40 = vand.u32 2147483648, %v2708_v54  ;;  %v2718_v24 = vand.u32 2147483647, %v2708_v54  ;;  %vm2714_vm4 = vweird.f32 %v2708_v54 }
 0xc01   :  { %v2721_v46 = vor.u32 1.1754944e-38, %v2720_v40  ;;  %vm2719_vm6 = vcmp.eq.f32.partialorder %v2718_v24, 8.507059e+37 }
 0xc02   :  { %v3349_v13 = vpop.eup %3348 }
 0xc03   :  { %v2731_v5 = vadd.f32 1.0, %v3349_v13 }
 0xc05   :  { %v3351_v18 = vpop.eup %3350  ;;  %3352 = vrcp.f32 %v2731_v5  ;;  %v2743_v8 = vand.u32 2147483648, %v2731_v5  ;;  %v2741_v48 = vand.u32 2147483647, %v2731_v5  ;;  %vm2737_vm10 = vweird.f32 %v2731_v5 }
 0xc06   :  { %v2710_v10 = vmul.f32 %v3351_v18, %v2708_v54  ;;  %vm2715_vm3 = vweird.f32 %v3351_v18 }
 0xc07   :  { %vm2716_vm5 = vmor %vm2714_vm4, %vm2715_vm3  ;;  %v2744_v57 = vor.u32 1.1754944e-38, %v2743_v8  ;;  %vm2742_vm14 = vcmp.eq.f32.partialorder %v2741_v48, 8.507059e+37  ;;  %vm3092_vm3 = vcmask 33792  }
 0xc08   :  { %v2711_v28 = vsub.f32 1.0, %v2710_v10 }
 0xc0a   :  { %v2712_v42 = vmul.f32 %v3351_v18, %v2711_v28 }
 0xc0b   :  { %v3353_v9 = vpop.eup %3352 }
 0xc0c   :  { %v2733_v1 = vmul.f32 %v3353_v9, %v2731_v5  ;;  %v2713_v47 = vadd.f32 %v3351_v18, %v2712_v42  ;;  %vm2738_vm9 = vweird.f32 %v3353_v9 }
 0xc0d   :  { %vm2739_vm13 = vmor %vm2737_vm10, %vm2738_vm9 }
 0xc0e   :  { %v2734_v21 = vsub.f32 1.0, %v2733_v1  ;;  %v2717_v59 = vsel %vm2716_vm5, %v3351_v18, %v2713_v47  ;;  %v3605_v18 = vmov 0  }
 0xc0f   :  { %v2722_v16 = vsel %vm2719_vm6, %v2721_v46, %v2717_v59  ;;  %3192 = vset.pattern.permute.xlu2 %v3605_v18  ;;  %3191 = vset.pattern.permute.xlu1 %v3605_v18 }
 0xc10   :  { %v2735_v25 = vmul.f32 %v3353_v9, %v2734_v21  ;;  %v2747_v6 = vmul.f32 %v2722_v16, %v2701_v39  ;;  %3190 = vset.pattern.permute.xlu0 %v3605_v18 }
 0xc12   :  { %v2736_v26 = vadd.f32 %v3353_v9, %v2735_v25  ;;  %v2750_v63 = vadd.f32 %v2748_v3, %v2747_v6 }
 0xc14   :  { %v2740_v38 = vsel %vm2739_vm13, %v3353_v9, %v2736_v26  ;;  %3354 = vtanh.f32 %v2750_v63 }
 0xc15   :  { %v2745_v41 = vsel %vm2742_vm14, %v2744_v57, %v2740_v38 }
 0xc16   :  { %v2752_v60 = vsub.f32 1.0, %v2745_v41  ;;  %v2754_v12 = vmul.f32 %v2745_v41, %v5203_v0  ;;  %v2770_v0 = vrot.slane %v5273_v17, 4 }
 0xc1a   :  { %v3355_v23 = vpop.eup %3354 }
 0xc1b   :  { %v2753_v11 = vmul.f32 %v3355_v23, %v2752_v60 }
 0xc1d   :  { %v2755_v44 = vadd.f32 %v2754_v12, %v2753_v11 }
 0xc1f   :  { %2756 = vst.msk [vmem:[#allocation5 + $0xe] sm:$0x3] %vm591_vm11, %v2755_v44 }
 0xc20   :  { %2757 = vst.msk [vmem:[#allocation5] sm:$0x3] %vm594_vm12, %v2755_v44 }
 0xc26   :  { %v5277_v4 = vld [vmem:[#allocation5 + $0xe] sm:$0x3] }
 0xc27   :  { %3180 = vmatmul.msk.f32.vlgmr.msrb.gmra.mxu3 %vm1478_vm8, %v5277_v4  ;;  %v5282_v27 = vld [vmem:[#allocation5] sm:$0x3]  ;;  %v2782_v53 = vrot.slane %v5277_v4, 2 }
 0xc28   :  { %v2784_v30 = vsel %vm298_vm2, %v5282_v27, %v2767_v20  ;;  %vm2885_vm2 = vcmask 1024  }
 0xc29   :  { %v2785_v31 = vsel %vm132_vm0, %v2784_v30, %v2770_v0  ;;  %v2789_v54 = vsel %vm1449_vm7, %v2788_v61, %v2782_v53  ;;  %vm2841_vm0 = vcmask 261120  }
 0xc2a   :  { %v2786_v52 = vsel %vm1449_vm7, %v2785_v31, %v2773_v29 }
 0xc2b   :  { %3175 = vmatmul.msk.f32.vlgmr.msrb.gmra.mxu0 %vm1478_vm8, %v2786_v52 }
 0xc33   :  { %3176 = vmatmul.msk.f32.gmra.mxu0 %vm1478_vm8, %v2789_v54 }
 0xca8   :  { %v2825_v45 = vpop.f32.mrf.mxu0 }
 0xca9   :  { %v2826_v56 = vadd.f32 %v3193_v35, %v2825_v45 }
 0xcab   :  { %v2831_v34 = vmax.f32 %v2826_v56, 0.0 }
 0xcad   :  { %3177 = vmatmul.msk.f32.vlgmr.msrb.gmra.mxu1 %vm2841_vm0, %v2831_v34 }
 0xcb0   :  { %v2828_v13 = vpop.f32.mrf.mxu0 }
 0xcb1   :  { %v2829_v49 = vadd.f32 %v3193_v35, %v2828_v13 }
 0xcb3   :  { %v2832_v5 = vmax.f32 %v2829_v49, 0.0 }
 0xcb5   :  { %3178 = vmatmul.msk.f32.gmra.mxu1 %vm2841_vm0, %v2832_v5 }
 0xd2a   :  { %v2865_v19 = vpop.f32.mrf.mxu1 }
 0xd2b   :  { %v2866_v36 = vadd.f32 %v3194_v14, %v2865_v19 }
 0xd2d   :  { %v2872_v10 = vrot.slane %v2866_v36, 2  ;;  %v2874_v37 = vrot.slane %v2866_v36, 4  ;;  %v2876_v40 = vrot.slane %v2866_v36, 6  ;;  %v2886_v46 = vsel %vm2885_vm2, %v2866_v36, -inf }
 0xd2f   :  { %v2887_v21 = vsel %vm2885_vm2, %v2872_v10, -inf  ;;  %v2888_v59 = vsel %vm2885_vm2, %v2874_v37, -inf  ;;  %v2889_v39 = vsel %vm2885_vm2, %v2876_v40, -inf }
 0xd32   :  { %v2868_v28 = vpop.f32.mrf.mxu1 }
 0xd33   :  { %v2869_v42 = vadd.f32 %v3194_v14, %v2868_v28 }
 0xd35   :  { %v2879_v24 = vrot.slane %v2869_v42, 2  ;;  %v2881_v9 = vrot.slane %v2869_v42, 4  ;;  %v2883_v1 = vrot.slane %v2869_v42, 6  ;;  %v2890_v47 = vsel %vm2885_vm2, %v2869_v42, -inf }
 0xd36   :  { %v2891_v8 = vmax.f32 %v2886_v46, %v2890_v47 }
 0xd37   :  { %v2892_v16 = vsel %vm2885_vm2, %v2879_v24, -inf  ;;  %v2894_v3 = vsel %vm2885_vm2, %v2881_v9, -inf  ;;  %v2896_v25 = vsel %vm2885_vm2, %v2883_v1, -inf }
 0xd38   :  { %v2893_v6 = vmax.f32 %v2887_v21, %v2892_v16  ;;  %v2895_v48 = vmax.f32 %v2888_v59, %v2894_v3  ;;  %v2897_v26 = vmax.f32 %v2889_v39, %v2896_v25 }
 0xd3a   :  { %v2898_v63 = vmax.f32 %v2891_v8, %v2893_v6  ;;  %v2899_v22 = vmax.f32 %v2895_v48, %v2897_v26 }
 0xd3c   :  { %v2900_v57 = vmax.f32 %v2898_v63, %v2899_v22 }
 0xd3e   :  { %v2901_v38 = vsub.f32 %v2866_v36, %v2900_v57  ;;  %v2902_v41 = vsub.f32 %v2872_v10, %v2900_v57  ;;  %v2903_v60 = vsub.f32 %v2874_v37, %v2900_v57  ;;  %v2904_v23 = vsub.f32 %v2876_v40, %v2900_v57 }
 0xd3f   :  { %v2905_v12 = vsub.f32 %v2869_v42, %v2900_v57  ;;  %v2906_v0 = vsub.f32 %v2879_v24, %v2900_v57  ;;  %v2907_v30 = vsub.f32 %v2881_v9, %v2900_v57  ;;  %v2908_v52 = vsub.f32 %v2883_v1, %v2900_v57 }
 0xd40   :  { %v2909_v11 = vmul.f32 1.442695, %v2901_v38  ;;  %v2911_v44 = vmul.f32 1.442695, %v2902_v41  ;;  %v2913_v20 = vmul.f32 1.442695, %v2903_v60 }
 0xd41   :  { %v2915_v29 = vmul.f32 1.442695, %v2904_v23  ;;  %v2917_v31 = vmul.f32 1.442695, %v2905_v12  ;;  %v2919_v32 = vmul.f32 1.442695, %v2906_v0 }
 0xd42   :  { %3356 = vpow2.f32 %v2909_v11  ;;  %v2921_v7 = vmul.f32 1.442695, %v2907_v30  ;;  %v2923_v61 = vmul.f32 1.442695, %v2908_v52  ;;  %v3041_v41 = vld [vmem:[%s5392_s12 + $0x38] sm:$0xff]  ;;  %v3040_v60 = vld [vmem:[%s5392_s12 + $0x30] sm:$0xff] }
 0xd43   :  { %3358 = vpow2.f32 %v2911_v44  ;;  %3053 = vmatpush.msrb.mxu2 %v3041_v41  ;;  %v3039_v23 = vld [vmem:[%s5392_s12 + $0x28] sm:$0xff]  ;;  %v3038_v11 = vld [vmem:[%s5392_s12 + $0x20] sm:$0xff]  ;;  %v3037_v12 = vld [vmem:[%s5392_s12 + $0x18] sm:$0xff] }
 0xd44   :  { %3360 = vpow2.f32 %v2913_v20  ;;  %v3036_v44 = vld [vmem:[%s5392_s12 + $0x10] sm:$0xff]  ;;  %v3035_v20 = vld [vmem:[%s5392_s12 + $0x8] sm:$0xff]  ;;  %v3034_v0 = vld [vmem:[%s5392_s12] sm:$0xff] }
 0xd45   :  { %3362 = vpow2.f32 %v2915_v29  ;;  %3054 = vmatpush.msrb.mxu2 %v3040_v60 }
 0xd46   :  { %3364 = vpow2.f32 %v2917_v31 }
 0xd47   :  { %3366 = vpow2.f32 %v2919_v32  ;;  %3055 = vmatpush.msrb.mxu2 %v3039_v23 }
 0xd48   :  { %v3357_v53 = vpop.eup %3356  ;;  %3368 = vpow2.f32 %v2921_v7 }
 0xd49   :  { %v3359_v33 = vpop.eup %3358  ;;  %v2925_v54 = vsel %vm2885_vm2, %v3357_v53, 0.0  ;;  %3370 = vpow2.f32 %v2923_v61  ;;  %3056 = vmatpush.msrb.mxu2 %v3038_v11 }
 0xd4a   :  { %v3361_v51 = vpop.eup %3360  ;;  %v2926_v55 = vsel %vm2885_vm2, %v3359_v33, 0.0 }
 0xd4b   :  { %v3363_v43 = vpop.eup %3362  ;;  %v2927_v35 = vadd.f32 %v2926_v55, %v2925_v54  ;;  %v2928_v45 = vsel %vm2885_vm2, %v3361_v51, 0.0  ;;  %3057 = vmatpush.msrb.mxu2 %v3037_v12 }
 0xd4c   :  { %v3365_v56 = vpop.eup %3364  ;;  %v2930_v13 = vsel %vm2885_vm2, %v3363_v43, 0.0 }
 0xd4d   :  { %v2929_v34 = vadd.f32 %v2928_v45, %v2927_v35  ;;  %v3367_v49 = vpop.eup %3366  ;;  %v2932_v14 = vsel %vm2885_vm2, %v3365_v56, 0.0  ;;  %3058 = vmatpush.msrb.mxu2 %v3036_v44 }
 0xd4e   :  { %v3369_v19 = vpop.eup %3368  ;;  %v2934_v36 = vsel %vm2885_vm2, %v3367_v49, 0.0 }
 0xd4f   :  { %v2931_v5 = vadd.f32 %v2930_v13, %v2929_v34  ;;  %v3371_v10 = vpop.eup %3370  ;;  %v2936_v28 = vsel %vm2885_vm2, %v3369_v19, 0.0  ;;  %3059 = vmatpush.msrb.mxu2 %v3035_v20 }
 0xd50   :  { %v2938_v42 = vsel %vm2885_vm2, %v3371_v10, 0.0 }
 0xd51   :  { %v2933_v18 = vadd.f32 %v2932_v14, %v2931_v5  ;;  %3060 = vmatpush.msrb.mxu2 %v3034_v0 }
 0xd53   :  { %v2935_v37 = vadd.f32 %v2934_v36, %v2933_v18 }
 0xd55   :  { %v2937_v40 = vadd.f32 %v2936_v28, %v2935_v37  ;;  %v3195_v37 = vld [vmem:[%s5393_s13] ss:$0 sm:$0xff]  ;;  %v3084_v28 = vpop.f32.mrf.mxu3 }
 0xd57   :  { %v2939_v24 = vadd.f32 %v2938_v42, %v2937_v40 }
 0xd59   :  { %3372 = vrcp.f32 %v2939_v24  ;;  %v2951_v46 = vand.u32 2147483648, %v2939_v24  ;;  %v2949_v59 = vand.u32 2147483647, %v2939_v24  ;;  %vm2945_vm12 = vweird.f32 %v2939_v24 }
 0xd5b   :  { %v2952_v16 = vor.u32 1.1754944e-38, %v2951_v46  ;;  %vm2950_vm15 = vcmp.eq.f32.partialorder %v2949_v59, 8.507059e+37 }
 0xd5f   :  { %v3373_v9 = vpop.eup %3372 }
 0xd60   :  { %v2941_v1 = vmul.f32 %v3373_v9, %v2939_v24  ;;  %vm2946_vm11 = vweird.f32 %v3373_v9 }
 0xd61   :  { %vm2947_vm7 = vmor %vm2945_vm12, %vm2946_vm11 }
 0xd62   :  { %v2942_v47 = vsub.f32 1.0, %v2941_v1 }
 0xd64   :  { %v2943_v21 = vmul.f32 %v3373_v9, %v2942_v47 }
 0xd66   :  { %v2944_v39 = vadd.f32 %v3373_v9, %v2943_v21 }
 0xd68   :  { %v2948_v3 = vsel %vm2947_vm7, %v3373_v9, %v2944_v39 }
 0xd69   :  { %v2953_v25 = vsel %vm2950_vm15, %v2952_v16, %v2948_v3 }
 0xd6a   :  { %v2958_v8 = vmul.f32 %v3365_v56, %v2953_v25  ;;  %v2956_v6 = vmul.f32 %v3361_v51, %v2953_v25  ;;  %v2954_v48 = vmul.f32 %v3357_v53, %v2953_v25  ;;  %v2959_v26 = vmul.f32 %v3367_v49, %v2953_v25 }
 0xd6b   :  { %v2957_v63 = vmul.f32 %v3363_v43, %v2953_v25  ;;  %v2955_v22 = vmul.f32 %v3359_v33, %v2953_v25  ;;  %v2961_v57 = vmul.f32 %v3371_v10, %v2953_v25  ;;  %v2960_v38 = vmul.f32 %v3369_v19, %v2953_v25 }
 0xd6c   :  { %2984 = vperm.xlu2 %3192, %v2958_v8   ;;  %2974 = vperm.xlu1 %3191, %v2956_v6  }
 0xd6d   :  { %2964 = vperm.xlu0 %3190, %v2954_v48  }
 0xd74   :  { %2989 = vperm.xlu2 %3192, %v2959_v26   ;;  %2979 = vperm.xlu1 %3191, %v2957_v63  }
 0xd75   :  { %2969 = vperm.xlu0 %3190, %v2955_v22  }
 0xd7c   :  { %2999 = vperm.xlu1 %3191, %v2961_v57  }
 0xd7d   :  { %2994 = vperm.xlu0 %3190, %v2960_v38  }
 0xdc6   :  { %v2985_v31 = vpop.permute.xlu2 %2984 }
 0xdc7   :  { %v3006_v35 = vmul.f32 %v2985_v31, %v5298_v2 }
 0xdc9   :  { %v3018_v49 = vsel %vm3010_vm1, %v3006_v35, 0.0 }
 0xdce   :  { %v2990_v55 = vpop.permute.xlu2 %2989 }
 0xdcf   :  { %v3007_v56 = vmul.f32 %v2990_v55, %v5289_v50 }
 0xdd1   :  { %v3020_v14 = vsel %vm3010_vm1, %v3007_v56, 0.0 }
 0xdde   :  { %v2975_v29 = vpop.permute.xlu1 %2974 }
 0xddf   :  { %v2965_v30 = vpop.permute.xlu0 %2964  ;;  %v3004_v53 = vmul.f32 %v2975_v29, %v5273_v17 }
 0xde0   :  { %v3002_v52 = vmul.f32 %v2965_v30, %v5282_v27 }
 0xde1   :  { %v3014_v45 = vsel %vm3010_vm1, %v3004_v53, 0.0 }
 0xde2   :  { %v3011_v61 = vsel %vm3010_vm1, %v3002_v52, 0.0 }
 0xde6   :  { %v2980_v32 = vpop.permute.xlu1 %2979 }
 0xde7   :  { %v2970_v7 = vpop.permute.xlu0 %2969  ;;  %v3005_v54 = vmul.f32 %v2980_v32, %v5275_v15 }
 0xde8   :  { %v3003_v33 = vmul.f32 %v2970_v7, %v5271_v58 }
 0xde9   :  { %v3016_v17 = vsel %vm3010_vm1, %v3005_v54, 0.0 }
 0xdea   :  { %v3012_v51 = vsel %vm3010_vm1, %v3003_v33, 0.0 }
 0xdeb   :  { %v3013_v43 = vadd.f32 %v3012_v51, %v3011_v61 }
 0xded   :  { %v3015_v27 = vadd.f32 %v3014_v45, %v3013_v43 }
 0xdee   :  { %v3000_v58 = vpop.permute.xlu1 %2999 }
 0xdef   :  { %v3017_v34 = vadd.f32 %v3016_v17, %v3015_v27  ;;  %v2995_v13 = vpop.permute.xlu0 %2994  ;;  %v3009_v19 = vmul.f32 %v3000_v58, %v5277_v4 }
 0xdf0   :  { %v3008_v15 = vmul.f32 %v2995_v13, %v5292_v62 }
 0xdf1   :  { %v3019_v5 = vadd.f32 %v3018_v49, %v3017_v34  ;;  %v3024_v50 = vsel %vm3010_vm1, %v3009_v19, 0.0 }
 0xdf2   :  { %v3022_v18 = vsel %vm3010_vm1, %v3008_v15, 0.0 }
 0xdf3   :  { %v3021_v2 = vadd.f32 %v3020_v14, %v3019_v5 }
 0xdf5   :  { %v3023_v36 = vadd.f32 %v3022_v18, %v3021_v2 }
 0xdf7   :  { %v3025_v10 = vadd.f32 %v3024_v50, %v3023_v36 }
 0xdf9   :  { %3179 = vmatmul.msk.f32.vlgmr.msrb.gmra.mxu2 %vm1478_vm8, %v3025_v10 }
 0xe7c   :  { %v3062_v62 = vpop.f32.mrf.mxu2 }
 0xe7d   :  { %v3085_v4 = vadd.f32 %v3084_v28, %v3062_v62 }
 0xe7f   :  { %v3091_v40 = vadd.f32 %v3195_v37, %v3085_v4 }
 0xe81   :  { %3093 = vst.msk [vmem:[#allocation15] sm:$0x3] %vm3092_vm3, %v3091_v40 }
 0xe82   :  { %3104 = dma.vmem_to_hbm [thread:$0]  %s3100_s7, 32, %s3102_s16, [#allocation9]  }
 0xe83   :  { %3596 = dma.done.wait [#allocation9], 32  }
 0xe84   :  { %3597 = vsyncadd [#allocation9], 4294967264 }
 0xe85   :  { %3109 = vsyncpa [#allocation8], 1 }
 0xe86   :  { %3110 = vsyncpa [#allocation11], 1 }
 0xe87   :  { %3111 = vsyncpa [#allocation14], 1 }
 0xe88   :  { %3112 = vsyncpa [#allocation9], 1 }

</bundles_post_ra>
